<compile_context>
chip_gen: v7x
topology: tpu7x:2x2x1
jax: 0.10.0
libtpu: 0.0.40
codegen_flags: <defaults>
</compile_context>

<pallas_src>
import functools

import jax
import jax.numpy as jnp
from jax.experimental import pallas as pl
from jax.experimental.pallas import tpu as pltpu


# ----------------------------------------------------------------------------
# Pallas kernels
# ----------------------------------------------------------------------------
def _fused_matmul_kernel(relu, has_residual, *refs):
    """o = [relu](x @ w + b [+ residual]); K is the trailing (reduction) axis."""
    if has_residual:
        x_ref, w_ref, b_ref, r_ref, o_ref, acc_ref = refs
    else:
        x_ref, w_ref, b_ref, o_ref, acc_ref = refs
        r_ref = None
    k = pl.program_id(2)

    @pl.when(k == 0)
    def _():
        acc_ref[...] = jnp.zeros_like(acc_ref)

    acc_ref[...] += jnp.dot(x_ref[...], w_ref[...],
                            preferred_element_type=jnp.float32)

    @pl.when(k == pl.num_programs(2) - 1)
    def _():
        y = acc_ref[...] + b_ref[...]          # f32 epilogue (v5e-safe)
        if r_ref is not None:
            y = y + r_ref[...]
        if relu:
            y = jnp.maximum(y, 0.0)
        o_ref[...] = y


def _nway_max_kernel(n, *refs):
    """Elementwise max of n lane-dense slabs (maxpool over the k*k taps)."""
    o_ref = refs[n]
    y = refs[0][...]
    for i in range(1, n):
        y = jnp.maximum(y, refs[i][...])
    o_ref[...] = y


# ----------------------------------------------------------------------------
# Tiling helpers and Pallas wrappers
# ----------------------------------------------------------------------------
def _round_up(v, m):
    return (v + m - 1) // m * m


def _choose_tile(size, unit, max_tile):
    """Largest tile = unit*d with d | (padded_size/unit) and unit*d <= max_tile."""
    q = max(1, _round_up(size, unit) // unit)
    max_d = max(1, max_tile // unit)
    d = 1
    for cand in range(min(q, max_d), 0, -1):
        if q % cand == 0:
            d = cand
            break
    return unit * d, unit * q


def _fused_matmul(x, w, b, residual=None, relu=False):
    """x:(M,K) float, w:(K,N) bf16, b:(1,N) f32, residual:(M,N) f32 -> (M,N) f32."""
    M, K = x.shape
    N = w.shape[1]
    tm, Mp = _choose_tile(M, 8, 256)      # sublane axis
    tn, Np = _choose_tile(N, 128, 256)    # lane-dense output (>=128 lanes)
    tk, Kp = _choose_tile(K, 128, 512)    # reduction axis

    xp = jnp.pad(x.astype(jnp.bfloat16), ((0, Mp - M), (0, Kp - K)))
    wp = jnp.pad(w.astype(jnp.bfloat16), ((0, Kp - K), (0, Np - N)))
    bp = jnp.pad(b.astype(jnp.float32), ((0, 0), (0, Np - N)))

    in_specs = [
        pl.BlockSpec((tm, tk), lambda i, j, k: (i, k)),
        pl.BlockSpec((tk, tn), lambda i, j, k: (k, j)),
        pl.BlockSpec((1, tn), lambda i, j, k: (0, j)),
    ]
    args = [xp, wp, bp]
    if residual is not None:
        rp = jnp.pad(residual.astype(jnp.float32), ((0, Mp - M), (0, Np - N)))
        in_specs.append(pl.BlockSpec((tm, tn), lambda i, j, k: (i, j)))
        args.append(rp)

    bytes_accessed = (Mp * Kp * 2 + Kp * Np * 2 + Np * 4 + Mp * Np * 4
                      + (Mp * Np * 4 if residual is not None else 0))

    out = pl.pallas_call(
        functools.partial(_fused_matmul_kernel, relu, residual is not None),
        out_shape=jax.ShapeDtypeStruct((Mp, Np), jnp.float32),
        grid_spec=pltpu.PrefetchScalarGridSpec(
            num_scalar_prefetch=0,
            grid=(Mp // tm, Np // tn, Kp // tk),
            in_specs=in_specs,
            out_specs=pl.BlockSpec((tm, tn), lambda i, j, k: (i, j)),
            scratch_shapes=[pltpu.VMEM((tm, tn), jnp.float32)]),
        compiler_params=pltpu.CompilerParams(
            dimension_semantics=("parallel", "parallel", "arbitrary"),
            vmem_limit_bytes=32 * 1024 * 1024),
        cost_estimate=pl.CostEstimate(
            flops=2 * Mp * Np * Kp, transcendentals=0,
            bytes_accessed=bytes_accessed),
    )(*args)
    return out[:M, :N]


def _nway_max(slabs):
    """Elementwise max over a list of equally-shaped slabs, lane-dense layout."""
    n = len(slabs)
    total = slabs[0].size
    rows = _round_up(total, 128) // 128
    tr, Rp = _choose_tile(rows, 8, 512)
    pad = Rp * 128 - total
    mats = [jnp.pad(s.reshape(-1).astype(jnp.float32), (0, pad)).reshape(Rp, 128)
            for s in slabs]
    out = pl.pallas_call(
        functools.partial(_nway_max_kernel, n),
        out_shape=jax.ShapeDtypeStruct((Rp, 128), jnp.float32),
        grid=(Rp // tr,),
        in_specs=[pl.BlockSpec((tr, 128), lambda i: (i, 0))] * n,
        out_specs=pl.BlockSpec((tr, 128), lambda i: (i, 0)),
        compiler_params=pltpu.CompilerParams(
            dimension_semantics=("parallel",)),
    )(*mats)
    return out.reshape(-1)[:total]


# ----------------------------------------------------------------------------
# Conv / pooling glue (NHWC internally)
# ----------------------------------------------------------------------------
def _shifted_windows_nhwc(x, kh, kw, stride, pad, pad_value=0.0):
    B, H, W, C = x.shape
    OH = (H + 2 * pad - kh) // stride + 1
    OW = (W + 2 * pad - kw) // stride + 1
    xp = jnp.pad(x, ((0, 0), (pad, pad), (pad, pad), (0, 0)),
                 constant_values=pad_value)
    cols = []
    for i in range(kh):
        for j in range(kw):
            cols.append(xp[:, i:i + stride * (OH - 1) + 1:stride,
                           j:j + stride * (OW - 1) + 1:stride, :])
    return cols, OH, OW


def fused_conv(x, layer, *, kh, kw, stride, pad, relu, residual=None):
    """Conv2d (+folded BN)(+ReLU)(+residual add) as ONE Pallas matmul call.

    x: NHWC activation.  layer: dict(w=(kh*kw*IC, OC) bf16, b=(1, OC) f32).
    residual: NHWC tensor with the same shape as the conv output (fused add+ReLU).
    """
    # TODO(synk): the im2col patch matrix is still assembled by XLA in HBM; a
    # fully in-kernel window gather (per-tap accumulation via pl.ds) is not done.
    B, H, W, C = x.shape
    cols, OH, OW = _shifted_windows_nhwc(x, kh, kw, stride, pad)
    patches = jnp.stack(cols, axis=3).reshape(B * OH * OW, kh * kw * C)
    OC = layer["w"].shape[1]
    r2d = None if residual is None else residual.reshape(B * OH * OW, OC)
    y = _fused_matmul(patches, layer["w"], layer["b"], residual=r2d, relu=relu)
    return y.reshape(B, OH, OW, OC)


def maxpool2d(x, k=3, stride=2, pad=1):
    """PyTorch MaxPool2d(3,2,1): elementwise max of k*k shifted NHWC slabs."""
    cols, OH, OW = _shifted_windows_nhwc(x, k, k, stride, pad,
                                         pad_value=-jnp.inf)
    B, _, _, C = x.shape
    return _nway_max(cols).reshape(B, OH, OW, C)


# ----------------------------------------------------------------------------
# Parameters (scaled-down ResNet-18 analog), with BN folded into the convs
# ----------------------------------------------------------------------------
STEM_CH = 8
LAYER_CHANNELS = (8, 16, 32, 64)
POOL_DIM = LAYER_CHANNELS[-1]   # analog of pool_dim = 512
FEAT_DIM = 256                  # analog of feat_dim = 2048 -> proj conv is used


def _init_conv(key, oc, ic, kh, kw):
    fan_in = ic * kh * kw
    return jax.random.normal(key, (oc, ic, kh, kw), jnp.float32) * (2.0 / fan_in) ** 0.5


def _init_bn(key, c):
    k1, k2, k3 = jax.random.split(key, 3)
    return dict(
        gamma=1.0 + 0.1 * jax.random.normal(k1, (c,), jnp.float32),
        beta=0.1 * jax.random.normal(k2, (c,), jnp.float32),
        mean=0.1 * jax.random.normal(k3, (c,), jnp.float32),
        var=jnp.ones((c,), jnp.float32),
    )


def _fold_conv_bn(w, bn=None, bias=None, eps=1e-5):
    """Fold inference-mode BN into the conv.  Returns the matmul-ready weight
    (KH*KW*IC, OC) in bf16 (MXU operand) and an f32 (1, OC) bias (f32 epilogue)."""
    OC, IC, KH, KW = w.shape
    w_col = w.transpose(2, 3, 1, 0).reshape(KH * KW * IC, OC)
    b = jnp.zeros((OC,), jnp.float32) if bias is None else bias
    if bn is not None:
        scale = bn["gamma"] / jnp.sqrt(bn["var"] + eps)
        shift = bn["beta"] - bn["mean"] * scale
        w_col = w_col * scale[None, :]
        b = b * scale + shift
    return dict(w=w_col.astype(jnp.bfloat16),
                b=b.reshape(1, OC).astype(jnp.float32))


def _init_shallow(key):
    k1, k2 = jax.random.split(key)
    return dict(stem=_fold_conv_bn(_init_conv(k1, STEM_CH, 3, 7, 7),
                                   _init_bn(k2, STEM_CH)))


def _init_block(key, cin, cout, stride):
    ks = jax.random.split(key, 6)
    p = dict(
        conv1=_fold_conv_bn(_init_conv(ks[0], cout, cin, 3, 3), _init_bn(ks[1], cout)),
        conv2=_fold_conv_bn(_init_conv(ks[2], cout, cout, 3, 3), _init_bn(ks[3], cout)),
    )
    if stride != 1 or cin != cout:
        p["ds"] = _fold_conv_bn(_init_conv(ks[4], cout, cin, 1, 1), _init_bn(ks[5], cout))
    return p


def _init_base(key):
    layers = []
    cin = STEM_CH
    lkeys = jax.random.split(key, len(LAYER_CHANNELS))
    for li, cout in enumerate(LAYER_CHANNELS):
        stride = 1 if li == 0 else 2
        bkeys = jax.random.split(lkeys[li], 2)
        layers.append([_init_block(bkeys[0], cin, cout, stride),
                       _init_block(bkeys[1], cout, cout, 1)])
        cin = cout
    return layers


def init_encoder(key):
    kv, kt, kg, kb, kpw, kpb = jax.random.split(key, 6)
    return dict(
        visible=_init_shallow(kv),
        thermal=_init_shallow(kt),
        gray=_init_shallow(kg),   # present for parity; unused when x3 is None
        base=_init_base(kb),
        proj=_fold_conv_bn(_init_conv(kpw, FEAT_DIM, POOL_DIM, 1, 1),
                           bias=0.01 * jax.random.normal(kpb, (FEAT_DIM,), jnp.float32)),
    )


# ----------------------------------------------------------------------------
# Forward pass (mirrors Encoder.forward up to its early `return x`)
# ----------------------------------------------------------------------------
def shallow_module(p, x):
    x = fused_conv(x, p["stem"], kh=7, kw=7, stride=2, pad=3, relu=True)
    return maxpool2d(x, 3, 2, 1)


def basic_block(p, x, stride):
    if "ds" in p:
        identity = fused_conv(x, p["ds"], kh=1, kw=1, stride=stride, pad=0,
                              relu=False)
    else:
        identity = x
    out = fused_conv(x, p["conv1"], kh=3, kw=3, stride=stride, pad=1, relu=True)
    # conv2 + BN2 + residual add + ReLU fused into a single kernel epilogue.
    return fused_conv(out, p["conv2"], kh=3, kw=3, stride=1, pad=1, relu=True,
                      residual=identity)


def base_resnet(layers, x):
    for li, blocks in enumerate(layers):
        for bi, bp in enumerate(blocks):
            stride = 2 if (li > 0 and bi == 0) else 1
            x = basic_block(bp, x, stride)
    return x


@functools.partial(jax.jit, static_argnames=("modal",))
def encoder_forward(params, x1, x2, x3=None, modal=0):
    """NCHW in / NCHW out; NHWC internally (layout converted once per boundary)."""
    def to_nhwc(t):
        return t.transpose(0, 2, 3, 1)

    if modal == 0:
        a = shallow_module(params["visible"], to_nhwc(x1))
        b = shallow_module(params["thermal"], to_nhwc(x2))
        x = jnp.concatenate([a, b], axis=0)
        if x3 is not None:
            c = shallow_module(params["gray"], to_nhwc(x3))
            x = jnp.concatenate([x, c], axis=0)
    elif modal == 1:
        x = shallow_module(params["visible"], to_nhwc(x1))
    elif modal == 2:
        x = shallow_module(params["thermal"], to_nhwc(x2))
    else:
        x = shallow_module(params["gray"], to_nhwc(x3))
    x = base_resnet(params["base"], x)
    if FEAT_DIM != POOL_DIM:
        x = fused_conv(x, params["proj"], kh=1, kw=1, stride=1, pad=0, relu=False)
    # Everything after `return x` in the PyTorch forward (gm_pool / avgpool /
    # bottleneck / classifier / l2norm) is unreachable dead code.
    return x.transpose(0, 3, 1, 2)


if __name__ == "__main__":
    key = jax.random.PRNGKey(0)
    kp, k1, k2 = jax.random.split(key, 3)
    params = init_encoder(kp)
    x1 = jax.random.normal(k1, (2, 3, 32, 32), jnp.float32)  # visible batch
    x2 = jax.random.normal(k2, (2, 3, 32, 32), jnp.float32)  # thermal batch
    out = encoder_forward(params, x1, x2, modal=0)
    out = jax.block_until_ready(out)
    assert out.shape == (4, FEAT_DIM, 1, 1), out.shape
    assert bool(jnp.all(jnp.isfinite(out)))
    print("KERNEL_OK")
</pallas_src>

<mosaic_0001>
module attributes {stable_mosaic.version = 11 : i64} {
  func.func @_fused_matmul_kernel(%arg0: i32, %arg1: i32, %arg2: i32, %arg3: memref<256x256xbf16, #tpu.memory_space<vmem>>, %arg4: memref<256x128xbf16, #tpu.memory_space<vmem>>, %arg5: memref<1x128xf32, #tpu.memory_space<vmem>>, %arg6: memref<256x128xf32, #tpu.memory_space<vmem>>, %arg7: memref<256x128xf32, #tpu.memory_space<vmem>>) attributes {dimension_semantics = [#tpu.dimension_semantics<parallel>, #tpu.dimension_semantics<parallel>, #tpu.dimension_semantics<arbitrary>], iteration_bounds = array<i64: 2, 1, 1>, scalar_prefetch = 0 : i64, scratch_operands = 1 : i64, tpu.core_type = #tpu.core_type<tc>, window_params = [{transform_indices = @transform_0, window_bounds = array<i64: 256, 256>}, {transform_indices = @transform_1, window_bounds = array<i64: 256, 128>}, {transform_indices = @transform_2, window_bounds = array<i64: 1, 128>}, {transform_indices = @transform_3, window_bounds = array<i64: 256, 128>}]} {
    %c0_i32 = arith.constant 0 : i32
    %0 = arith.cmpi eq, %arg2, %c0_i32 : i32
    %1 = arith.extui %0 : i1 to i32
    %c0_i32_0 = arith.constant 0 : i32
    %2 = arith.cmpi ne, %1, %c0_i32_0 : i32
    scf.if %2 {
      %cst_10 = arith.constant 0.000000e+00 : f32
      %12 = vector.broadcast %cst_10 : f32 to vector<256x128xf32>
      %c0_11 = arith.constant 0 : index
      %c0_12 = arith.constant 0 : index
      %13 = vector.load %arg7[%c0_11, %c0_12] : memref<256x128xf32, #tpu.memory_space<vmem>>, vector<256x128xf32>
      tpu.vector_store %arg7[%c0_11, %c0_12], %12 {strides = array<i32>} : memref<256x128xf32, #tpu.memory_space<vmem>>, vector<256x128xf32>,
    } else {
    }
    %c0 = arith.constant 0 : index
    %c0_1 = arith.constant 0 : index
    %3 = vector.load %arg7[%c0, %c0_1] : memref<256x128xf32, #tpu.memory_space<vmem>>, vector<256x128xf32>
    %c0_2 = arith.constant 0 : index
    %c0_3 = arith.constant 0 : index
    %4 = vector.load %arg3[%c0_2, %c0_3] : memref<256x256xbf16, #tpu.memory_space<vmem>>, vector<256x256xbf16>
    %c0_4 = arith.constant 0 : index
    %c0_5 = arith.constant 0 : index
    %5 = vector.load %arg4[%c0_4, %c0_5] : memref<256x128xbf16, #tpu.memory_space<vmem>>, vector<256x128xbf16>
    %cst = arith.constant dense<0.000000e+00> : vector<256x128xf32>
    %6 = tpu.matmul %4, %5, %cst {dimension_numbers = #tpu.dot_dimension_numbers<[1], [0], [0], [1], [0, 0, 1, 1], [], []>} : vector<256x256xbf16>, vector<256x128xbf16>, vector<256x128xf32> -> vector<256x128xf32>
    %7 = arith.addf %3, %6 : vector<256x128xf32>
    %c0_6 = arith.constant 0 : index
    %c0_7 = arith.constant 0 : index
    %8 = vector.load %arg7[%c0_6, %c0_7] : memref<256x128xf32, #tpu.memory_space<vmem>>, vector<256x128xf32>
    tpu.vector_store %arg7[%c0_6, %c0_7], %7 {strides = array<i32>} : memref<256x128xf32, #tpu.memory_space<vmem>>, vector<256x128xf32>,
    %c0_i32_8 = arith.constant 0 : i32
    %9 = arith.cmpi eq, %arg2, %c0_i32_8 : i32
    %10 = arith.extui %9 : i1 to i32
    %c0_i32_9 = arith.constant 0 : i32
    %11 = arith.cmpi ne, %10, %c0_i32_9 : i32
    scf.if %11 {
      %c0_10 = arith.constant 0 : index
      %c0_11 = arith.constant 0 : index
      %12 = vector.load %arg7[%c0_10, %c0_11] : memref<256x128xf32, #tpu.memory_space<vmem>>, vector<256x128xf32>
      %c0_12 = arith.constant 0 : index
      %c0_13 = arith.constant 0 : index
      %13 = vector.load %arg5[%c0_12, %c0_13] : memref<1x128xf32, #tpu.memory_space<vmem>>, vector<1x128xf32>
      %14 = vector.broadcast %13 : vector<1x128xf32> to vector<256x128xf32>
      %15 = arith.addf %12, %14 : vector<256x128xf32>
      %cst_14 = arith.constant 0.000000e+00 : f32
      %16 = vector.broadcast %cst_14 : f32 to vector<256x128xf32>
      %17 = arith.maximumf %15, %16 : vector<256x128xf32>
      %c0_15 = arith.constant 0 : index
      %c0_16 = arith.constant 0 : index
      %18 = vector.load %arg6[%c0_15, %c0_16] : memref<256x128xf32, #tpu.memory_space<vmem>>, vector<256x128xf32>
      tpu.vector_store %arg6[%c0_15, %c0_16], %17 {strides = array<i32>} : memref<256x128xf32, #tpu.memory_space<vmem>>, vector<256x128xf32>,
    } else {
    }
    return
  }
  func.func @transform_0(%arg0: i32, %arg1: i32, %arg2: i32) -> (i32, i32) {
    %c0_i32 = arith.constant 0 : i32
    return %arg0, %arg2 : i32, i32
  }
  func.func @transform_1(%arg0: i32, %arg1: i32, %arg2: i32) -> (i32, i32) {
    %c0_i32 = arith.constant 0 : i32
    return %arg2, %arg1 : i32, i32
  }
  func.func @transform_2(%arg0: i32, %arg1: i32, %arg2: i32) -> (i32, i32) {
    %c0_i32 = arith.constant 0 : i32
    %c0_i32_0 = arith.constant 0 : i32
    return %c0_i32, %arg1 : i32, i32
  }
  func.func @transform_3(%arg0: i32, %arg1: i32, %arg2: i32) -> (i32, i32) {
    %c0_i32 = arith.constant 0 : i32
    return %arg0, %arg1 : i32, i32
  }
}

module attributes {stable_mosaic.version = 11 : i64} {
  func.func @_nway_max_kernel(%arg0: i32, %arg1: memref<8x128xf32, #tpu.memory_space<vmem>>, %arg2: memref<8x128xf32, #tpu.memory_space<vmem>>, %arg3: memref<8x128xf32, #tpu.memory_space<vmem>>, %arg4: memref<8x128xf32, #tpu.memory_space<vmem>>, %arg5: memref<8x128xf32, #tpu.memory_space<vmem>>, %arg6: memref<8x128xf32, #tpu.memory_space<vmem>>, %arg7: memref<8x128xf32, #tpu.memory_space<vmem>>, %arg8: memref<8x128xf32, #tpu.memory_space<vmem>>, %arg9: memref<8x128xf32, #tpu.memory_space<vmem>>, %arg10: memref<8x128xf32, #tpu.memory_space<vmem>>) attributes {dimension_semantics = [#tpu.dimension_semantics<parallel>], iteration_bounds = array<i64: 1>, scalar_prefetch = 0 : i64, scratch_operands = 0 : i64, tpu.core_type = #tpu.core_type<tc>, window_params = [{transform_indices = @transform_0, window_bounds = array<i64: 8, 128>}, {transform_indices = @transform_1, window_bounds = array<i64: 8, 128>}, {transform_indices = @transform_2, window_bounds = array<i64: 8, 128>}, {transform_indices = @transform_3, window_bounds = array<i64: 8, 128>}, {transform_indices = @transform_4, window_bounds = array<i64: 8, 128>}, {transform_indices = @transform_5, window_bounds = array<i64: 8, 128>}, {transform_indices = @transform_6, window_bounds = array<i64: 8, 128>}, {transform_indices = @transform_7, window_bounds = array<i64: 8, 128>}, {transform_indices = @transform_8, window_bounds = array<i64: 8, 128>}, {transform_indices = @transform_9, window_bounds = array<i64: 8, 128>}]} {
    %c0 = arith.constant 0 : index
    %c0_0 = arith.constant 0 : index
    %0 = vector.load %arg1[%c0, %c0_0] : memref<8x128xf32, #tpu.memory_space<vmem>>, vector<8x128xf32>
    %c0_1 = arith.constant 0 : index
    %c0_2 = arith.constant 0 : index
    %1 = vector.load %arg2[%c0_1, %c0_2] : memref<8x128xf32, #tpu.memory_space<vmem>>, vector<8x128xf32>
    %2 = arith.maximumf %0, %1 : vector<8x128xf32>
    %c0_3 = arith.constant 0 : index
    %c0_4 = arith.constant 0 : index
    %3 = vector.load %arg3[%c0_3, %c0_4] : memref<8x128xf32, #tpu.memory_space<vmem>>, vector<8x128xf32>
    %4 = arith.maximumf %2, %3 : vector<8x128xf32>
    %c0_5 = arith.constant 0 : index
    %c0_6 = arith.constant 0 : index
    %5 = vector.load %arg4[%c0_5, %c0_6] : memref<8x128xf32, #tpu.memory_space<vmem>>, vector<8x128xf32>
    %6 = arith.maximumf %4, %5 : vector<8x128xf32>
    %c0_7 = arith.constant 0 : index
    %c0_8 = arith.constant 0 : index
    %7 = vector.load %arg5[%c0_7, %c0_8] : memref<8x128xf32, #tpu.memory_space<vmem>>, vector<8x128xf32>
    %8 = arith.maximumf %6, %7 : vector<8x128xf32>
    %c0_9 = arith.constant 0 : index
    %c0_10 = arith.constant 0 : index
    %9 = vector.load %arg6[%c0_9, %c0_10] : memref<8x128xf32, #tpu.memory_space<vmem>>, vector<8x128xf32>
    %10 = arith.maximumf %8, %9 : vector<8x128xf32>
    %c0_11 = arith.constant 0 : index
    %c0_12 = arith.constant 0 : index
    %11 = vector.load %arg7[%c0_11, %c0_12] : memref<8x128xf32, #tpu.memory_space<vmem>>, vector<8x128xf32>
    %12 = arith.maximumf %10, %11 : vector<8x128xf32>
    %c0_13 = arith.constant 0 : index
    %c0_14 = arith.constant 0 : index
    %13 = vector.load %arg8[%c0_13, %c0_14] : memref<8x128xf32, #tpu.memory_space<vmem>>, vector<8x128xf32>
    %14 = arith.maximumf %12, %13 : vector<8x128xf32>
    %c0_15 = arith.constant 0 : index
    %c0_16 = arith.constant 0 : index
    %15 = vector.load %arg9[%c0_15, %c0_16] : memref<8x128xf32, #tpu.memory_space<vmem>>, vector<8x128xf32>
    %16 = arith.maximumf %14, %15 : vector<8x128xf32>
    %c0_17 = arith.constant 0 : index
    %c0_18 = arith.constant 0 : index
    %17 = vector.load %arg10[%c0_17, %c0_18] : memref<8x128xf32, #tpu.memory_space<vmem>>, vector<8x128xf32>
    tpu.vector_store %arg10[%c0_17, %c0_18], %16 {strides = array<i32>} : memref<8x128xf32, #tpu.memory_space<vmem>>, vector<8x128xf32>,
    return
  }
  func.func @transform_0(%arg0: i32) -> (i32, i32) {
    %c0_i32 = arith.constant 0 : i32
    %c0_i32_0 = arith.constant 0 : i32
    return %arg0, %c0_i32 : i32, i32
  }
  func.func @transform_1(%arg0: i32) -> (i32, i32) {
    %c0_i32 = arith.constant 0 : i32
    %c0_i32_0 = arith.constant 0 : i32
    return %arg0, %c0_i32 : i32, i32
  }
  func.func @transform_2(%arg0: i32) -> (i32, i32) {
    %c0_i32 = arith.constant 0 : i32
    %c0_i32_0 = arith.constant 0 : i32
    return %arg0, %c0_i32 : i32, i32
  }
  func.func @transform_3(%arg0: i32) -> (i32, i32) {
    %c0_i32 = arith.constant 0 : i32
    %c0_i32_0 = arith.constant 0 : i32
    return %arg0, %c0_i32 : i32, i32
  }
  func.func @transform_4(%arg0: i32) -> (i32, i32) {
    %c0_i32 = arith.constant 0 : i32
    %c0_i32_0 = arith.constant 0 : i32
    return %arg0, %c0_i32 : i32, i32
  }
  func.func @transform_5(%arg0: i32) -> (i32, i32) {
    %c0_i32 = arith.constant 0 : i32
    %c0_i32_0 = arith.constant 0 : i32
    return %arg0, %c0_i32 : i32, i32
  }
  func.func @transform_6(%arg0: i32) -> (i32, i32) {
    %c0_i32 = arith.constant 0 : i32
    %c0_i32_0 = arith.constant 0 : i32
    return %arg0, %c0_i32 : i32, i32
  }
  func.func @transform_7(%arg0: i32) -> (i32, i32) {
    %c0_i32 = arith.constant 0 : i32
    %c0_i32_0 = arith.constant 0 : i32
    return %arg0, %c0_i32 : i32, i32
  }
  func.func @transform_8(%arg0: i32) -> (i32, i32) {
    %c0_i32 = arith.constant 0 : i32
    %c0_i32_0 = arith.constant 0 : i32
    return %arg0, %c0_i32 : i32, i32
  }
  func.func @transform_9(%arg0: i32) -> (i32, i32) {
    %c0_i32 = arith.constant 0 : i32
    %c0_i32_0 = arith.constant 0 : i32
    return %arg0, %c0_i32 : i32, i32
  }
}

module attributes {stable_mosaic.version = 11 : i64} {
  func.func @_fused_matmul_kernel(%arg0: i32, %arg1: i32, %arg2: i32, %arg3: memref<256x128xbf16, #tpu.memory_space<vmem>>, %arg4: memref<128x128xbf16, #tpu.memory_space<vmem>>, %arg5: memref<1x128xf32, #tpu.memory_space<vmem>>, %arg6: memref<256x128xf32, #tpu.memory_space<vmem>>, %arg7: memref<256x128xf32, #tpu.memory_space<vmem>>) attributes {dimension_semantics = [#tpu.dimension_semantics<parallel>, #tpu.dimension_semantics<parallel>, #tpu.dimension_semantics<arbitrary>], iteration_bounds = array<i64: 1, 1, 1>, scalar_prefetch = 0 : i64, scratch_operands = 1 : i64, tpu.core_type = #tpu.core_type<tc>, window_params = [{transform_indices = @transform_0, window_bounds = array<i64: 256, 128>}, {transform_indices = @transform_1, window_bounds = array<i64: 128, 128>}, {transform_indices = @transform_2, window_bounds = array<i64: 1, 128>}, {transform_indices = @transform_3, window_bounds = array<i64: 256, 128>}]} {
    %c0_i32 = arith.constant 0 : i32
    %0 = arith.cmpi eq, %arg2, %c0_i32 : i32
    %1 = arith.extui %0 : i1 to i32
    %c0_i32_0 = arith.constant 0 : i32
    %2 = arith.cmpi ne, %1, %c0_i32_0 : i32
    scf.if %2 {
      %cst_10 = arith.constant 0.000000e+00 : f32
      %12 = vector.broadcast %cst_10 : f32 to vector<256x128xf32>
      %c0_11 = arith.constant 0 : index
      %c0_12 = arith.constant 0 : index
      %13 = vector.load %arg7[%c0_11, %c0_12] : memref<256x128xf32, #tpu.memory_space<vmem>>, vector<256x128xf32>
      tpu.vector_store %arg7[%c0_11, %c0_12], %12 {strides = array<i32>} : memref<256x128xf32, #tpu.memory_space<vmem>>, vector<256x128xf32>,
    } else {
    }
    %c0 = arith.constant 0 : index
    %c0_1 = arith.constant 0 : index
    %3 = vector.load %arg7[%c0, %c0_1] : memref<256x128xf32, #tpu.memory_space<vmem>>, vector<256x128xf32>
    %c0_2 = arith.constant 0 : index
    %c0_3 = arith.constant 0 : index
    %4 = vector.load %arg3[%c0_2, %c0_3] : memref<256x128xbf16, #tpu.memory_space<vmem>>, vector<256x128xbf16>
    %c0_4 = arith.constant 0 : index
    %c0_5 = arith.constant 0 : index
    %5 = vector.load %arg4[%c0_4, %c0_5] : memref<128x128xbf16, #tpu.memory_space<vmem>>, vector<128x128xbf16>
    %cst = arith.constant dense<0.000000e+00> : vector<256x128xf32>
    %6 = tpu.matmul %4, %5, %cst {dimension_numbers = #tpu.dot_dimension_numbers<[1], [0], [0], [1], [0, 0, 1, 1], [], []>} : vector<256x128xbf16>, vector<128x128xbf16>, vector<256x128xf32> -> vector<256x128xf32>
    %7 = arith.addf %3, %6 : vector<256x128xf32>
    %c0_6 = arith.constant 0 : index
    %c0_7 = arith.constant 0 : index
    %8 = vector.load %arg7[%c0_6, %c0_7] : memref<256x128xf32, #tpu.memory_space<vmem>>, vector<256x128xf32>
    tpu.vector_store %arg7[%c0_6, %c0_7], %7 {strides = array<i32>} : memref<256x128xf32, #tpu.memory_space<vmem>>, vector<256x128xf32>,
    %c0_i32_8 = arith.constant 0 : i32
    %9 = arith.cmpi eq, %arg2, %c0_i32_8 : i32
    %10 = arith.extui %9 : i1 to i32
    %c0_i32_9 = arith.constant 0 : i32
    %11 = arith.cmpi ne, %10, %c0_i32_9 : i32
    scf.if %11 {
      %c0_10 = arith.constant 0 : index
      %c0_11 = arith.constant 0 : index
      %12 = vector.load %arg7[%c0_10, %c0_11] : memref<256x128xf32, #tpu.memory_space<vmem>>, vector<256x128xf32>
      %c0_12 = arith.constant 0 : index
      %c0_13 = arith.constant 0 : index
      %13 = vector.load %arg5[%c0_12, %c0_13] : memref<1x128xf32, #tpu.memory_space<vmem>>, vector<1x128xf32>
      %14 = vector.broadcast %13 : vector<1x128xf32> to vector<256x128xf32>
      %15 = arith.addf %12, %14 : vector<256x128xf32>
      %cst_14 = arith.constant 0.000000e+00 : f32
      %16 = vector.broadcast %cst_14 : f32 to vector<256x128xf32>
      %17 = arith.maximumf %15, %16 : vector<256x128xf32>
      %c0_15 = arith.constant 0 : index
      %c0_16 = arith.constant 0 : index
      %18 = vector.load %arg6[%c0_15, %c0_16] : memref<256x128xf32, #tpu.memory_space<vmem>>, vector<256x128xf32>
      tpu.vector_store %arg6[%c0_15, %c0_16], %17 {strides = array<i32>} : memref<256x128xf32, #tpu.memory_space<vmem>>, vector<256x128xf32>,
    } else {
    }
    return
  }
  func.func @transform_0(%arg0: i32, %arg1: i32, %arg2: i32) -> (i32, i32) {
    %c0_i32 = arith.constant 0 : i32
    return %arg0, %arg2 : i32, i32
  }
  func.func @transform_1(%arg0: i32, %arg1: i32, %arg2: i32) -> (i32, i32) {
    %c0_i32 = arith.constant 0 : i32
    return %arg2, %arg1 : i32, i32
  }
  func.func @transform_2(%arg0: i32, %arg1: i32, %arg2: i32) -> (i32, i32) {
    %c0_i32 = arith.constant 0 : i32
    %c0_i32_0 = arith.constant 0 : i32
    return %c0_i32, %arg1 : i32, i32
  }
  func.func @transform_3(%arg0: i32, %arg1: i32, %arg2: i32) -> (i32, i32) {
    %c0_i32 = arith.constant 0 : i32
    return %arg0, %arg1 : i32, i32
  }
}

module attributes {stable_mosaic.version = 11 : i64} {
  func.func @_fused_matmul_kernel(%arg0: i32, %arg1: i32, %arg2: i32, %arg3: memref<256x128xbf16, #tpu.memory_space<vmem>>, %arg4: memref<128x128xbf16, #tpu.memory_space<vmem>>, %arg5: memref<1x128xf32, #tpu.memory_space<vmem>>, %arg6: memref<256x128xf32, #tpu.memory_space<vmem>>, %arg7: memref<256x128xf32, #tpu.memory_space<vmem>>, %arg8: memref<256x128xf32, #tpu.memory_space<vmem>>) attributes {dimension_semantics = [#tpu.dimension_semantics<parallel>, #tpu.dimension_semantics<parallel>, #tpu.dimension_semantics<arbitrary>], iteration_bounds = array<i64: 1, 1, 1>, scalar_prefetch = 0 : i64, scratch_operands = 1 : i64, tpu.core_type = #tpu.core_type<tc>, window_params = [{transform_indices = @transform_0, window_bounds = array<i64: 256, 128>}, {transform_indices = @transform_1, window_bounds = array<i64: 128, 128>}, {transform_indices = @transform_2, window_bounds = array<i64: 1, 128>}, {transform_indices = @transform_3, window_bounds = array<i64: 256, 128>}, {transform_indices = @transform_4, window_bounds = array<i64: 256, 128>}]} {
    %c0_i32 = arith.constant 0 : i32
    %0 = arith.cmpi eq, %arg2, %c0_i32 : i32
    %1 = arith.extui %0 : i1 to i32
    %c0_i32_0 = arith.constant 0 : i32
    %2 = arith.cmpi ne, %1, %c0_i32_0 : i32
    scf.if %2 {
      %cst_10 = arith.constant 0.000000e+00 : f32
      %12 = vector.broadcast %cst_10 : f32 to vector<256x128xf32>
      %c0_11 = arith.constant 0 : index
      %c0_12 = arith.constant 0 : index
      %13 = vector.load %arg8[%c0_11, %c0_12] : memref<256x128xf32, #tpu.memory_space<vmem>>, vector<256x128xf32>
      tpu.vector_store %arg8[%c0_11, %c0_12], %12 {strides = array<i32>} : memref<256x128xf32, #tpu.memory_space<vmem>>, vector<256x128xf32>,
    } else {
    }
    %c0 = arith.constant 0 : index
    %c0_1 = arith.constant 0 : index
    %3 = vector.load %arg8[%c0, %c0_1] : memref<256x128xf32, #tpu.memory_space<vmem>>, vector<256x128xf32>
    %c0_2 = arith.constant 0 : index
    %c0_3 = arith.constant 0 : index
    %4 = vector.load %arg3[%c0_2, %c0_3] : memref<256x128xbf16, #tpu.memory_space<vmem>>, vector<256x128xbf16>
    %c0_4 = arith.constant 0 : index
    %c0_5 = arith.constant 0 : index
    %5 = vector.load %arg4[%c0_4, %c0_5] : memref<128x128xbf16, #tpu.memory_space<vmem>>, vector<128x128xbf16>
    %cst = arith.constant dense<0.000000e+00> : vector<256x128xf32>
    %6 = tpu.matmul %4, %5, %cst {dimension_numbers = #tpu.dot_dimension_numbers<[1], [0], [0], [1], [0, 0, 1, 1], [], []>} : vector<256x128xbf16>, vector<128x128xbf16>, vector<256x128xf32> -> vector<256x128xf32>
    %7 = arith.addf %3, %6 : vector<256x128xf32>
    %c0_6 = arith.constant 0 : index
    %c0_7 = arith.constant 0 : index
    %8 = vector.load %arg8[%c0_6, %c0_7] : memref<256x128xf32, #tpu.memory_space<vmem>>, vector<256x128xf32>
    tpu.vector_store %arg8[%c0_6, %c0_7], %7 {strides = array<i32>} : memref<256x128xf32, #tpu.memory_space<vmem>>, vector<256x128xf32>,
    %c0_i32_8 = arith.constant 0 : i32
    %9 = arith.cmpi eq, %arg2, %c0_i32_8 : i32
    %10 = arith.extui %9 : i1 to i32
    %c0_i32_9 = arith.constant 0 : i32
    %11 = arith.cmpi ne, %10, %c0_i32_9 : i32
    scf.if %11 {
      %c0_10 = arith.constant 0 : index
      %c0_11 = arith.constant 0 : index
      %12 = vector.load %arg8[%c0_10, %c0_11] : memref<256x128xf32, #tpu.memory_space<vmem>>, vector<256x128xf32>
      %c0_12 = arith.constant 0 : index
      %c0_13 = arith.constant 0 : index
      %13 = vector.load %arg5[%c0_12, %c0_13] : memref<1x128xf32, #tpu.memory_space<vmem>>, vector<1x128xf32>
      %14 = vector.broadcast %13 : vector<1x128xf32> to vector<256x128xf32>
      %15 = arith.addf %12, %14 : vector<256x128xf32>
      %c0_14 = arith.constant 0 : index
      %c0_15 = arith.constant 0 : index
      %16 = vector.load %arg6[%c0_14, %c0_15] : memref<256x128xf32, #tpu.memory_space<vmem>>, vector<256x128xf32>
      %17 = arith.addf %15, %16 : vector<256x128xf32>
      %cst_16 = arith.constant 0.000000e+00 : f32
      %18 = vector.broadcast %cst_16 : f32 to vector<256x128xf32>
      %19 = arith.maximumf %17, %18 : vector<256x128xf32>
      %c0_17 = arith.constant 0 : index
      %c0_18 = arith.constant 0 : index
      %20 = vector.load %arg7[%c0_17, %c0_18] : memref<256x128xf32, #tpu.memory_space<vmem>>, vector<256x128xf32>
      tpu.vector_store %arg7[%c0_17, %c0_18], %19 {strides = array<i32>} : memref<256x128xf32, #tpu.memory_space<vmem>>, vector<256x128xf32>,
    } else {
    }
    return
  }
  func.func @transform_0(%arg0: i32, %arg1: i32, %arg2: i32) -> (i32, i32) {
    %c0_i32 = arith.constant 0 : i32
    return %arg0, %arg2 : i32, i32
  }
  func.func @transform_1(%arg0: i32, %arg1: i32, %arg2: i32) -> (i32, i32) {
    %c0_i32 = arith.constant 0 : i32
    return %arg2, %arg1 : i32, i32
  }
  func.func @transform_2(%arg0: i32, %arg1: i32, %arg2: i32) -> (i32, i32) {
    %c0_i32 = arith.constant 0 : i32
    %c0_i32_0 = arith.constant 0 : i32
    return %c0_i32, %arg1 : i32, i32
  }
  func.func @transform_3(%arg0: i32, %arg1: i32, %arg2: i32) -> (i32, i32) {
    %c0_i32 = arith.constant 0 : i32
    return %arg0, %arg1 : i32, i32
  }
  func.func @transform_4(%arg0: i32, %arg1: i32, %arg2: i32) -> (i32, i32) {
    %c0_i32 = arith.constant 0 : i32
    return %arg0, %arg1 : i32, i32
  }
}

module attributes {stable_mosaic.version = 11 : i64} {
  func.func @_fused_matmul_kernel(%arg0: i32, %arg1: i32, %arg2: i32, %arg3: memref<64x128xbf16, #tpu.memory_space<vmem>>, %arg4: memref<128x128xbf16, #tpu.memory_space<vmem>>, %arg5: memref<1x128xf32, #tpu.memory_space<vmem>>, %arg6: memref<64x128xf32, #tpu.memory_space<vmem>>, %arg7: memref<64x128xf32, #tpu.memory_space<vmem>>) attributes {dimension_semantics = [#tpu.dimension_semantics<parallel>, #tpu.dimension_semantics<parallel>, #tpu.dimension_semantics<arbitrary>], iteration_bounds = array<i64: 1, 1, 1>, scalar_prefetch = 0 : i64, scratch_operands = 1 : i64, tpu.core_type = #tpu.core_type<tc>, window_params = [{transform_indices = @transform_0, window_bounds = array<i64: 64, 128>}, {transform_indices = @transform_1, window_bounds = array<i64: 128, 128>}, {transform_indices = @transform_2, window_bounds = array<i64: 1, 128>}, {transform_indices = @transform_3, window_bounds = array<i64: 64, 128>}]} {
    %c0_i32 = arith.constant 0 : i32
    %0 = arith.cmpi eq, %arg2, %c0_i32 : i32
    %1 = arith.extui %0 : i1 to i32
    %c0_i32_0 = arith.constant 0 : i32
    %2 = arith.cmpi ne, %1, %c0_i32_0 : i32
    scf.if %2 {
      %cst_10 = arith.constant 0.000000e+00 : f32
      %12 = vector.broadcast %cst_10 : f32 to vector<64x128xf32>
      %c0_11 = arith.constant 0 : index
      %c0_12 = arith.constant 0 : index
      %13 = vector.load %arg7[%c0_11, %c0_12] : memref<64x128xf32, #tpu.memory_space<vmem>>, vector<64x128xf32>
      tpu.vector_store %arg7[%c0_11, %c0_12], %12 {strides = array<i32>} : memref<64x128xf32, #tpu.memory_space<vmem>>, vector<64x128xf32>,
    } else {
    }
    %c0 = arith.constant 0 : index
    %c0_1 = arith.constant 0 : index
    %3 = vector.load %arg7[%c0, %c0_1] : memref<64x128xf32, #tpu.memory_space<vmem>>, vector<64x128xf32>
    %c0_2 = arith.constant 0 : index
    %c0_3 = arith.constant 0 : index
    %4 = vector.load %arg3[%c0_2, %c0_3] : memref<64x128xbf16, #tpu.memory_space<vmem>>, vector<64x128xbf16>
    %c0_4 = arith.constant 0 : index
    %c0_5 = arith.constant 0 : index
    %5 = vector.load %arg4[%c0_4, %c0_5] : memref<128x128xbf16, #tpu.memory_space<vmem>>, vector<128x128xbf16>
    %cst = arith.constant dense<0.000000e+00> : vector<64x128xf32>
    %6 = tpu.matmul %4, %5, %cst {dimension_numbers = #tpu.dot_dimension_numbers<[1], [0], [0], [1], [0, 0, 1, 1], [], []>} : vector<64x128xbf16>, vector<128x128xbf16>, vector<64x128xf32> -> vector<64x128xf32>
    %7 = arith.addf %3, %6 : vector<64x128xf32>
    %c0_6 = arith.constant 0 : index
    %c0_7 = arith.constant 0 : index
    %8 = vector.load %arg7[%c0_6, %c0_7] : memref<64x128xf32, #tpu.memory_space<vmem>>, vector<64x128xf32>
    tpu.vector_store %arg7[%c0_6, %c0_7], %7 {strides = array<i32>} : memref<64x128xf32, #tpu.memory_space<vmem>>, vector<64x128xf32>,
    %c0_i32_8 = arith.constant 0 : i32
    %9 = arith.cmpi eq, %arg2, %c0_i32_8 : i32
    %10 = arith.extui %9 : i1 to i32
    %c0_i32_9 = arith.constant 0 : i32
    %11 = arith.cmpi ne, %10, %c0_i32_9 : i32
    scf.if %11 {
      %c0_10 = arith.constant 0 : index
      %c0_11 = arith.constant 0 : index
      %12 = vector.load %arg7[%c0_10, %c0_11] : memref<64x128xf32, #tpu.memory_space<vmem>>, vector<64x128xf32>
      %c0_12 = arith.constant 0 : index
      %c0_13 = arith.constant 0 : index
      %13 = vector.load %arg5[%c0_12, %c0_13] : memref<1x128xf32, #tpu.memory_space<vmem>>, vector<1x128xf32>
      %14 = vector.broadcast %13 : vector<1x128xf32> to vector<64x128xf32>
      %15 = arith.addf %12, %14 : vector<64x128xf32>
      %cst_14 = arith.constant 0.000000e+00 : f32
      %16 = vector.broadcast %cst_14 : f32 to vector<64x128xf32>
      %17 = arith.maximumf %15, %16 : vector<64x128xf32>
      %c0_15 = arith.constant 0 : index
      %c0_16 = arith.constant 0 : index
      %18 = vector.load %arg6[%c0_15, %c0_16] : memref<64x128xf32, #tpu.memory_space<vmem>>, vector<64x128xf32>
      tpu.vector_store %arg6[%c0_15, %c0_16], %17 {strides = array<i32>} : memref<64x128xf32, #tpu.memory_space<vmem>>, vector<64x128xf32>,
    } else {
    }
    return
  }
  func.func @transform_0(%arg0: i32, %arg1: i32, %arg2: i32) -> (i32, i32) {
    %c0_i32 = arith.constant 0 : i32
    return %arg0, %arg2 : i32, i32
  }
  func.func @transform_1(%arg0: i32, %arg1: i32, %arg2: i32) -> (i32, i32) {
    %c0_i32 = arith.constant 0 : i32
    return %arg2, %arg1 : i32, i32
  }
  func.func @transform_2(%arg0: i32, %arg1: i32, %arg2: i32) -> (i32, i32) {
    %c0_i32 = arith.constant 0 : i32
    %c0_i32_0 = arith.constant 0 : i32
    return %c0_i32, %arg1 : i32, i32
  }
  func.func @transform_3(%arg0: i32, %arg1: i32, %arg2: i32) -> (i32, i32) {
    %c0_i32 = arith.constant 0 : i32
    return %arg0, %arg1 : i32, i32
  }
}

module attributes {stable_mosaic.version = 11 : i64} {
  func.func @_fused_matmul_kernel(%arg0: i32, %arg1: i32, %arg2: i32, %arg3: memref<64x128xbf16, #tpu.memory_space<vmem>>, %arg4: memref<128x128xbf16, #tpu.memory_space<vmem>>, %arg5: memref<1x128xf32, #tpu.memory_space<vmem>>, %arg6: memref<64x128xf32, #tpu.memory_space<vmem>>, %arg7: memref<64x128xf32, #tpu.memory_space<vmem>>) attributes {dimension_semantics = [#tpu.dimension_semantics<parallel>, #tpu.dimension_semantics<parallel>, #tpu.dimension_semantics<arbitrary>], iteration_bounds = array<i64: 1, 1, 1>, scalar_prefetch = 0 : i64, scratch_operands = 1 : i64, tpu.core_type = #tpu.core_type<tc>, window_params = [{transform_indices = @transform_0, window_bounds = array<i64: 64, 128>}, {transform_indices = @transform_1, window_bounds = array<i64: 128, 128>}, {transform_indices = @transform_2, window_bounds = array<i64: 1, 128>}, {transform_indices = @transform_3, window_bounds = array<i64: 64, 128>}]} {
    %c0_i32 = arith.constant 0 : i32
    %0 = arith.cmpi eq, %arg2, %c0_i32 : i32
    %1 = arith.extui %0 : i1 to i32
    %c0_i32_0 = arith.constant 0 : i32
    %2 = arith.cmpi ne, %1, %c0_i32_0 : i32
    scf.if %2 {
      %cst_10 = arith.constant 0.000000e+00 : f32
      %12 = vector.broadcast %cst_10 : f32 to vector<64x128xf32>
      %c0_11 = arith.constant 0 : index
      %c0_12 = arith.constant 0 : index
      %13 = vector.load %arg7[%c0_11, %c0_12] : memref<64x128xf32, #tpu.memory_space<vmem>>, vector<64x128xf32>
      tpu.vector_store %arg7[%c0_11, %c0_12], %12 {strides = array<i32>} : memref<64x128xf32, #tpu.memory_space<vmem>>, vector<64x128xf32>,
    } else {
    }
    %c0 = arith.constant 0 : index
    %c0_1 = arith.constant 0 : index
    %3 = vector.load %arg7[%c0, %c0_1] : memref<64x128xf32, #tpu.memory_space<vmem>>, vector<64x128xf32>
    %c0_2 = arith.constant 0 : index
    %c0_3 = arith.constant 0 : index
    %4 = vector.load %arg3[%c0_2, %c0_3] : memref<64x128xbf16, #tpu.memory_space<vmem>>, vector<64x128xbf16>
    %c0_4 = arith.constant 0 : index
    %c0_5 = arith.constant 0 : index
    %5 = vector.load %arg4[%c0_4, %c0_5] : memref<128x128xbf16, #tpu.memory_space<vmem>>, vector<128x128xbf16>
    %cst = arith.constant dense<0.000000e+00> : vector<64x128xf32>
    %6 = tpu.matmul %4, %5, %cst {dimension_numbers = #tpu.dot_dimension_numbers<[1], [0], [0], [1], [0, 0, 1, 1], [], []>} : vector<64x128xbf16>, vector<128x128xbf16>, vector<64x128xf32> -> vector<64x128xf32>
    %7 = arith.addf %3, %6 : vector<64x128xf32>
    %c0_6 = arith.constant 0 : index
    %c0_7 = arith.constant 0 : index
    %8 = vector.load %arg7[%c0_6, %c0_7] : memref<64x128xf32, #tpu.memory_space<vmem>>, vector<64x128xf32>
    tpu.vector_store %arg7[%c0_6, %c0_7], %7 {strides = array<i32>} : memref<64x128xf32, #tpu.memory_space<vmem>>, vector<64x128xf32>,
    %c0_i32_8 = arith.constant 0 : i32
    %9 = arith.cmpi eq, %arg2, %c0_i32_8 : i32
    %10 = arith.extui %9 : i1 to i32
    %c0_i32_9 = arith.constant 0 : i32
    %11 = arith.cmpi ne, %10, %c0_i32_9 : i32
    scf.if %11 {
      %c0_10 = arith.constant 0 : index
      %c0_11 = arith.constant 0 : index
      %12 = vector.load %arg7[%c0_10, %c0_11] : memref<64x128xf32, #tpu.memory_space<vmem>>, vector<64x128xf32>
      %c0_12 = arith.constant 0 : index
      %c0_13 = arith.constant 0 : index
      %13 = vector.load %arg5[%c0_12, %c0_13] : memref<1x128xf32, #tpu.memory_space<vmem>>, vector<1x128xf32>
      %14 = vector.broadcast %13 : vector<1x128xf32> to vector<64x128xf32>
      %15 = arith.addf %12, %14 : vector<64x128xf32>
      %c0_14 = arith.constant 0 : index
      %c0_15 = arith.constant 0 : index
      %16 = vector.load %arg6[%c0_14, %c0_15] : memref<64x128xf32, #tpu.memory_space<vmem>>, vector<64x128xf32>
      tpu.vector_store %arg6[%c0_14, %c0_15], %15 {strides = array<i32>} : memref<64x128xf32, #tpu.memory_space<vmem>>, vector<64x128xf32>,
    } else {
    }
    return
  }
  func.func @transform_0(%arg0: i32, %arg1: i32, %arg2: i32) -> (i32, i32) {
    %c0_i32 = arith.constant 0 : i32
    return %arg0, %arg2 : i32, i32
  }
  func.func @transform_1(%arg0: i32, %arg1: i32, %arg2: i32) -> (i32, i32) {
    %c0_i32 = arith.constant 0 : i32
    return %arg2, %arg1 : i32, i32
  }
  func.func @transform_2(%arg0: i32, %arg1: i32, %arg2: i32) -> (i32, i32) {
    %c0_i32 = arith.constant 0 : i32
    %c0_i32_0 = arith.constant 0 : i32
    return %c0_i32, %arg1 : i32, i32
  }
  func.func @transform_3(%arg0: i32, %arg1: i32, %arg2: i32) -> (i32, i32) {
    %c0_i32 = arith.constant 0 : i32
    return %arg0, %arg1 : i32, i32
  }
}

module attributes {stable_mosaic.version = 11 : i64} {
  func.func @_fused_matmul_kernel(%arg0: i32, %arg1: i32, %arg2: i32, %arg3: memref<64x256xbf16, #tpu.memory_space<vmem>>, %arg4: memref<256x128xbf16, #tpu.memory_space<vmem>>, %arg5: memref<1x128xf32, #tpu.memory_space<vmem>>, %arg6: memref<64x128xf32, #tpu.memory_space<vmem>>, %arg7: memref<64x128xf32, #tpu.memory_space<vmem>>, %arg8: memref<64x128xf32, #tpu.memory_space<vmem>>) attributes {dimension_semantics = [#tpu.dimension_semantics<parallel>, #tpu.dimension_semantics<parallel>, #tpu.dimension_semantics<arbitrary>], iteration_bounds = array<i64: 1, 1, 1>, scalar_prefetch = 0 : i64, scratch_operands = 1 : i64, tpu.core_type = #tpu.core_type<tc>, window_params = [{transform_indices = @transform_0, window_bounds = array<i64: 64, 256>}, {transform_indices = @transform_1, window_bounds = array<i64: 256, 128>}, {transform_indices = @transform_2, window_bounds = array<i64: 1, 128>}, {transform_indices = @transform_3, window_bounds = array<i64: 64, 128>}, {transform_indices = @transform_4, window_bounds = array<i64: 64, 128>}]} {
    %c0_i32 = arith.constant 0 : i32
    %0 = arith.cmpi eq, %arg2, %c0_i32 : i32
    %1 = arith.extui %0 : i1 to i32
    %c0_i32_0 = arith.constant 0 : i32
    %2 = arith.cmpi ne, %1, %c0_i32_0 : i32
    scf.if %2 {
      %cst_10 = arith.constant 0.000000e+00 : f32
      %12 = vector.broadcast %cst_10 : f32 to vector<64x128xf32>
      %c0_11 = arith.constant 0 : index
      %c0_12 = arith.constant 0 : index
      %13 = vector.load %arg8[%c0_11, %c0_12] : memref<64x128xf32, #tpu.memory_space<vmem>>, vector<64x128xf32>
      tpu.vector_store %arg8[%c0_11, %c0_12], %12 {strides = array<i32>} : memref<64x128xf32, #tpu.memory_space<vmem>>, vector<64x128xf32>,
    } else {
    }
    %c0 = arith.constant 0 : index
    %c0_1 = arith.constant 0 : index
    %3 = vector.load %arg8[%c0, %c0_1] : memref<64x128xf32, #tpu.memory_space<vmem>>, vector<64x128xf32>
    %c0_2 = arith.constant 0 : index
    %c0_3 = arith.constant 0 : index
    %4 = vector.load %arg3[%c0_2, %c0_3] : memref<64x256xbf16, #tpu.memory_space<vmem>>, vector<64x256xbf16>
    %c0_4 = arith.constant 0 : index
    %c0_5 = arith.constant 0 : index
    %5 = vector.load %arg4[%c0_4, %c0_5] : memref<256x128xbf16, #tpu.memory_space<vmem>>, vector<256x128xbf16>
    %cst = arith.constant dense<0.000000e+00> : vector<64x128xf32>
    %6 = tpu.matmul %4, %5, %cst {dimension_numbers = #tpu.dot_dimension_numbers<[1], [0], [0], [1], [0, 0, 1, 1], [], []>} : vector<64x256xbf16>, vector<256x128xbf16>, vector<64x128xf32> -> vector<64x128xf32>
    %7 = arith.addf %3, %6 : vector<64x128xf32>
    %c0_6 = arith.constant 0 : index
    %c0_7 = arith.constant 0 : index
    %8 = vector.load %arg8[%c0_6, %c0_7] : memref<64x128xf32, #tpu.memory_space<vmem>>, vector<64x128xf32>
    tpu.vector_store %arg8[%c0_6, %c0_7], %7 {strides = array<i32>} : memref<64x128xf32, #tpu.memory_space<vmem>>, vector<64x128xf32>,
    %c0_i32_8 = arith.constant 0 : i32
    %9 = arith.cmpi eq, %arg2, %c0_i32_8 : i32
    %10 = arith.extui %9 : i1 to i32
    %c0_i32_9 = arith.constant 0 : i32
    %11 = arith.cmpi ne, %10, %c0_i32_9 : i32
    scf.if %11 {
      %c0_10 = arith.constant 0 : index
      %c0_11 = arith.constant 0 : index
      %12 = vector.load %arg8[%c0_10, %c0_11] : memref<64x128xf32, #tpu.memory_space<vmem>>, vector<64x128xf32>
      %c0_12 = arith.constant 0 : index
      %c0_13 = arith.constant 0 : index
      %13 = vector.load %arg5[%c0_12, %c0_13] : memref<1x128xf32, #tpu.memory_space<vmem>>, vector<1x128xf32>
      %14 = vector.broadcast %13 : vector<1x128xf32> to vector<64x128xf32>
      %15 = arith.addf %12, %14 : vector<64x128xf32>
      %c0_14 = arith.constant 0 : index
      %c0_15 = arith.constant 0 : index
      %16 = vector.load %arg6[%c0_14, %c0_15] : memref<64x128xf32, #tpu.memory_space<vmem>>, vector<64x128xf32>
      %17 = arith.addf %15, %16 : vector<64x128xf32>
      %cst_16 = arith.constant 0.000000e+00 : f32
      %18 = vector.broadcast %cst_16 : f32 to vector<64x128xf32>
      %19 = arith.maximumf %17, %18 : vector<64x128xf32>
      %c0_17 = arith.constant 0 : index
      %c0_18 = arith.constant 0 : index
      %20 = vector.load %arg7[%c0_17, %c0_18] : memref<64x128xf32, #tpu.memory_space<vmem>>, vector<64x128xf32>
      tpu.vector_store %arg7[%c0_17, %c0_18], %19 {strides = array<i32>} : memref<64x128xf32, #tpu.memory_space<vmem>>, vector<64x128xf32>,
    } else {
    }
    return
  }
  func.func @transform_0(%arg0: i32, %arg1: i32, %arg2: i32) -> (i32, i32) {
    %c0_i32 = arith.constant 0 : i32
    return %arg0, %arg2 : i32, i32
  }
  func.func @transform_1(%arg0: i32, %arg1: i32, %arg2: i32) -> (i32, i32) {
    %c0_i32 = arith.constant 0 : i32
    return %arg2, %arg1 : i32, i32
  }
  func.func @transform_2(%arg0: i32, %arg1: i32, %arg2: i32) -> (i32, i32) {
    %c0_i32 = arith.constant 0 : i32
    %c0_i32_0 = arith.constant 0 : i32
    return %c0_i32, %arg1 : i32, i32
  }
  func.func @transform_3(%arg0: i32, %arg1: i32, %arg2: i32) -> (i32, i32) {
    %c0_i32 = arith.constant 0 : i32
    return %arg0, %arg1 : i32, i32
  }
  func.func @transform_4(%arg0: i32, %arg1: i32, %arg2: i32) -> (i32, i32) {
    %c0_i32 = arith.constant 0 : i32
    return %arg0, %arg1 : i32, i32
  }
}

module attributes {stable_mosaic.version = 11 : i64} {
  func.func @_fused_matmul_kernel(%arg0: i32, %arg1: i32, %arg2: i32, %arg3: memref<64x256xbf16, #tpu.memory_space<vmem>>, %arg4: memref<256x128xbf16, #tpu.memory_space<vmem>>, %arg5: memref<1x128xf32, #tpu.memory_space<vmem>>, %arg6: memref<64x128xf32, #tpu.memory_space<vmem>>, %arg7: memref<64x128xf32, #tpu.memory_space<vmem>>) attributes {dimension_semantics = [#tpu.dimension_semantics<parallel>, #tpu.dimension_semantics<parallel>, #tpu.dimension_semantics<arbitrary>], iteration_bounds = array<i64: 1, 1, 1>, scalar_prefetch = 0 : i64, scratch_operands = 1 : i64, tpu.core_type = #tpu.core_type<tc>, window_params = [{transform_indices = @transform_0, window_bounds = array<i64: 64, 256>}, {transform_indices = @transform_1, window_bounds = array<i64: 256, 128>}, {transform_indices = @transform_2, window_bounds = array<i64: 1, 128>}, {transform_indices = @transform_3, window_bounds = array<i64: 64, 128>}]} {
    %c0_i32 = arith.constant 0 : i32
    %0 = arith.cmpi eq, %arg2, %c0_i32 : i32
    %1 = arith.extui %0 : i1 to i32
    %c0_i32_0 = arith.constant 0 : i32
    %2 = arith.cmpi ne, %1, %c0_i32_0 : i32
    scf.if %2 {
      %cst_10 = arith.constant 0.000000e+00 : f32
      %12 = vector.broadcast %cst_10 : f32 to vector<64x128xf32>
      %c0_11 = arith.constant 0 : index
      %c0_12 = arith.constant 0 : index
      %13 = vector.load %arg7[%c0_11, %c0_12] : memref<64x128xf32, #tpu.memory_space<vmem>>, vector<64x128xf32>
      tpu.vector_store %arg7[%c0_11, %c0_12], %12 {strides = array<i32>} : memref<64x128xf32, #tpu.memory_space<vmem>>, vector<64x128xf32>,
    } else {
    }
    %c0 = arith.constant 0 : index
    %c0_1 = arith.constant 0 : index
    %3 = vector.load %arg7[%c0, %c0_1] : memref<64x128xf32, #tpu.memory_space<vmem>>, vector<64x128xf32>
    %c0_2 = arith.constant 0 : index
    %c0_3 = arith.constant 0 : index
    %4 = vector.load %arg3[%c0_2, %c0_3] : memref<64x256xbf16, #tpu.memory_space<vmem>>, vector<64x256xbf16>
    %c0_4 = arith.constant 0 : index
    %c0_5 = arith.constant 0 : index
    %5 = vector.load %arg4[%c0_4, %c0_5] : memref<256x128xbf16, #tpu.memory_space<vmem>>, vector<256x128xbf16>
    %cst = arith.constant dense<0.000000e+00> : vector<64x128xf32>
    %6 = tpu.matmul %4, %5, %cst {dimension_numbers = #tpu.dot_dimension_numbers<[1], [0], [0], [1], [0, 0, 1, 1], [], []>} : vector<64x256xbf16>, vector<256x128xbf16>, vector<64x128xf32> -> vector<64x128xf32>
    %7 = arith.addf %3, %6 : vector<64x128xf32>
    %c0_6 = arith.constant 0 : index
    %c0_7 = arith.constant 0 : index
    %8 = vector.load %arg7[%c0_6, %c0_7] : memref<64x128xf32, #tpu.memory_space<vmem>>, vector<64x128xf32>
    tpu.vector_store %arg7[%c0_6, %c0_7], %7 {strides = array<i32>} : memref<64x128xf32, #tpu.memory_space<vmem>>, vector<64x128xf32>,
    %c0_i32_8 = arith.constant 0 : i32
    %9 = arith.cmpi eq, %arg2, %c0_i32_8 : i32
    %10 = arith.extui %9 : i1 to i32
    %c0_i32_9 = arith.constant 0 : i32
    %11 = arith.cmpi ne, %10, %c0_i32_9 : i32
    scf.if %11 {
      %c0_10 = arith.constant 0 : index
      %c0_11 = arith.constant 0 : index
      %12 = vector.load %arg7[%c0_10, %c0_11] : memref<64x128xf32, #tpu.memory_space<vmem>>, vector<64x128xf32>
      %c0_12 = arith.constant 0 : index
      %c0_13 = arith.constant 0 : index
      %13 = vector.load %arg5[%c0_12, %c0_13] : memref<1x128xf32, #tpu.memory_space<vmem>>, vector<1x128xf32>
      %14 = vector.broadcast %13 : vector<1x128xf32> to vector<64x128xf32>
      %15 = arith.addf %12, %14 : vector<64x128xf32>
      %cst_14 = arith.constant 0.000000e+00 : f32
      %16 = vector.broadcast %cst_14 : f32 to vector<64x128xf32>
      %17 = arith.maximumf %15, %16 : vector<64x128xf32>
      %c0_15 = arith.constant 0 : index
      %c0_16 = arith.constant 0 : index
      %18 = vector.load %arg6[%c0_15, %c0_16] : memref<64x128xf32, #tpu.memory_space<vmem>>, vector<64x128xf32>
      tpu.vector_store %arg6[%c0_15, %c0_16], %17 {strides = array<i32>} : memref<64x128xf32, #tpu.memory_space<vmem>>, vector<64x128xf32>,
    } else {
    }
    return
  }
  func.func @transform_0(%arg0: i32, %arg1: i32, %arg2: i32) -> (i32, i32) {
    %c0_i32 = arith.constant 0 : i32
    return %arg0, %arg2 : i32, i32
  }
  func.func @transform_1(%arg0: i32, %arg1: i32, %arg2: i32) -> (i32, i32) {
    %c0_i32 = arith.constant 0 : i32
    return %arg2, %arg1 : i32, i32
  }
  func.func @transform_2(%arg0: i32, %arg1: i32, %arg2: i32) -> (i32, i32) {
    %c0_i32 = arith.constant 0 : i32
    %c0_i32_0 = arith.constant 0 : i32
    return %c0_i32, %arg1 : i32, i32
  }
  func.func @transform_3(%arg0: i32, %arg1: i32, %arg2: i32) -> (i32, i32) {
    %c0_i32 = arith.constant 0 : i32
    return %arg0, %arg1 : i32, i32
  }
}

module attributes {stable_mosaic.version = 11 : i64} {
  func.func @_fused_matmul_kernel(%arg0: i32, %arg1: i32, %arg2: i32, %arg3: memref<16x256xbf16, #tpu.memory_space<vmem>>, %arg4: memref<256x128xbf16, #tpu.memory_space<vmem>>, %arg5: memref<1x128xf32, #tpu.memory_space<vmem>>, %arg6: memref<16x128xf32, #tpu.memory_space<vmem>>, %arg7: memref<16x128xf32, #tpu.memory_space<vmem>>) attributes {dimension_semantics = [#tpu.dimension_semantics<parallel>, #tpu.dimension_semantics<parallel>, #tpu.dimension_semantics<arbitrary>], iteration_bounds = array<i64: 1, 1, 1>, scalar_prefetch = 0 : i64, scratch_operands = 1 : i64, tpu.core_type = #tpu.core_type<tc>, window_params = [{transform_indices = @transform_0, window_bounds = array<i64: 16, 256>}, {transform_indices = @transform_1, window_bounds = array<i64: 256, 128>}, {transform_indices = @transform_2, window_bounds = array<i64: 1, 128>}, {transform_indices = @transform_3, window_bounds = array<i64: 16, 128>}]} {
    %c0_i32 = arith.constant 0 : i32
    %0 = arith.cmpi eq, %arg2, %c0_i32 : i32
    %1 = arith.extui %0 : i1 to i32
    %c0_i32_0 = arith.constant 0 : i32
    %2 = arith.cmpi ne, %1, %c0_i32_0 : i32
    scf.if %2 {
      %cst_10 = arith.constant 0.000000e+00 : f32
      %12 = vector.broadcast %cst_10 : f32 to vector<16x128xf32>
      %c0_11 = arith.constant 0 : index
      %c0_12 = arith.constant 0 : index
      %13 = vector.load %arg7[%c0_11, %c0_12] : memref<16x128xf32, #tpu.memory_space<vmem>>, vector<16x128xf32>
      tpu.vector_store %arg7[%c0_11, %c0_12], %12 {strides = array<i32>} : memref<16x128xf32, #tpu.memory_space<vmem>>, vector<16x128xf32>,
    } else {
    }
    %c0 = arith.constant 0 : index
    %c0_1 = arith.constant 0 : index
    %3 = vector.load %arg7[%c0, %c0_1] : memref<16x128xf32, #tpu.memory_space<vmem>>, vector<16x128xf32>
    %c0_2 = arith.constant 0 : index
    %c0_3 = arith.constant 0 : index
    %4 = vector.load %arg3[%c0_2, %c0_3] : memref<16x256xbf16, #tpu.memory_space<vmem>>, vector<16x256xbf16>
    %c0_4 = arith.constant 0 : index
    %c0_5 = arith.constant 0 : index
    %5 = vector.load %arg4[%c0_4, %c0_5] : memref<256x128xbf16, #tpu.memory_space<vmem>>, vector<256x128xbf16>
    %cst = arith.constant dense<0.000000e+00> : vector<16x128xf32>
    %6 = tpu.matmul %4, %5, %cst {dimension_numbers = #tpu.dot_dimension_numbers<[1], [0], [0], [1], [0, 0, 1, 1], [], []>} : vector<16x256xbf16>, vector<256x128xbf16>, vector<16x128xf32> -> vector<16x128xf32>
    %7 = arith.addf %3, %6 : vector<16x128xf32>
    %c0_6 = arith.constant 0 : index
    %c0_7 = arith.constant 0 : index
    %8 = vector.load %arg7[%c0_6, %c0_7] : memref<16x128xf32, #tpu.memory_space<vmem>>, vector<16x128xf32>
    tpu.vector_store %arg7[%c0_6, %c0_7], %7 {strides = array<i32>} : memref<16x128xf32, #tpu.memory_space<vmem>>, vector<16x128xf32>,
    %c0_i32_8 = arith.constant 0 : i32
    %9 = arith.cmpi eq, %arg2, %c0_i32_8 : i32
    %10 = arith.extui %9 : i1 to i32
    %c0_i32_9 = arith.constant 0 : i32
    %11 = arith.cmpi ne, %10, %c0_i32_9 : i32
    scf.if %11 {
      %c0_10 = arith.constant 0 : index
      %c0_11 = arith.constant 0 : index
      %12 = vector.load %arg7[%c0_10, %c0_11] : memref<16x128xf32, #tpu.memory_space<vmem>>, vector<16x128xf32>
      %c0_12 = arith.constant 0 : index
      %c0_13 = arith.constant 0 : index
      %13 = vector.load %arg5[%c0_12, %c0_13] : memref<1x128xf32, #tpu.memory_space<vmem>>, vector<1x128xf32>
      %14 = vector.broadcast %13 : vector<1x128xf32> to vector<16x128xf32>
      %15 = arith.addf %12, %14 : vector<16x128xf32>
      %cst_14 = arith.constant 0.000000e+00 : f32
      %16 = vector.broadcast %cst_14 : f32 to vector<16x128xf32>
      %17 = arith.maximumf %15, %16 : vector<16x128xf32>
      %c0_15 = arith.constant 0 : index
      %c0_16 = arith.constant 0 : index
      %18 = vector.load %arg6[%c0_15, %c0_16] : memref<16x128xf32, #tpu.memory_space<vmem>>, vector<16x128xf32>
      tpu.vector_store %arg6[%c0_15, %c0_16], %17 {strides = array<i32>} : memref<16x128xf32, #tpu.memory_space<vmem>>, vector<16x128xf32>,
    } else {
    }
    return
  }
  func.func @transform_0(%arg0: i32, %arg1: i32, %arg2: i32) -> (i32, i32) {
    %c0_i32 = arith.constant 0 : i32
    return %arg0, %arg2 : i32, i32
  }
  func.func @transform_1(%arg0: i32, %arg1: i32, %arg2: i32) -> (i32, i32) {
    %c0_i32 = arith.constant 0 : i32
    return %arg2, %arg1 : i32, i32
  }
  func.func @transform_2(%arg0: i32, %arg1: i32, %arg2: i32) -> (i32, i32) {
    %c0_i32 = arith.constant 0 : i32
    %c0_i32_0 = arith.constant 0 : i32
    return %c0_i32, %arg1 : i32, i32
  }
  func.func @transform_3(%arg0: i32, %arg1: i32, %arg2: i32) -> (i32, i32) {
    %c0_i32 = arith.constant 0 : i32
    return %arg0, %arg1 : i32, i32
  }
}

module attributes {stable_mosaic.version = 11 : i64} {
  func.func @_fused_matmul_kernel(%arg0: i32, %arg1: i32, %arg2: i32, %arg3: memref<16x128xbf16, #tpu.memory_space<vmem>>, %arg4: memref<128x128xbf16, #tpu.memory_space<vmem>>, %arg5: memref<1x128xf32, #tpu.memory_space<vmem>>, %arg6: memref<16x128xf32, #tpu.memory_space<vmem>>, %arg7: memref<16x128xf32, #tpu.memory_space<vmem>>) attributes {dimension_semantics = [#tpu.dimension_semantics<parallel>, #tpu.dimension_semantics<parallel>, #tpu.dimension_semantics<arbitrary>], iteration_bounds = array<i64: 1, 1, 1>, scalar_prefetch = 0 : i64, scratch_operands = 1 : i64, tpu.core_type = #tpu.core_type<tc>, window_params = [{transform_indices = @transform_0, window_bounds = array<i64: 16, 128>}, {transform_indices = @transform_1, window_bounds = array<i64: 128, 128>}, {transform_indices = @transform_2, window_bounds = array<i64: 1, 128>}, {transform_indices = @transform_3, window_bounds = array<i64: 16, 128>}]} {
    %c0_i32 = arith.constant 0 : i32
    %0 = arith.cmpi eq, %arg2, %c0_i32 : i32
    %1 = arith.extui %0 : i1 to i32
    %c0_i32_0 = arith.constant 0 : i32
    %2 = arith.cmpi ne, %1, %c0_i32_0 : i32
    scf.if %2 {
      %cst_10 = arith.constant 0.000000e+00 : f32
      %12 = vector.broadcast %cst_10 : f32 to vector<16x128xf32>
      %c0_11 = arith.constant 0 : index
      %c0_12 = arith.constant 0 : index
      %13 = vector.load %arg7[%c0_11, %c0_12] : memref<16x128xf32, #tpu.memory_space<vmem>>, vector<16x128xf32>
      tpu.vector_store %arg7[%c0_11, %c0_12], %12 {strides = array<i32>} : memref<16x128xf32, #tpu.memory_space<vmem>>, vector<16x128xf32>,
    } else {
    }
    %c0 = arith.constant 0 : index
    %c0_1 = arith.constant 0 : index
    %3 = vector.load %arg7[%c0, %c0_1] : memref<16x128xf32, #tpu.memory_space<vmem>>, vector<16x128xf32>
    %c0_2 = arith.constant 0 : index
    %c0_3 = arith.constant 0 : index
    %4 = vector.load %arg3[%c0_2, %c0_3] : memref<16x128xbf16, #tpu.memory_space<vmem>>, vector<16x128xbf16>
    %c0_4 = arith.constant 0 : index
    %c0_5 = arith.constant 0 : index
    %5 = vector.load %arg4[%c0_4, %c0_5] : memref<128x128xbf16, #tpu.memory_space<vmem>>, vector<128x128xbf16>
    %cst = arith.constant dense<0.000000e+00> : vector<16x128xf32>
    %6 = tpu.matmul %4, %5, %cst {dimension_numbers = #tpu.dot_dimension_numbers<[1], [0], [0], [1], [0, 0, 1, 1], [], []>} : vector<16x128xbf16>, vector<128x128xbf16>, vector<16x128xf32> -> vector<16x128xf32>
    %7 = arith.addf %3, %6 : vector<16x128xf32>
    %c0_6 = arith.constant 0 : index
    %c0_7 = arith.constant 0 : index
    %8 = vector.load %arg7[%c0_6, %c0_7] : memref<16x128xf32, #tpu.memory_space<vmem>>, vector<16x128xf32>
    tpu.vector_store %arg7[%c0_6, %c0_7], %7 {strides = array<i32>} : memref<16x128xf32, #tpu.memory_space<vmem>>, vector<16x128xf32>,
    %c0_i32_8 = arith.constant 0 : i32
    %9 = arith.cmpi eq, %arg2, %c0_i32_8 : i32
    %10 = arith.extui %9 : i1 to i32
    %c0_i32_9 = arith.constant 0 : i32
    %11 = arith.cmpi ne, %10, %c0_i32_9 : i32
    scf.if %11 {
      %c0_10 = arith.constant 0 : index
      %c0_11 = arith.constant 0 : index
      %12 = vector.load %arg7[%c0_10, %c0_11] : memref<16x128xf32, #tpu.memory_space<vmem>>, vector<16x128xf32>
      %c0_12 = arith.constant 0 : index
      %c0_13 = arith.constant 0 : index
      %13 = vector.load %arg5[%c0_12, %c0_13] : memref<1x128xf32, #tpu.memory_space<vmem>>, vector<1x128xf32>
      %14 = vector.broadcast %13 : vector<1x128xf32> to vector<16x128xf32>
      %15 = arith.addf %12, %14 : vector<16x128xf32>
      %c0_14 = arith.constant 0 : index
      %c0_15 = arith.constant 0 : index
      %16 = vector.load %arg6[%c0_14, %c0_15] : memref<16x128xf32, #tpu.memory_space<vmem>>, vector<16x128xf32>
      tpu.vector_store %arg6[%c0_14, %c0_15], %15 {strides = array<i32>} : memref<16x128xf32, #tpu.memory_space<vmem>>, vector<16x128xf32>,
    } else {
    }
    return
  }
  func.func @transform_0(%arg0: i32, %arg1: i32, %arg2: i32) -> (i32, i32) {
    %c0_i32 = arith.constant 0 : i32
    return %arg0, %arg2 : i32, i32
  }
  func.func @transform_1(%arg0: i32, %arg1: i32, %arg2: i32) -> (i32, i32) {
    %c0_i32 = arith.constant 0 : i32
    return %arg2, %arg1 : i32, i32
  }
  func.func @transform_2(%arg0: i32, %arg1: i32, %arg2: i32) -> (i32, i32) {
    %c0_i32 = arith.constant 0 : i32
    %c0_i32_0 = arith.constant 0 : i32
    return %c0_i32, %arg1 : i32, i32
  }
  func.func @transform_3(%arg0: i32, %arg1: i32, %arg2: i32) -> (i32, i32) {
    %c0_i32 = arith.constant 0 : i32
    return %arg0, %arg1 : i32, i32
  }
}

module attributes {stable_mosaic.version = 11 : i64} {
  func.func @_fused_matmul_kernel(%arg0: i32, %arg1: i32, %arg2: i32, %arg3: memref<16x384xbf16, #tpu.memory_space<vmem>>, %arg4: memref<384x128xbf16, #tpu.memory_space<vmem>>, %arg5: memref<1x128xf32, #tpu.memory_space<vmem>>, %arg6: memref<16x128xf32, #tpu.memory_space<vmem>>, %arg7: memref<16x128xf32, #tpu.memory_space<vmem>>, %arg8: memref<16x128xf32, #tpu.memory_space<vmem>>) attributes {dimension_semantics = [#tpu.dimension_semantics<parallel>, #tpu.dimension_semantics<parallel>, #tpu.dimension_semantics<arbitrary>], iteration_bounds = array<i64: 1, 1, 1>, scalar_prefetch = 0 : i64, scratch_operands = 1 : i64, tpu.core_type = #tpu.core_type<tc>, window_params = [{transform_indices = @transform_0, window_bounds = array<i64: 16, 384>}, {transform_indices = @transform_1, window_bounds = array<i64: 384, 128>}, {transform_indices = @transform_2, window_bounds = array<i64: 1, 128>}, {transform_indices = @transform_3, window_bounds = array<i64: 16, 128>}, {transform_indices = @transform_4, window_bounds = array<i64: 16, 128>}]} {
    %c0_i32 = arith.constant 0 : i32
    %0 = arith.cmpi eq, %arg2, %c0_i32 : i32
    %1 = arith.extui %0 : i1 to i32
    %c0_i32_0 = arith.constant 0 : i32
    %2 = arith.cmpi ne, %1, %c0_i32_0 : i32
    scf.if %2 {
      %cst_10 = arith.constant 0.000000e+00 : f32
      %12 = vector.broadcast %cst_10 : f32 to vector<16x128xf32>
      %c0_11 = arith.constant 0 : index
      %c0_12 = arith.constant 0 : index
      %13 = vector.load %arg8[%c0_11, %c0_12] : memref<16x128xf32, #tpu.memory_space<vmem>>, vector<16x128xf32>
      tpu.vector_store %arg8[%c0_11, %c0_12], %12 {strides = array<i32>} : memref<16x128xf32, #tpu.memory_space<vmem>>, vector<16x128xf32>,
    } else {
    }
    %c0 = arith.constant 0 : index
    %c0_1 = arith.constant 0 : index
    %3 = vector.load %arg8[%c0, %c0_1] : memref<16x128xf32, #tpu.memory_space<vmem>>, vector<16x128xf32>
    %c0_2 = arith.constant 0 : index
    %c0_3 = arith.constant 0 : index
    %4 = vector.load %arg3[%c0_2, %c0_3] : memref<16x384xbf16, #tpu.memory_space<vmem>>, vector<16x384xbf16>
    %c0_4 = arith.constant 0 : index
    %c0_5 = arith.constant 0 : index
    %5 = vector.load %arg4[%c0_4, %c0_5] : memref<384x128xbf16, #tpu.memory_space<vmem>>, vector<384x128xbf16>
    %cst = arith.constant dense<0.000000e+00> : vector<16x128xf32>
    %6 = tpu.matmul %4, %5, %cst {dimension_numbers = #tpu.dot_dimension_numbers<[1], [0], [0], [1], [0, 0, 1, 1], [], []>} : vector<16x384xbf16>, vector<384x128xbf16>, vector<16x128xf32> -> vector<16x128xf32>
    %7 = arith.addf %3, %6 : vector<16x128xf32>
    %c0_6 = arith.constant 0 : index
    %c0_7 = arith.constant 0 : index
    %8 = vector.load %arg8[%c0_6, %c0_7] : memref<16x128xf32, #tpu.memory_space<vmem>>, vector<16x128xf32>
    tpu.vector_store %arg8[%c0_6, %c0_7], %7 {strides = array<i32>} : memref<16x128xf32, #tpu.memory_space<vmem>>, vector<16x128xf32>,
    %c0_i32_8 = arith.constant 0 : i32
    %9 = arith.cmpi eq, %arg2, %c0_i32_8 : i32
    %10 = arith.extui %9 : i1 to i32
    %c0_i32_9 = arith.constant 0 : i32
    %11 = arith.cmpi ne, %10, %c0_i32_9 : i32
    scf.if %11 {
      %c0_10 = arith.constant 0 : index
      %c0_11 = arith.constant 0 : index
      %12 = vector.load %arg8[%c0_10, %c0_11] : memref<16x128xf32, #tpu.memory_space<vmem>>, vector<16x128xf32>
      %c0_12 = arith.constant 0 : index
      %c0_13 = arith.constant 0 : index
      %13 = vector.load %arg5[%c0_12, %c0_13] : memref<1x128xf32, #tpu.memory_space<vmem>>, vector<1x128xf32>
      %14 = vector.broadcast %13 : vector<1x128xf32> to vector<16x128xf32>
      %15 = arith.addf %12, %14 : vector<16x128xf32>
      %c0_14 = arith.constant 0 : index
      %c0_15 = arith.constant 0 : index
      %16 = vector.load %arg6[%c0_14, %c0_15] : memref<16x128xf32, #tpu.memory_space<vmem>>, vector<16x128xf32>
      %17 = arith.addf %15, %16 : vector<16x128xf32>
      %cst_16 = arith.constant 0.000000e+00 : f32
      %18 = vector.broadcast %cst_16 : f32 to vector<16x128xf32>
      %19 = arith.maximumf %17, %18 : vector<16x128xf32>
      %c0_17 = arith.constant 0 : index
      %c0_18 = arith.constant 0 : index
      %20 = vector.load %arg7[%c0_17, %c0_18] : memref<16x128xf32, #tpu.memory_space<vmem>>, vector<16x128xf32>
      tpu.vector_store %arg7[%c0_17, %c0_18], %19 {strides = array<i32>} : memref<16x128xf32, #tpu.memory_space<vmem>>, vector<16x128xf32>,
    } else {
    }
    return
  }
  func.func @transform_0(%arg0: i32, %arg1: i32, %arg2: i32) -> (i32, i32) {
    %c0_i32 = arith.constant 0 : i32
    return %arg0, %arg2 : i32, i32
  }
  func.func @transform_1(%arg0: i32, %arg1: i32, %arg2: i32) -> (i32, i32) {
    %c0_i32 = arith.constant 0 : i32
    return %arg2, %arg1 : i32, i32
  }
  func.func @transform_2(%arg0: i32, %arg1: i32, %arg2: i32) -> (i32, i32) {
    %c0_i32 = arith.constant 0 : i32
    %c0_i32_0 = arith.constant 0 : i32
    return %c0_i32, %arg1 : i32, i32
  }
  func.func @transform_3(%arg0: i32, %arg1: i32, %arg2: i32) -> (i32, i32) {
    %c0_i32 = arith.constant 0 : i32
    return %arg0, %arg1 : i32, i32
  }
  func.func @transform_4(%arg0: i32, %arg1: i32, %arg2: i32) -> (i32, i32) {
    %c0_i32 = arith.constant 0 : i32
    return %arg0, %arg1 : i32, i32
  }
}

module attributes {stable_mosaic.version = 11 : i64} {
  func.func @_fused_matmul_kernel(%arg0: i32, %arg1: i32, %arg2: i32, %arg3: memref<16x384xbf16, #tpu.memory_space<vmem>>, %arg4: memref<384x128xbf16, #tpu.memory_space<vmem>>, %arg5: memref<1x128xf32, #tpu.memory_space<vmem>>, %arg6: memref<16x128xf32, #tpu.memory_space<vmem>>, %arg7: memref<16x128xf32, #tpu.memory_space<vmem>>) attributes {dimension_semantics = [#tpu.dimension_semantics<parallel>, #tpu.dimension_semantics<parallel>, #tpu.dimension_semantics<arbitrary>], iteration_bounds = array<i64: 1, 1, 1>, scalar_prefetch = 0 : i64, scratch_operands = 1 : i64, tpu.core_type = #tpu.core_type<tc>, window_params = [{transform_indices = @transform_0, window_bounds = array<i64: 16, 384>}, {transform_indices = @transform_1, window_bounds = array<i64: 384, 128>}, {transform_indices = @transform_2, window_bounds = array<i64: 1, 128>}, {transform_indices = @transform_3, window_bounds = array<i64: 16, 128>}]} {
    %c0_i32 = arith.constant 0 : i32
    %0 = arith.cmpi eq, %arg2, %c0_i32 : i32
    %1 = arith.extui %0 : i1 to i32
    %c0_i32_0 = arith.constant 0 : i32
    %2 = arith.cmpi ne, %1, %c0_i32_0 : i32
    scf.if %2 {
      %cst_10 = arith.constant 0.000000e+00 : f32
      %12 = vector.broadcast %cst_10 : f32 to vector<16x128xf32>
      %c0_11 = arith.constant 0 : index
      %c0_12 = arith.constant 0 : index
      %13 = vector.load %arg7[%c0_11, %c0_12] : memref<16x128xf32, #tpu.memory_space<vmem>>, vector<16x128xf32>
      tpu.vector_store %arg7[%c0_11, %c0_12], %12 {strides = array<i32>} : memref<16x128xf32, #tpu.memory_space<vmem>>, vector<16x128xf32>,
    } else {
    }
    %c0 = arith.constant 0 : index
    %c0_1 = arith.constant 0 : index
    %3 = vector.load %arg7[%c0, %c0_1] : memref<16x128xf32, #tpu.memory_space<vmem>>, vector<16x128xf32>
    %c0_2 = arith.constant 0 : index
    %c0_3 = arith.constant 0 : index
    %4 = vector.load %arg3[%c0_2, %c0_3] : memref<16x384xbf16, #tpu.memory_space<vmem>>, vector<16x384xbf16>
    %c0_4 = arith.constant 0 : index
    %c0_5 = arith.constant 0 : index
    %5 = vector.load %arg4[%c0_4, %c0_5] : memref<384x128xbf16, #tpu.memory_space<vmem>>, vector<384x128xbf16>
    %cst = arith.constant dense<0.000000e+00> : vector<16x128xf32>
    %6 = tpu.matmul %4, %5, %cst {dimension_numbers = #tpu.dot_dimension_numbers<[1], [0], [0], [1], [0, 0, 1, 1], [], []>} : vector<16x384xbf16>, vector<384x128xbf16>, vector<16x128xf32> -> vector<16x128xf32>
    %7 = arith.addf %3, %6 : vector<16x128xf32>
    %c0_6 = arith.constant 0 : index
    %c0_7 = arith.constant 0 : index
    %8 = vector.load %arg7[%c0_6, %c0_7] : memref<16x128xf32, #tpu.memory_space<vmem>>, vector<16x128xf32>
    tpu.vector_store %arg7[%c0_6, %c0_7], %7 {strides = array<i32>} : memref<16x128xf32, #tpu.memory_space<vmem>>, vector<16x128xf32>,
    %c0_i32_8 = arith.constant 0 : i32
    %9 = arith.cmpi eq, %arg2, %c0_i32_8 : i32
    %10 = arith.extui %9 : i1 to i32
    %c0_i32_9 = arith.constant 0 : i32
    %11 = arith.cmpi ne, %10, %c0_i32_9 : i32
    scf.if %11 {
      %c0_10 = arith.constant 0 : index
      %c0_11 = arith.constant 0 : index
      %12 = vector.load %arg7[%c0_10, %c0_11] : memref<16x128xf32, #tpu.memory_space<vmem>>, vector<16x128xf32>
      %c0_12 = arith.constant 0 : index
      %c0_13 = arith.constant 0 : index
      %13 = vector.load %arg5[%c0_12, %c0_13] : memref<1x128xf32, #tpu.memory_space<vmem>>, vector<1x128xf32>
      %14 = vector.broadcast %13 : vector<1x128xf32> to vector<16x128xf32>
      %15 = arith.addf %12, %14 : vector<16x128xf32>
      %cst_14 = arith.constant 0.000000e+00 : f32
      %16 = vector.broadcast %cst_14 : f32 to vector<16x128xf32>
      %17 = arith.maximumf %15, %16 : vector<16x128xf32>
      %c0_15 = arith.constant 0 : index
      %c0_16 = arith.constant 0 : index
      %18 = vector.load %arg6[%c0_15, %c0_16] : memref<16x128xf32, #tpu.memory_space<vmem>>, vector<16x128xf32>
      tpu.vector_store %arg6[%c0_15, %c0_16], %17 {strides = array<i32>} : memref<16x128xf32, #tpu.memory_space<vmem>>, vector<16x128xf32>,
    } else {
    }
    return
  }
  func.func @transform_0(%arg0: i32, %arg1: i32, %arg2: i32) -> (i32, i32) {
    %c0_i32 = arith.constant 0 : i32
    return %arg0, %arg2 : i32, i32
  }
  func.func @transform_1(%arg0: i32, %arg1: i32, %arg2: i32) -> (i32, i32) {
    %c0_i32 = arith.constant 0 : i32
    return %arg2, %arg1 : i32, i32
  }
  func.func @transform_2(%arg0: i32, %arg1: i32, %arg2: i32) -> (i32, i32) {
    %c0_i32 = arith.constant 0 : i32
    %c0_i32_0 = arith.constant 0 : i32
    return %c0_i32, %arg1 : i32, i32
  }
  func.func @transform_3(%arg0: i32, %arg1: i32, %arg2: i32) -> (i32, i32) {
    %c0_i32 = arith.constant 0 : i32
    return %arg0, %arg1 : i32, i32
  }
}

module attributes {stable_mosaic.version = 11 : i64} {
  func.func @_fused_matmul_kernel(%arg0: i32, %arg1: i32, %arg2: i32, %arg3: memref<8x384xbf16, #tpu.memory_space<vmem>>, %arg4: memref<384x128xbf16, #tpu.memory_space<vmem>>, %arg5: memref<1x128xf32, #tpu.memory_space<vmem>>, %arg6: memref<8x128xf32, #tpu.memory_space<vmem>>, %arg7: memref<8x128xf32, #tpu.memory_space<vmem>>) attributes {dimension_semantics = [#tpu.dimension_semantics<parallel>, #tpu.dimension_semantics<parallel>, #tpu.dimension_semantics<arbitrary>], iteration_bounds = array<i64: 1, 1, 1>, scalar_prefetch = 0 : i64, scratch_operands = 1 : i64, tpu.core_type = #tpu.core_type<tc>, window_params = [{transform_indices = @transform_0, window_bounds = array<i64: 8, 384>}, {transform_indices = @transform_1, window_bounds = array<i64: 384, 128>}, {transform_indices = @transform_2, window_bounds = array<i64: 1, 128>}, {transform_indices = @transform_3, window_bounds = array<i64: 8, 128>}]} {
    %c0_i32 = arith.constant 0 : i32
    %0 = arith.cmpi eq, %arg2, %c0_i32 : i32
    %1 = arith.extui %0 : i1 to i32
    %c0_i32_0 = arith.constant 0 : i32
    %2 = arith.cmpi ne, %1, %c0_i32_0 : i32
    scf.if %2 {
      %cst_10 = arith.constant 0.000000e+00 : f32
      %12 = vector.broadcast %cst_10 : f32 to vector<8x128xf32>
      %c0_11 = arith.constant 0 : index
      %c0_12 = arith.constant 0 : index
      %13 = vector.load %arg7[%c0_11, %c0_12] : memref<8x128xf32, #tpu.memory_space<vmem>>, vector<8x128xf32>
      tpu.vector_store %arg7[%c0_11, %c0_12], %12 {strides = array<i32>} : memref<8x128xf32, #tpu.memory_space<vmem>>, vector<8x128xf32>,
    } else {
    }
    %c0 = arith.constant 0 : index
    %c0_1 = arith.constant 0 : index
    %3 = vector.load %arg7[%c0, %c0_1] : memref<8x128xf32, #tpu.memory_space<vmem>>, vector<8x128xf32>
    %c0_2 = arith.constant 0 : index
    %c0_3 = arith.constant 0 : index
    %4 = vector.load %arg3[%c0_2, %c0_3] : memref<8x384xbf16, #tpu.memory_space<vmem>>, vector<8x384xbf16>
    %c0_4 = arith.constant 0 : index
    %c0_5 = arith.constant 0 : index
    %5 = vector.load %arg4[%c0_4, %c0_5] : memref<384x128xbf16, #tpu.memory_space<vmem>>, vector<384x128xbf16>
    %cst = arith.constant dense<0.000000e+00> : vector<8x128xf32>
    %6 = tpu.matmul %4, %5, %cst {dimension_numbers = #tpu.dot_dimension_numbers<[1], [0], [0], [1], [0, 0, 1, 1], [], []>} : vector<8x384xbf16>, vector<384x128xbf16>, vector<8x128xf32> -> vector<8x128xf32>
    %7 = arith.addf %3, %6 : vector<8x128xf32>
    %c0_6 = arith.constant 0 : index
    %c0_7 = arith.constant 0 : index
    %8 = vector.load %arg7[%c0_6, %c0_7] : memref<8x128xf32, #tpu.memory_space<vmem>>, vector<8x128xf32>
    tpu.vector_store %arg7[%c0_6, %c0_7], %7 {strides = array<i32>} : memref<8x128xf32, #tpu.memory_space<vmem>>, vector<8x128xf32>,
    %c0_i32_8 = arith.constant 0 : i32
    %9 = arith.cmpi eq, %arg2, %c0_i32_8 : i32
    %10 = arith.extui %9 : i1 to i32
    %c0_i32_9 = arith.constant 0 : i32
    %11 = arith.cmpi ne, %10, %c0_i32_9 : i32
    scf.if %11 {
      %c0_10 = arith.constant 0 : index
      %c0_11 = arith.constant 0 : index
      %12 = vector.load %arg7[%c0_10, %c0_11] : memref<8x128xf32, #tpu.memory_space<vmem>>, vector<8x128xf32>
      %c0_12 = arith.constant 0 : index
      %c0_13 = arith.constant 0 : index
      %13 = vector.load %arg5[%c0_12, %c0_13] : memref<1x128xf32, #tpu.memory_space<vmem>>, vector<1x128xf32>
      %14 = vector.broadcast %13 : vector<1x128xf32> to vector<8x128xf32>
      %15 = arith.addf %12, %14 : vector<8x128xf32>
      %cst_14 = arith.constant 0.000000e+00 : f32
      %16 = vector.broadcast %cst_14 : f32 to vector<8x128xf32>
      %17 = arith.maximumf %15, %16 : vector<8x128xf32>
      %c0_15 = arith.constant 0 : index
      %c0_16 = arith.constant 0 : index
      %18 = vector.load %arg6[%c0_15, %c0_16] : memref<8x128xf32, #tpu.memory_space<vmem>>, vector<8x128xf32>
      tpu.vector_store %arg6[%c0_15, %c0_16], %17 {strides = array<i32>} : memref<8x128xf32, #tpu.memory_space<vmem>>, vector<8x128xf32>,
    } else {
    }
    return
  }
  func.func @transform_0(%arg0: i32, %arg1: i32, %arg2: i32) -> (i32, i32) {
    %c0_i32 = arith.constant 0 : i32
    return %arg0, %arg2 : i32, i32
  }
  func.func @transform_1(%arg0: i32, %arg1: i32, %arg2: i32) -> (i32, i32) {
    %c0_i32 = arith.constant 0 : i32
    return %arg2, %arg1 : i32, i32
  }
  func.func @transform_2(%arg0: i32, %arg1: i32, %arg2: i32) -> (i32, i32) {
    %c0_i32 = arith.constant 0 : i32
    %c0_i32_0 = arith.constant 0 : i32
    return %c0_i32, %arg1 : i32, i32
  }
  func.func @transform_3(%arg0: i32, %arg1: i32, %arg2: i32) -> (i32, i32) {
    %c0_i32 = arith.constant 0 : i32
    return %arg0, %arg1 : i32, i32
  }
}

module attributes {stable_mosaic.version = 11 : i64} {
  func.func @_fused_matmul_kernel(%arg0: i32, %arg1: i32, %arg2: i32, %arg3: memref<8x128xbf16, #tpu.memory_space<vmem>>, %arg4: memref<128x128xbf16, #tpu.memory_space<vmem>>, %arg5: memref<1x128xf32, #tpu.memory_space<vmem>>, %arg6: memref<8x128xf32, #tpu.memory_space<vmem>>, %arg7: memref<8x128xf32, #tpu.memory_space<vmem>>) attributes {dimension_semantics = [#tpu.dimension_semantics<parallel>, #tpu.dimension_semantics<parallel>, #tpu.dimension_semantics<arbitrary>], iteration_bounds = array<i64: 1, 1, 1>, scalar_prefetch = 0 : i64, scratch_operands = 1 : i64, tpu.core_type = #tpu.core_type<tc>, window_params = [{transform_indices = @transform_0, window_bounds = array<i64: 8, 128>}, {transform_indices = @transform_1, window_bounds = array<i64: 128, 128>}, {transform_indices = @transform_2, window_bounds = array<i64: 1, 128>}, {transform_indices = @transform_3, window_bounds = array<i64: 8, 128>}]} {
    %c0_i32 = arith.constant 0 : i32
    %0 = arith.cmpi eq, %arg2, %c0_i32 : i32
    %1 = arith.extui %0 : i1 to i32
    %c0_i32_0 = arith.constant 0 : i32
    %2 = arith.cmpi ne, %1, %c0_i32_0 : i32
    scf.if %2 {
      %cst_10 = arith.constant 0.000000e+00 : f32
      %12 = vector.broadcast %cst_10 : f32 to vector<8x128xf32>
      %c0_11 = arith.constant 0 : index
      %c0_12 = arith.constant 0 : index
      %13 = vector.load %arg7[%c0_11, %c0_12] : memref<8x128xf32, #tpu.memory_space<vmem>>, vector<8x128xf32>
      tpu.vector_store %arg7[%c0_11, %c0_12], %12 {strides = array<i32>} : memref<8x128xf32, #tpu.memory_space<vmem>>, vector<8x128xf32>,
    } else {
    }
    %c0 = arith.constant 0 : index
    %c0_1 = arith.constant 0 : index
    %3 = vector.load %arg7[%c0, %c0_1] : memref<8x128xf32, #tpu.memory_space<vmem>>, vector<8x128xf32>
    %c0_2 = arith.constant 0 : index
    %c0_3 = arith.constant 0 : index
    %4 = vector.load %arg3[%c0_2, %c0_3] : memref<8x128xbf16, #tpu.memory_space<vmem>>, vector<8x128xbf16>
    %c0_4 = arith.constant 0 : index
    %c0_5 = arith.constant 0 : index
    %5 = vector.load %arg4[%c0_4, %c0_5] : memref<128x128xbf16, #tpu.memory_space<vmem>>, vector<128x128xbf16>
    %cst = arith.constant dense<0.000000e+00> : vector<8x128xf32>
    %6 = tpu.matmul %4, %5, %cst {dimension_numbers = #tpu.dot_dimension_numbers<[1], [0], [0], [1], [0, 0, 1, 1], [], []>} : vector<8x128xbf16>, vector<128x128xbf16>, vector<8x128xf32> -> vector<8x128xf32>
    %7 = arith.addf %3, %6 : vector<8x128xf32>
    %c0_6 = arith.constant 0 : index
    %c0_7 = arith.constant 0 : index
    %8 = vector.load %arg7[%c0_6, %c0_7] : memref<8x128xf32, #tpu.memory_space<vmem>>, vector<8x128xf32>
    tpu.vector_store %arg7[%c0_6, %c0_7], %7 {strides = array<i32>} : memref<8x128xf32, #tpu.memory_space<vmem>>, vector<8x128xf32>,
    %c0_i32_8 = arith.constant 0 : i32
    %9 = arith.cmpi eq, %arg2, %c0_i32_8 : i32
    %10 = arith.extui %9 : i1 to i32
    %c0_i32_9 = arith.constant 0 : i32
    %11 = arith.cmpi ne, %10, %c0_i32_9 : i32
    scf.if %11 {
      %c0_10 = arith.constant 0 : index
      %c0_11 = arith.constant 0 : index
      %12 = vector.load %arg7[%c0_10, %c0_11] : memref<8x128xf32, #tpu.memory_space<vmem>>, vector<8x128xf32>
      %c0_12 = arith.constant 0 : index
      %c0_13 = arith.constant 0 : index
      %13 = vector.load %arg5[%c0_12, %c0_13] : memref<1x128xf32, #tpu.memory_space<vmem>>, vector<1x128xf32>
      %14 = vector.broadcast %13 : vector<1x128xf32> to vector<8x128xf32>
      %15 = arith.addf %12, %14 : vector<8x128xf32>
      %c0_14 = arith.constant 0 : index
      %c0_15 = arith.constant 0 : index
      %16 = vector.load %arg6[%c0_14, %c0_15] : memref<8x128xf32, #tpu.memory_space<vmem>>, vector<8x128xf32>
      tpu.vector_store %arg6[%c0_14, %c0_15], %15 {strides = array<i32>} : memref<8x128xf32, #tpu.memory_space<vmem>>, vector<8x128xf32>,
    } else {
    }
    return
  }
  func.func @transform_0(%arg0: i32, %arg1: i32, %arg2: i32) -> (i32, i32) {
    %c0_i32 = arith.constant 0 : i32
    return %arg0, %arg2 : i32, i32
  }
  func.func @transform_1(%arg0: i32, %arg1: i32, %arg2: i32) -> (i32, i32) {
    %c0_i32 = arith.constant 0 : i32
    return %arg2, %arg1 : i32, i32
  }
  func.func @transform_2(%arg0: i32, %arg1: i32, %arg2: i32) -> (i32, i32) {
    %c0_i32 = arith.constant 0 : i32
    %c0_i32_0 = arith.constant 0 : i32
    return %c0_i32, %arg1 : i32, i32
  }
  func.func @transform_3(%arg0: i32, %arg1: i32, %arg2: i32) -> (i32, i32) {
    %c0_i32 = arith.constant 0 : i32
    return %arg0, %arg1 : i32, i32
  }
}

module attributes {stable_mosaic.version = 11 : i64} {
  func.func @_fused_matmul_kernel(%arg0: i32, %arg1: i32, %arg2: i32, %arg3: memref<8x128xbf16, #tpu.memory_space<vmem>>, %arg4: memref<128x128xbf16, #tpu.memory_space<vmem>>, %arg5: memref<1x128xf32, #tpu.memory_space<vmem>>, %arg6: memref<8x128xf32, #tpu.memory_space<vmem>>, %arg7: memref<8x128xf32, #tpu.memory_space<vmem>>, %arg8: memref<8x128xf32, #tpu.memory_space<vmem>>) attributes {dimension_semantics = [#tpu.dimension_semantics<parallel>, #tpu.dimension_semantics<parallel>, #tpu.dimension_semantics<arbitrary>], iteration_bounds = array<i64: 1, 1, 5>, scalar_prefetch = 0 : i64, scratch_operands = 1 : i64, tpu.core_type = #tpu.core_type<tc>, window_params = [{transform_indices = @transform_0, window_bounds = array<i64: 8, 128>}, {transform_indices = @transform_1, window_bounds = array<i64: 128, 128>}, {transform_indices = @transform_2, window_bounds = array<i64: 1, 128>}, {transform_indices = @transform_3, window_bounds = array<i64: 8, 128>}, {transform_indices = @transform_4, window_bounds = array<i64: 8, 128>}]} {
    %c0_i32 = arith.constant 0 : i32
    %0 = arith.cmpi eq, %arg2, %c0_i32 : i32
    %1 = arith.extui %0 : i1 to i32
    %c0_i32_0 = arith.constant 0 : i32
    %2 = arith.cmpi ne, %1, %c0_i32_0 : i32
    scf.if %2 {
      %cst_9 = arith.constant 0.000000e+00 : f32
      %12 = vector.broadcast %cst_9 : f32 to vector<8x128xf32>
      %c0_10 = arith.constant 0 : index
      %c0_11 = arith.constant 0 : index
      %13 = vector.load %arg8[%c0_10, %c0_11] : memref<8x128xf32, #tpu.memory_space<vmem>>, vector<8x128xf32>
      tpu.vector_store %arg8[%c0_10, %c0_11], %12 {strides = array<i32>} : memref<8x128xf32, #tpu.memory_space<vmem>>, vector<8x128xf32>,
    } else {
    }
    %c0 = arith.constant 0 : index
    %c0_1 = arith.constant 0 : index
    %3 = vector.load %arg8[%c0, %c0_1] : memref<8x128xf32, #tpu.memory_space<vmem>>, vector<8x128xf32>
    %c0_2 = arith.constant 0 : index
    %c0_3 = arith.constant 0 : index
    %4 = vector.load %arg3[%c0_2, %c0_3] : memref<8x128xbf16, #tpu.memory_space<vmem>>, vector<8x128xbf16>
    %c0_4 = arith.constant 0 : index
    %c0_5 = arith.constant 0 : index
    %5 = vector.load %arg4[%c0_4, %c0_5] : memref<128x128xbf16, #tpu.memory_space<vmem>>, vector<128x128xbf16>
    %cst = arith.constant dense<0.000000e+00> : vector<8x128xf32>
    %6 = tpu.matmul %4, %5, %cst {dimension_numbers = #tpu.dot_dimension_numbers<[1], [0], [0], [1], [0, 0, 1, 1], [], []>} : vector<8x128xbf16>, vector<128x128xbf16>, vector<8x128xf32> -> vector<8x128xf32>
    %7 = arith.addf %3, %6 : vector<8x128xf32>
    %c0_6 = arith.constant 0 : index
    %c0_7 = arith.constant 0 : index
    %8 = vector.load %arg8[%c0_6, %c0_7] : memref<8x128xf32, #tpu.memory_space<vmem>>, vector<8x128xf32>
    tpu.vector_store %arg8[%c0_6, %c0_7], %7 {strides = array<i32>} : memref<8x128xf32, #tpu.memory_space<vmem>>, vector<8x128xf32>,
    %c4_i32 = arith.constant 4 : i32
    %9 = arith.cmpi eq, %arg2, %c4_i32 : i32
    %10 = arith.extui %9 : i1 to i32
    %c0_i32_8 = arith.constant 0 : i32
    %11 = arith.cmpi ne, %10, %c0_i32_8 : i32
    scf.if %11 {
      %c0_9 = arith.constant 0 : index
      %c0_10 = arith.constant 0 : index
      %12 = vector.load %arg8[%c0_9, %c0_10] : memref<8x128xf32, #tpu.memory_space<vmem>>, vector<8x128xf32>
      %c0_11 = arith.constant 0 : index
      %c0_12 = arith.constant 0 : index
      %13 = vector.load %arg5[%c0_11, %c0_12] : memref<1x128xf32, #tpu.memory_space<vmem>>, vector<1x128xf32>
      %14 = vector.broadcast %13 : vector<1x128xf32> to vector<8x128xf32>
      %15 = arith.addf %12, %14 : vector<8x128xf32>
      %c0_13 = arith.constant 0 : index
      %c0_14 = arith.constant 0 : index
      %16 = vector.load %arg6[%c0_13, %c0_14] : memref<8x128xf32, #tpu.memory_space<vmem>>, vector<8x128xf32>
      %17 = arith.addf %15, %16 : vector<8x128xf32>
      %cst_15 = arith.constant 0.000000e+00 : f32
      %18 = vector.broadcast %cst_15 : f32 to vector<8x128xf32>
      %19 = arith.maximumf %17, %18 : vector<8x128xf32>
      %c0_16 = arith.constant 0 : index
      %c0_17 = arith.constant 0 : index
      %20 = vector.load %arg7[%c0_16, %c0_17] : memref<8x128xf32, #tpu.memory_space<vmem>>, vector<8x128xf32>
      tpu.vector_store %arg7[%c0_16, %c0_17], %19 {strides = array<i32>} : memref<8x128xf32, #tpu.memory_space<vmem>>, vector<8x128xf32>,
    } else {
    }
    return
  }
  func.func @transform_0(%arg0: i32, %arg1: i32, %arg2: i32) -> (i32, i32) {
    %c0_i32 = arith.constant 0 : i32
    return %arg0, %arg2 : i32, i32
  }
  func.func @transform_1(%arg0: i32, %arg1: i32, %arg2: i32) -> (i32, i32) {
    %c0_i32 = arith.constant 0 : i32
    return %arg2, %arg1 : i32, i32
  }
  func.func @transform_2(%arg0: i32, %arg1: i32, %arg2: i32) -> (i32, i32) {
    %c0_i32 = arith.constant 0 : i32
    %c0_i32_0 = arith.constant 0 : i32
    return %c0_i32, %arg1 : i32, i32
  }
  func.func @transform_3(%arg0: i32, %arg1: i32, %arg2: i32) -> (i32, i32) {
    %c0_i32 = arith.constant 0 : i32
    return %arg0, %arg1 : i32, i32
  }
  func.func @transform_4(%arg0: i32, %arg1: i32, %arg2: i32) -> (i32, i32) {
    %c0_i32 = arith.constant 0 : i32
    return %arg0, %arg1 : i32, i32
  }
}

module attributes {stable_mosaic.version = 11 : i64} {
  func.func @_fused_matmul_kernel(%arg0: i32, %arg1: i32, %arg2: i32, %arg3: memref<8x128xbf16, #tpu.memory_space<vmem>>, %arg4: memref<128x128xbf16, #tpu.memory_space<vmem>>, %arg5: memref<1x128xf32, #tpu.memory_space<vmem>>, %arg6: memref<8x128xf32, #tpu.memory_space<vmem>>, %arg7: memref<8x128xf32, #tpu.memory_space<vmem>>) attributes {dimension_semantics = [#tpu.dimension_semantics<parallel>, #tpu.dimension_semantics<parallel>, #tpu.dimension_semantics<arbitrary>], iteration_bounds = array<i64: 1, 1, 5>, scalar_prefetch = 0 : i64, scratch_operands = 1 : i64, tpu.core_type = #tpu.core_type<tc>, window_params = [{transform_indices = @transform_0, window_bounds = array<i64: 8, 128>}, {transform_indices = @transform_1, window_bounds = array<i64: 128, 128>}, {transform_indices = @transform_2, window_bounds = array<i64: 1, 128>}, {transform_indices = @transform_3, window_bounds = array<i64: 8, 128>}]} {
    %c0_i32 = arith.constant 0 : i32
    %0 = arith.cmpi eq, %arg2, %c0_i32 : i32
    %1 = arith.extui %0 : i1 to i32
    %c0_i32_0 = arith.constant 0 : i32
    %2 = arith.cmpi ne, %1, %c0_i32_0 : i32
    scf.if %2 {
      %cst_9 = arith.constant 0.000000e+00 : f32
      %12 = vector.broadcast %cst_9 : f32 to vector<8x128xf32>
      %c0_10 = arith.constant 0 : index
      %c0_11 = arith.constant 0 : index
      %13 = vector.load %arg7[%c0_10, %c0_11] : memref<8x128xf32, #tpu.memory_space<vmem>>, vector<8x128xf32>
      tpu.vector_store %arg7[%c0_10, %c0_11], %12 {strides = array<i32>} : memref<8x128xf32, #tpu.memory_space<vmem>>, vector<8x128xf32>,
    } else {
    }
    %c0 = arith.constant 0 : index
    %c0_1 = arith.constant 0 : index
    %3 = vector.load %arg7[%c0, %c0_1] : memref<8x128xf32, #tpu.memory_space<vmem>>, vector<8x128xf32>
    %c0_2 = arith.constant 0 : index
    %c0_3 = arith.constant 0 : index
    %4 = vector.load %arg3[%c0_2, %c0_3] : memref<8x128xbf16, #tpu.memory_space<vmem>>, vector<8x128xbf16>
    %c0_4 = arith.constant 0 : index
    %c0_5 = arith.constant 0 : index
    %5 = vector.load %arg4[%c0_4, %c0_5] : memref<128x128xbf16, #tpu.memory_space<vmem>>, vector<128x128xbf16>
    %cst = arith.constant dense<0.000000e+00> : vector<8x128xf32>
    %6 = tpu.matmul %4, %5, %cst {dimension_numbers = #tpu.dot_dimension_numbers<[1], [0], [0], [1], [0, 0, 1, 1], [], []>} : vector<8x128xbf16>, vector<128x128xbf16>, vector<8x128xf32> -> vector<8x128xf32>
    %7 = arith.addf %3, %6 : vector<8x128xf32>
    %c0_6 = arith.constant 0 : index
    %c0_7 = arith.constant 0 : index
    %8 = vector.load %arg7[%c0_6, %c0_7] : memref<8x128xf32, #tpu.memory_space<vmem>>, vector<8x128xf32>
    tpu.vector_store %arg7[%c0_6, %c0_7], %7 {strides = array<i32>} : memref<8x128xf32, #tpu.memory_space<vmem>>, vector<8x128xf32>,
    %c4_i32 = arith.constant 4 : i32
    %9 = arith.cmpi eq, %arg2, %c4_i32 : i32
    %10 = arith.extui %9 : i1 to i32
    %c0_i32_8 = arith.constant 0 : i32
    %11 = arith.cmpi ne, %10, %c0_i32_8 : i32
    scf.if %11 {
      %c0_9 = arith.constant 0 : index
      %c0_10 = arith.constant 0 : index
      %12 = vector.load %arg7[%c0_9, %c0_10] : memref<8x128xf32, #tpu.memory_space<vmem>>, vector<8x128xf32>
      %c0_11 = arith.constant 0 : index
      %c0_12 = arith.constant 0 : index
      %13 = vector.load %arg5[%c0_11, %c0_12] : memref<1x128xf32, #tpu.memory_space<vmem>>, vector<1x128xf32>
      %14 = vector.broadcast %13 : vector<1x128xf32> to vector<8x128xf32>
      %15 = arith.addf %12, %14 : vector<8x128xf32>
      %cst_13 = arith.constant 0.000000e+00 : f32
      %16 = vector.broadcast %cst_13 : f32 to vector<8x128xf32>
      %17 = arith.maximumf %15, %16 : vector<8x128xf32>
      %c0_14 = arith.constant 0 : index
      %c0_15 = arith.constant 0 : index
      %18 = vector.load %arg6[%c0_14, %c0_15] : memref<8x128xf32, #tpu.memory_space<vmem>>, vector<8x128xf32>
      tpu.vector_store %arg6[%c0_14, %c0_15], %17 {strides = array<i32>} : memref<8x128xf32, #tpu.memory_space<vmem>>, vector<8x128xf32>,
    } else {
    }
    return
  }
  func.func @transform_0(%arg0: i32, %arg1: i32, %arg2: i32) -> (i32, i32) {
    %c0_i32 = arith.constant 0 : i32
    return %arg0, %arg2 : i32, i32
  }
  func.func @transform_1(%arg0: i32, %arg1: i32, %arg2: i32) -> (i32, i32) {
    %c0_i32 = arith.constant 0 : i32
    return %arg2, %arg1 : i32, i32
  }
  func.func @transform_2(%arg0: i32, %arg1: i32, %arg2: i32) -> (i32, i32) {
    %c0_i32 = arith.constant 0 : i32
    %c0_i32_0 = arith.constant 0 : i32
    return %c0_i32, %arg1 : i32, i32
  }
  func.func @transform_3(%arg0: i32, %arg1: i32, %arg2: i32) -> (i32, i32) {
    %c0_i32 = arith.constant 0 : i32
    return %arg0, %arg1 : i32, i32
  }
}

module attributes {stable_mosaic.version = 11 : i64} {
  func.func @_fused_matmul_kernel(%arg0: i32, %arg1: i32, %arg2: i32, %arg3: memref<8x128xbf16, #tpu.memory_space<vmem>>, %arg4: memref<128x256xbf16, #tpu.memory_space<vmem>>, %arg5: memref<1x256xf32, #tpu.memory_space<vmem>>, %arg6: memref<8x256xf32, #tpu.memory_space<vmem>>, %arg7: memref<8x256xf32, #tpu.memory_space<vmem>>) attributes {dimension_semantics = [#tpu.dimension_semantics<parallel>, #tpu.dimension_semantics<parallel>, #tpu.dimension_semantics<arbitrary>], iteration_bounds = array<i64: 1, 1, 1>, scalar_prefetch = 0 : i64, scratch_operands = 1 : i64, tpu.core_type = #tpu.core_type<tc>, window_params = [{transform_indices = @transform_0, window_bounds = array<i64: 8, 128>}, {transform_indices = @transform_1, window_bounds = array<i64: 128, 256>}, {transform_indices = @transform_2, window_bounds = array<i64: 1, 256>}, {transform_indices = @transform_3, window_bounds = array<i64: 8, 256>}]} {
    %c0_i32 = arith.constant 0 : i32
    %0 = arith.cmpi eq, %arg2, %c0_i32 : i32
    %1 = arith.extui %0 : i1 to i32
    %c0_i32_0 = arith.constant 0 : i32
    %2 = arith.cmpi ne, %1, %c0_i32_0 : i32
    scf.if %2 {
      %cst_10 = arith.constant 0.000000e+00 : f32
      %12 = vector.broadcast %cst_10 : f32 to vector<8x256xf32>
      %c0_11 = arith.constant 0 : index
      %c0_12 = arith.constant 0 : index
      %13 = vector.load %arg7[%c0_11, %c0_12] : memref<8x256xf32, #tpu.memory_space<vmem>>, vector<8x256xf32>
      tpu.vector_store %arg7[%c0_11, %c0_12], %12 {strides = array<i32>} : memref<8x256xf32, #tpu.memory_space<vmem>>, vector<8x256xf32>,
    } else {
    }
    %c0 = arith.constant 0 : index
    %c0_1 = arith.constant 0 : index
    %3 = vector.load %arg7[%c0, %c0_1] : memref<8x256xf32, #tpu.memory_space<vmem>>, vector<8x256xf32>
    %c0_2 = arith.constant 0 : index
    %c0_3 = arith.constant 0 : index
    %4 = vector.load %arg3[%c0_2, %c0_3] : memref<8x128xbf16, #tpu.memory_space<vmem>>, vector<8x128xbf16>
    %c0_4 = arith.constant 0 : index
    %c0_5 = arith.constant 0 : index
    %5 = vector.load %arg4[%c0_4, %c0_5] : memref<128x256xbf16, #tpu.memory_space<vmem>>, vector<128x256xbf16>
    %cst = arith.constant dense<0.000000e+00> : vector<8x256xf32>
    %6 = tpu.matmul %4, %5, %cst {dimension_numbers = #tpu.dot_dimension_numbers<[1], [0], [0], [1], [0, 0, 1, 1], [], []>} : vector<8x128xbf16>, vector<128x256xbf16>, vector<8x256xf32> -> vector<8x256xf32>
    %7 = arith.addf %3, %6 : vector<8x256xf32>
    %c0_6 = arith.constant 0 : index
    %c0_7 = arith.constant 0 : index
    %8 = vector.load %arg7[%c0_6, %c0_7] : memref<8x256xf32, #tpu.memory_space<vmem>>, vector<8x256xf32>
    tpu.vector_store %arg7[%c0_6, %c0_7], %7 {strides = array<i32>} : memref<8x256xf32, #tpu.memory_space<vmem>>, vector<8x256xf32>,
    %c0_i32_8 = arith.constant 0 : i32
    %9 = arith.cmpi eq, %arg2, %c0_i32_8 : i32
    %10 = arith.extui %9 : i1 to i32
    %c0_i32_9 = arith.constant 0 : i32
    %11 = arith.cmpi ne, %10, %c0_i32_9 : i32
    scf.if %11 {
      %c0_10 = arith.constant 0 : index
      %c0_11 = arith.constant 0 : index
      %12 = vector.load %arg7[%c0_10, %c0_11] : memref<8x256xf32, #tpu.memory_space<vmem>>, vector<8x256xf32>
      %c0_12 = arith.constant 0 : index
      %c0_13 = arith.constant 0 : index
      %13 = vector.load %arg5[%c0_12, %c0_13] : memref<1x256xf32, #tpu.memory_space<vmem>>, vector<1x256xf32>
      %14 = vector.broadcast %13 : vector<1x256xf32> to vector<8x256xf32>
      %15 = arith.addf %12, %14 : vector<8x256xf32>
      %c0_14 = arith.constant 0 : index
      %c0_15 = arith.constant 0 : index
      %16 = vector.load %arg6[%c0_14, %c0_15] : memref<8x256xf32, #tpu.memory_space<vmem>>, vector<8x256xf32>
      tpu.vector_store %arg6[%c0_14, %c0_15], %15 {strides = array<i32>} : memref<8x256xf32, #tpu.memory_space<vmem>>, vector<8x256xf32>,
    } else {
    }
    return
  }
  func.func @transform_0(%arg0: i32, %arg1: i32, %arg2: i32) -> (i32, i32) {
    %c0_i32 = arith.constant 0 : i32
    return %arg0, %arg2 : i32, i32
  }
  func.func @transform_1(%arg0: i32, %arg1: i32, %arg2: i32) -> (i32, i32) {
    %c0_i32 = arith.constant 0 : i32
    return %arg2, %arg1 : i32, i32
  }
  func.func @transform_2(%arg0: i32, %arg1: i32, %arg2: i32) -> (i32, i32) {
    %c0_i32 = arith.constant 0 : i32
    %c0_i32_0 = arith.constant 0 : i32
    return %c0_i32, %arg1 : i32, i32
  }
  func.func @transform_3(%arg0: i32, %arg1: i32, %arg2: i32) -> (i32, i32) {
    %c0_i32 = arith.constant 0 : i32
    return %arg0, %arg1 : i32, i32
  }
}

</mosaic_0001>

<bundles_post_ra>
// kernel: encoder_forward.25
= control target key start
LH: loop header
LB: loop body
LE: loop exit
PB: predicated region body
PF: predicated region fallthrough
CT: control target
= control target key end

     0   :  { %s134_s0 = inlined_call_operand.vmem [shape: f32[8,128], index: 0, kind: input, shape index: {}]   ;;  %s135_s1 = inlined_call_operand.vmem [shape: f32[8,128], index: 1, kind: input, shape index: {}]   ;;  %s136_s2 = inlined_call_operand.vmem [shape: f32[8,128], index: 2, kind: input, shape index: {}]   ;;  %s137_s3 = inlined_call_operand.vmem [shape: f32[8,128], index: 3, kind: input, shape index: {}]   ;;  %s138_s4 = inlined_call_operand.vmem [shape: f32[8,128], index: 4, kind: input, shape index: {}]   ;;  %s139_s5 = inlined_call_operand.vmem [shape: f32[8,128], index: 5, kind: input, shape index: {}]   ;;  %s140_s6 = inlined_call_operand.vmem [shape: f32[8,128], index: 6, kind: input, shape index: {}]   ;;  %s141_s7 = inlined_call_operand.vmem [shape: f32[8,128], index: 7, kind: input, shape index: {}]   ;;  %s142_s8 = inlined_call_operand.vmem [shape: f32[8,128], index: 8, kind: input, shape index: {}]   ;;  %s143_s9 = inlined_call_operand.vmem [shape: f32[8,128], index: 9, kind: output, shape index: {}]  }
   0x1   :  { %v32_v0 = vld [vmem:[%s134_s0] sm:$0xff] }
   0x2   :  { %v33_v1 = vld [vmem:[%s135_s1] sm:$0xff] }
   0x3   :  { %v35_v2 = vld [vmem:[%s136_s2] sm:$0xff]  ;;  %v34_v3 = vmax.f32 %v32_v0, %v33_v1 }
   0x4   :  { %v37_v4 = vld [vmem:[%s137_s3] sm:$0xff] }
   0x5   :  { %v36_v5 = vmax.f32 %v34_v3, %v35_v2  ;;  %v39_v6 = vld [vmem:[%s138_s4] sm:$0xff] }
   0x6   :  { %v41_v8 = vld [vmem:[%s139_s5] sm:$0xff] }
   0x7   :  { %v38_v7 = vmax.f32 %v36_v5, %v37_v4  ;;  %v43_v10 = vld [vmem:[%s140_s6] sm:$0xff] }
   0x8   :  { %v45_v12 = vld [vmem:[%s141_s7] sm:$0xff] }
   0x9   :  { %v40_v9 = vmax.f32 %v38_v7, %v39_v6  ;;  %v47_v14 = vld [vmem:[%s142_s8] sm:$0xff] }
   0xb   :  { %v42_v11 = vmax.f32 %v40_v9, %v41_v8 }
   0xd   :  { %v44_v13 = vmax.f32 %v42_v11, %v43_v10 }
   0xf   :  { %v46_v15 = vmax.f32 %v44_v13, %v45_v12 }
  0x11   :  { %v48_v16 = vmax.f32 %v46_v15, %v47_v14 }
  0x13   :  { %49 = vst [vmem:[%s143_s9] sm:$0xff] %v48_v16 }

// kernel: encoder_forward.24
= control target key start
LH: loop header
LB: loop body
LE: loop exit
PB: predicated region body
PF: predicated region fallthrough
CT: control target
= control target key end

     0   :  { %s1457_s12 = smov 0   ;;  %s1459_s13 = smov 0   ;;  %s1650_s0 = inlined_call_operand.vmem [shape: bf16[512,256], index: 0, kind: input, shape index: {}]   ;;  %s1651_s1 = inlined_call_operand.vmem [shape: bf16[256,128], index: 1, kind: input, shape index: {}]   ;;  %s1652_s2 = inlined_call_operand.vmem [shape: f32[1,128], index: 2, kind: input, shape index: {}]   ;;  %s1653_s3 = inlined_call_operand.vmem [shape: f32[512,128], index: 3, kind: output, shape index: {}]  }
   0x1   :  { %s1461_s14 = smov 0  }
   0x2 LB: > { %s32_s15 = sadd.s32 1, %s1431_s13  ;;  %p1139_p0 = scmp.ge.s32.totalorder %s1435_s14, 1  ;;  %s1435_s14 = sphi %s1461_s14, %s13_s14   ;;  %s1431_s13 = sphi %s1459_s13, %s1655_s13   ;;  %s1427_s12 = sphi %s1457_s12, %s1654_s12  }
   0x3   : > { %p34_p1 = scmp.ge.s32.totalorder %s32_s15, 2  ;;  %p191_p2 = scmp.lt.s32.totalorder %s1435_s14, 3 }
   0x5   : > { %s1657_s15 = smov (%p34_p1, %s32_s15), 0  ;;  %p192_p3 = pnand %p1139_p0, %p191_p2 }
   0x6   : > { %v1349_v0 = vld [vmem:[%s1651_s1 + $0x40] sm:$0xff] (!%p192_p3)   ;;  %s1140_s18 = sshll.u32 (!%p192_p3), %s1427_s12, 5  ;;  %v1351_v2 = vld [vmem:[%s1651_s1 + $0x48] sm:$0xff] (!%p192_p3)   ;;  %v1353_v4 = vld [vmem:[%s1651_s1 + $0x50] sm:$0xff] (!%p192_p3)  }
   0x7   : > { %195 = sbr.rel (%p192_p3) target bundleno = 317 (0x13d), region = 32  ;;  %v1350_v1 = vld [vmem:[%s1651_s1] sm:$0xff] (!%p192_p3)   ;;  %1197 = vmatprep.subr.bf16.mxu0 (!%p192_p3), %v1349_v0  ;;  %1309 = vmatprep.subr.bf16.mxu1 (!%p192_p3), %v1349_v0  ;;  %v1352_v3 = vld [vmem:[%s1651_s1 + $0x8] sm:$0xff] (!%p192_p3)   ;;  %p236_p4 = scmp.lt.s32.totalorder (!%p192_p3), %s1140_s18, 63  ;;  %v1354_v5 = vld [vmem:[%s1651_s1 + $0x10] sm:$0xff] (!%p192_p3)  }
   0x8   : > { %1198 = vmatpush3.bf16.msra.mxu0 (!%p192_p3), %v1350_v1  ;;  %1317 = vmatpush3.bf16.msra.mxu1 (!%p192_p3), %v1350_v1  ;;  %v1355_v6 = vld [vmem:[%s1651_s1 + $0x58] sm:$0xff] (!%p192_p3)   ;;  %v1357_v8 = vld [vmem:[%s1651_s1 + $0x60] sm:$0xff] (!%p192_p3)   ;;  %v1359_v10 = vld [vmem:[%s1651_s1 + $0x68] sm:$0xff] (!%p192_p3)  }
   0x9   : > { %1199 = vmatprep.subr.bf16.mxu0 (!%p192_p3), %v1351_v2  ;;  %1310 = vmatprep.subr.bf16.mxu1 (!%p192_p3), %v1351_v2  ;;  %v1356_v7 = vld [vmem:[%s1651_s1 + $0x18] sm:$0xff] (!%p192_p3)   ;;  %v1358_v9 = vld [vmem:[%s1651_s1 + $0x20] sm:$0xff] (!%p192_p3)   ;;  %v1360_v13 = vld [vmem:[%s1651_s1 + $0x28] sm:$0xff] (!%p192_p3)  }
   0xa   : > { %v1361_v14 = vld [vmem:[%s1651_s1 + $0x70] sm:$0xff] (!%p192_p3)   ;;  %v1363_v16 = vld [vmem:[%s1651_s1 + $0x78] sm:$0xff] (!%p192_p3)   ;;  %v1568_v51 = vld [vmem:[%s1652_s2] ss:$0 sm:$0xff] (!%p192_p3) }
   0xb   : > { %v1362_v15 = vld [vmem:[%s1651_s1 + $0x30] sm:$0xff] (!%p192_p3)   ;;  %v1364_v17 = vld [vmem:[%s1651_s1 + $0x38] sm:$0xff] (!%p192_p3)  }
   0xc   : > { %1200 = vmatpush3.bf16.msra.mxu0 (!%p192_p3), %v1352_v3  ;;  %1318 = vmatpush3.bf16.msra.mxu1 (!%p192_p3), %v1352_v3 }
   0xd   : > { %1201 = vmatprep.subr.bf16.mxu0 (!%p192_p3), %v1353_v4  ;;  %1311 = vmatprep.subr.bf16.mxu1 (!%p192_p3), %v1353_v4 }
   0xe   : > { %s1659_s18 = smov (!%p236_p4, %s1140_s18), 63 }
   0xf   : > { %s1196_s6 = sshll.u32 %s1659_s18, 3 }
  0x10   : > { %1202 = vmatpush3.bf16.msra.mxu0 %v1354_v5  ;;  %1319 = vmatpush3.bf16.msra.mxu1 %v1354_v5  ;;  %s1510_s11 = scalar_lea.vmem %s1650_s0, %s1196_s6  ;;  %s1577_s8 = scalar_lea.vmem %s1653_s3, %s1196_s6 }
  0x11   : > { %1203 = vmatprep.subr.bf16.mxu0 %v1355_v6  ;;  %1312 = vmatprep.subr.bf16.mxu1 %v1355_v6  ;;  %v1367_v11 = vld [vmem:[%s1510_s11 + $0x4] ss:$8 sps:$4 sm:$0xff]   ;;  %v1365_v18 = vld [vmem:[%s1510_s11] ss:$8 sps:$4 sm:$0xff]   ;;  %v1371_v20 = vld [vmem:[%s1510_s11 + $0x14] ss:$8 sps:$4 sm:$0xff]  }
  0x12   : > { %v1370_v12 = vld [vmem:[%s1510_s11 + $0x84] ss:$8 sps:$4 sm:$0xff]   ;;  %688 = vmatprep.mubr.bf16.mxu0 %v1367_v11  ;;  %v1368_v19 = vld [vmem:[%s1510_s11 + $0x80] ss:$8 sps:$4 sm:$0xff]   ;;  %v1373_v21 = vld [vmem:[%s1510_s11 + $0x94] ss:$8 sps:$4 sm:$0xff]  }
  0x13   : > { %752 = vmatprep.mubr.bf16.mxu1 %v1370_v12  ;;  %v1375_v22 = vld [vmem:[%s1510_s11 + $0x10] ss:$8 sps:$4 sm:$0xff]   ;;  %v1377_v24 = vld [vmem:[%s1510_s11 + $0x24] ss:$8 sps:$4 sm:$0xff]   ;;  %v1381_v26 = vld [vmem:[%s1510_s11 + $0x20] ss:$8 sps:$4 sm:$0xff]  }
  0x14   : > { %1204 = vmatpush3.bf16.msra.mxu0 %v1356_v7  ;;  %1320 = vmatpush3.bf16.msra.mxu1 %v1356_v7  ;;  %v1376_v23 = vld [vmem:[%s1510_s11 + $0x90] ss:$8 sps:$4 sm:$0xff]   ;;  %v1379_v25 = vld [vmem:[%s1510_s11 + $0xa4] ss:$8 sps:$4 sm:$0xff]   ;;  %v1382_v27 = vld [vmem:[%s1510_s11 + $0xa0] ss:$8 sps:$4 sm:$0xff]  }
  0x15   : > { %1205 = vmatprep.subr.bf16.mxu0 %v1357_v8  ;;  %1313 = vmatprep.subr.bf16.mxu1 %v1357_v8  ;;  %v1383_v28 = vld [vmem:[%s1510_s11 + $0x34] ss:$8 sps:$4 sm:$0xff]   ;;  %v1387_v30 = vld [vmem:[%s1510_s11 + $0x30] ss:$8 sps:$4 sm:$0xff]   ;;  %v1389_v32 = vld [vmem:[%s1510_s11 + $0x44] ss:$8 sps:$4 sm:$0xff]  }
  0x16   : > { %v1385_v29 = vld [vmem:[%s1510_s11 + $0xb4] ss:$8 sps:$4 sm:$0xff]   ;;  %v1388_v31 = vld [vmem:[%s1510_s11 + $0xb0] ss:$8 sps:$4 sm:$0xff]   ;;  %v1391_v33 = vld [vmem:[%s1510_s11 + $0xc4] ss:$8 sps:$4 sm:$0xff]  }
  0x17   : > { %v1393_v34 = vld [vmem:[%s1510_s11 + $0x40] ss:$8 sps:$4 sm:$0xff]   ;;  %v1395_v36 = vld [vmem:[%s1510_s11 + $0x54] ss:$8 sps:$4 sm:$0xff]   ;;  %v1399_v38 = vld [vmem:[%s1510_s11 + $0x50] ss:$8 sps:$4 sm:$0xff]  }
  0x18   : > { %1206 = vmatpush3.bf16.msra.mxu0 %v1358_v9  ;;  %1321 = vmatpush3.bf16.msra.mxu1 %v1358_v9  ;;  %v1394_v35 = vld [vmem:[%s1510_s11 + $0xc0] ss:$8 sps:$4 sm:$0xff]   ;;  %v1397_v37 = vld [vmem:[%s1510_s11 + $0xd4] ss:$8 sps:$4 sm:$0xff]   ;;  %v1400_v39 = vld [vmem:[%s1510_s11 + $0xd0] ss:$8 sps:$4 sm:$0xff]  }
  0x19   : > { %1207 = vmatprep.subr.bf16.mxu0 %v1359_v10  ;;  %1314 = vmatprep.subr.bf16.mxu1 %v1359_v10  ;;  %v1401_v40 = vld [vmem:[%s1510_s11 + $0x64] ss:$8 sps:$4 sm:$0xff]   ;;  %v1405_v42 = vld [vmem:[%s1510_s11 + $0x60] ss:$8 sps:$4 sm:$0xff]   ;;  %v1407_v44 = vld [vmem:[%s1510_s11 + $0x74] ss:$8 sps:$4 sm:$0xff]  }
  0x1a   : > { %v1403_v41 = vld [vmem:[%s1510_s11 + $0xe4] ss:$8 sps:$4 sm:$0xff]   ;;  %v1406_v43 = vld [vmem:[%s1510_s11 + $0xe0] ss:$8 sps:$4 sm:$0xff]   ;;  %v1409_v45 = vld [vmem:[%s1510_s11 + $0xf4] ss:$8 sps:$4 sm:$0xff]  }
  0x1b   : > { %v1411_v46 = vld [vmem:[%s1510_s11 + $0x70] ss:$8 sps:$4 sm:$0xff]  }
  0x1c   : > { %1208 = vmatpush3.bf16.msra.mxu0 %v1360_v13  ;;  %1322 = vmatpush3.bf16.msra.mxu1 %v1360_v13  ;;  %v1412_v47 = vld [vmem:[%s1510_s11 + $0xf0] ss:$8 sps:$4 sm:$0xff]  }
  0x1d   : > { %1209 = vmatprep.subr.bf16.mxu0 %v1361_v14  ;;  %1315 = vmatprep.subr.bf16.mxu1 %v1361_v14 }
  0x20   : > { %1210 = vmatpush3.bf16.msra.mxu0 %v1362_v15  ;;  %1323 = vmatpush3.bf16.msra.mxu1 %v1362_v15 }
  0x21   : > { %1211 = vmatprep.subr.bf16.mxu0 %v1363_v16  ;;  %1316 = vmatprep.subr.bf16.mxu1 %v1363_v16 }
  0x24   : > { %1212 = vmatpush3.bf16.msra.mxu0 %v1364_v17  ;;  %1324 = vmatpush3.bf16.msra.mxu1 %v1364_v17 }
  0x27   : > { %689 = vmatmul.mubr.bf16.vlgmr.msra.gmra.mrb[0].mxu0 %v1365_v18  ;;  %753 = vmatmul.mubr.bf16.vlgmr.msra.gmra.mrb[0].mxu1 %v1368_v19 }
  0x28   : > { %696 = vmatprep.mubr.bf16.mxu0 %v1371_v20  ;;  %760 = vmatprep.mubr.bf16.mxu1 %v1373_v21 }
  0x2f   : > { %697 = vmatmul.mubr.bf16.gmra.mrb[4].mxu0 %v1375_v22  ;;  %761 = vmatmul.mubr.bf16.gmra.mrb[4].mxu1 %v1376_v23 }
  0x30   : > { %704 = vmatprep.mubr.bf16.mxu0 %v1377_v24  ;;  %768 = vmatprep.mubr.bf16.mxu1 %v1379_v25 }
  0x37   : > { %705 = vmatmul.mubr.bf16.gmra.mrb[8].mxu0 %v1381_v26  ;;  %769 = vmatmul.mubr.bf16.gmra.mrb[8].mxu1 %v1382_v27 }
  0x38   : > { %712 = vmatprep.mubr.bf16.mxu0 %v1383_v28  ;;  %776 = vmatprep.mubr.bf16.mxu1 %v1385_v29 }
  0x3f   : > { %713 = vmatmul.mubr.bf16.gmra.mrb[12].mxu0 %v1387_v30  ;;  %777 = vmatmul.mubr.bf16.gmra.mrb[12].mxu1 %v1388_v31 }
  0x40   : > { %720 = vmatprep.mubr.bf16.mxu0 %v1389_v32  ;;  %784 = vmatprep.mubr.bf16.mxu1 %v1391_v33 }
  0x47   : > { %721 = vmatmul.mubr.bf16.gmra.mrb[16].mxu0 %v1393_v34  ;;  %785 = vmatmul.mubr.bf16.gmra.mrb[16].mxu1 %v1394_v35 }
  0x48   : > { %728 = vmatprep.mubr.bf16.mxu0 %v1395_v36  ;;  %792 = vmatprep.mubr.bf16.mxu1 %v1397_v37 }
  0x4f   : > { %729 = vmatmul.mubr.bf16.gmra.mrb[20].mxu0 %v1399_v38  ;;  %793 = vmatmul.mubr.bf16.gmra.mrb[20].mxu1 %v1400_v39 }
  0x50   : > { %736 = vmatprep.mubr.bf16.mxu0 %v1401_v40  ;;  %800 = vmatprep.mubr.bf16.mxu1 %v1403_v41 }
  0x57   : > { %737 = vmatmul.mubr.bf16.gmra.mrb[24].mxu0 %v1405_v42  ;;  %801 = vmatmul.mubr.bf16.gmra.mrb[24].mxu1 %v1406_v43 }
  0x58   : > { %744 = vmatprep.mubr.bf16.mxu0 %v1407_v44  ;;  %808 = vmatprep.mubr.bf16.mxu1 %v1409_v45 }
  0x5f   : > { %745 = vmatmul.mubr.bf16.gmra.mrb[28].mxu0 %v1411_v46  ;;  %809 = vmatmul.mubr.bf16.gmra.mrb[28].mxu1 %v1412_v47 }
  0xfa   : > { %v1213_v48 = vpop.f32.mrb[0].mxu0  ;;  %v1261_v49 = vpop.f32.mrb[0].mxu1 }
  0xfb   : > { %v1214_v50 = vpop.f32.mrb[1].mxu0  ;;  %v1262_v52 = vpop.f32.mrb[1].mxu1 }
  0xfc   : > { %v1215_v53 = vadd.f32 %v1214_v50, %v1213_v48  ;;  %v1263_v54 = vadd.f32 %v1262_v52, %v1261_v49  ;;  %v1216_v55 = vpop.f32.mrb[2].mxu0  ;;  %v1264_v56 = vpop.f32.mrb[2].mxu1 }
  0xfd   : > { %v1217_v57 = vpop.f32.mrb[3].mxu0  ;;  %v1265_v58 = vpop.f32.mrb[3].mxu1 }
  0xfe   : > { %v923_v59 = vadd.f32 %v1215_v53, %v1568_v51  ;;  %v939_v60 = vadd.f32 %v1263_v54, %v1568_v51  ;;  %v1218_v61 = vadd.f32 %v1217_v57, %v1216_v55  ;;  %v1266_v62 = vadd.f32 %v1265_v58, %v1264_v56 }
 0x100   : > { %v955_v63 = vmax.f32 %v923_v59, 0.0  ;;  %v971_v0 = vmax.f32 %v939_v60, 0.0  ;;  %v924_v1 = vadd.f32 %v1218_v61, %v1568_v51  ;;  %v940_v2 = vadd.f32 %v1266_v62, %v1568_v51 }
 0x102   : > { %987 = vst [vmem:[%s1577_s8] sm:$0xff] %v955_v63  ;;  %1003 = vst [vmem:[%s1577_s8 + $0x80] sm:$0xff] %v971_v0  ;;  %v956_v3 = vmax.f32 %v924_v1, 0.0  ;;  %v972_v4 = vmax.f32 %v940_v2, 0.0  ;;  %v1219_v5 = vpop.f32.mrb[4].mxu0  ;;  %v1267_v6 = vpop.f32.mrb[4].mxu1 }
 0x103   : > { %v1220_v7 = vpop.f32.mrb[5].mxu0  ;;  %v1268_v8 = vpop.f32.mrb[5].mxu1 }
 0x104   : > { %988 = vst [vmem:[%s1577_s8 + $0x8] sm:$0xff] %v956_v3  ;;  %1004 = vst [vmem:[%s1577_s8 + $0x88] sm:$0xff] %v972_v4  ;;  %v1221_v9 = vadd.f32 %v1220_v7, %v1219_v5  ;;  %v1269_v10 = vadd.f32 %v1268_v8, %v1267_v6  ;;  %v1222_v11 = vpop.f32.mrb[6].mxu0  ;;  %v1270_v12 = vpop.f32.mrb[6].mxu1 }
 0x105   : > { %v1223_v13 = vpop.f32.mrb[7].mxu0  ;;  %v1271_v14 = vpop.f32.mrb[7].mxu1 }
 0x106   : > { %v925_v15 = vadd.f32 %v1221_v9, %v1568_v51  ;;  %v941_v16 = vadd.f32 %v1269_v10, %v1568_v51  ;;  %v1224_v17 = vadd.f32 %v1223_v13, %v1222_v11  ;;  %v1272_v18 = vadd.f32 %v1271_v14, %v1270_v12 }
 0x108   : > { %v957_v19 = vmax.f32 %v925_v15, 0.0  ;;  %v973_v20 = vmax.f32 %v941_v16, 0.0  ;;  %v926_v21 = vadd.f32 %v1224_v17, %v1568_v51  ;;  %v942_v22 = vadd.f32 %v1272_v18, %v1568_v51 }
 0x10a   : > { %989 = vst [vmem:[%s1577_s8 + $0x10] sm:$0xff] %v957_v19  ;;  %1005 = vst [vmem:[%s1577_s8 + $0x90] sm:$0xff] %v973_v20  ;;  %v958_v23 = vmax.f32 %v926_v21, 0.0  ;;  %v974_v24 = vmax.f32 %v942_v22, 0.0  ;;  %v1225_v25 = vpop.f32.mrb[8].mxu0  ;;  %v1273_v26 = vpop.f32.mrb[8].mxu1 }
 0x10b   : > { %v1226_v27 = vpop.f32.mrb[9].mxu0  ;;  %v1274_v28 = vpop.f32.mrb[9].mxu1 }
 0x10c   : > { %990 = vst [vmem:[%s1577_s8 + $0x18] sm:$0xff] %v958_v23  ;;  %1006 = vst [vmem:[%s1577_s8 + $0x98] sm:$0xff] %v974_v24  ;;  %v1227_v29 = vadd.f32 %v1226_v27, %v1225_v25  ;;  %v1275_v30 = vadd.f32 %v1274_v28, %v1273_v26  ;;  %v1228_v31 = vpop.f32.mrb[10].mxu0  ;;  %v1276_v32 = vpop.f32.mrb[10].mxu1 }
 0x10d   : > { %v1229_v33 = vpop.f32.mrb[11].mxu0  ;;  %v1277_v34 = vpop.f32.mrb[11].mxu1 }
 0x10e   : > { %v927_v35 = vadd.f32 %v1227_v29, %v1568_v51  ;;  %v943_v36 = vadd.f32 %v1275_v30, %v1568_v51  ;;  %v1230_v37 = vadd.f32 %v1229_v33, %v1228_v31  ;;  %v1278_v38 = vadd.f32 %v1277_v34, %v1276_v32 }
 0x110   : > { %v959_v39 = vmax.f32 %v927_v35, 0.0  ;;  %v975_v40 = vmax.f32 %v943_v36, 0.0  ;;  %v928_v41 = vadd.f32 %v1230_v37, %v1568_v51  ;;  %v944_v42 = vadd.f32 %v1278_v38, %v1568_v51 }
 0x112   : > { %991 = vst [vmem:[%s1577_s8 + $0x20] sm:$0xff] %v959_v39  ;;  %1007 = vst [vmem:[%s1577_s8 + $0xa0] sm:$0xff] %v975_v40  ;;  %v960_v43 = vmax.f32 %v928_v41, 0.0  ;;  %v976_v44 = vmax.f32 %v944_v42, 0.0  ;;  %v1231_v45 = vpop.f32.mrb[12].mxu0  ;;  %v1279_v46 = vpop.f32.mrb[12].mxu1 }
 0x113   : > { %v1232_v47 = vpop.f32.mrb[13].mxu0  ;;  %v1280_v48 = vpop.f32.mrb[13].mxu1 }
 0x114   : > { %992 = vst [vmem:[%s1577_s8 + $0x28] sm:$0xff] %v960_v43  ;;  %1008 = vst [vmem:[%s1577_s8 + $0xa8] sm:$0xff] %v976_v44  ;;  %v1233_v49 = vadd.f32 %v1232_v47, %v1231_v45  ;;  %v1281_v50 = vadd.f32 %v1280_v48, %v1279_v46  ;;  %v1234_v52 = vpop.f32.mrb[14].mxu0  ;;  %v1282_v53 = vpop.f32.mrb[14].mxu1 }
 0x115   : > { %v1235_v54 = vpop.f32.mrb[15].mxu0  ;;  %v1283_v55 = vpop.f32.mrb[15].mxu1 }
 0x116   : > { %v929_v56 = vadd.f32 %v1233_v49, %v1568_v51  ;;  %v945_v57 = vadd.f32 %v1281_v50, %v1568_v51  ;;  %v1236_v58 = vadd.f32 %v1235_v54, %v1234_v52  ;;  %v1284_v59 = vadd.f32 %v1283_v55, %v1282_v53 }
 0x118   : > { %v961_v60 = vmax.f32 %v929_v56, 0.0  ;;  %v977_v61 = vmax.f32 %v945_v57, 0.0  ;;  %v930_v62 = vadd.f32 %v1236_v58, %v1568_v51  ;;  %v946_v63 = vadd.f32 %v1284_v59, %v1568_v51 }
 0x11a   : > { %993 = vst [vmem:[%s1577_s8 + $0x30] sm:$0xff] %v961_v60  ;;  %1009 = vst [vmem:[%s1577_s8 + $0xb0] sm:$0xff] %v977_v61  ;;  %v962_v0 = vmax.f32 %v930_v62, 0.0  ;;  %v978_v1 = vmax.f32 %v946_v63, 0.0  ;;  %v1237_v2 = vpop.f32.mrb[16].mxu0  ;;  %v1285_v3 = vpop.f32.mrb[16].mxu1 }
 0x11b   : > { %v1238_v4 = vpop.f32.mrb[17].mxu0  ;;  %v1286_v5 = vpop.f32.mrb[17].mxu1 }
 0x11c   : > { %994 = vst [vmem:[%s1577_s8 + $0x38] sm:$0xff] %v962_v0  ;;  %1010 = vst [vmem:[%s1577_s8 + $0xb8] sm:$0xff] %v978_v1  ;;  %v1239_v6 = vadd.f32 %v1238_v4, %v1237_v2  ;;  %v1287_v7 = vadd.f32 %v1286_v5, %v1285_v3  ;;  %v1240_v8 = vpop.f32.mrb[18].mxu0  ;;  %v1288_v9 = vpop.f32.mrb[18].mxu1 }
 0x11d   : > { %v1241_v10 = vpop.f32.mrb[19].mxu0  ;;  %v1289_v11 = vpop.f32.mrb[19].mxu1 }
 0x11e   : > { %v931_v12 = vadd.f32 %v1239_v6, %v1568_v51  ;;  %v947_v13 = vadd.f32 %v1287_v7, %v1568_v51  ;;  %v1242_v14 = vadd.f32 %v1241_v10, %v1240_v8  ;;  %v1290_v15 = vadd.f32 %v1289_v11, %v1288_v9 }
 0x120   : > { %v963_v16 = vmax.f32 %v931_v12, 0.0  ;;  %v979_v17 = vmax.f32 %v947_v13, 0.0  ;;  %v932_v18 = vadd.f32 %v1242_v14, %v1568_v51  ;;  %v948_v19 = vadd.f32 %v1290_v15, %v1568_v51 }
 0x122   : > { %995 = vst [vmem:[%s1577_s8 + $0x40] sm:$0xff] %v963_v16  ;;  %1011 = vst [vmem:[%s1577_s8 + $0xc0] sm:$0xff] %v979_v17  ;;  %v964_v20 = vmax.f32 %v932_v18, 0.0  ;;  %v980_v21 = vmax.f32 %v948_v19, 0.0  ;;  %v1243_v22 = vpop.f32.mrb[20].mxu0  ;;  %v1291_v23 = vpop.f32.mrb[20].mxu1 }
 0x123   : > { %v1244_v24 = vpop.f32.mrb[21].mxu0  ;;  %v1292_v25 = vpop.f32.mrb[21].mxu1 }
 0x124   : > { %996 = vst [vmem:[%s1577_s8 + $0x48] sm:$0xff] %v964_v20  ;;  %1012 = vst [vmem:[%s1577_s8 + $0xc8] sm:$0xff] %v980_v21  ;;  %v1245_v26 = vadd.f32 %v1244_v24, %v1243_v22  ;;  %v1293_v27 = vadd.f32 %v1292_v25, %v1291_v23  ;;  %v1246_v28 = vpop.f32.mrb[22].mxu0  ;;  %v1294_v29 = vpop.f32.mrb[22].mxu1 }
 0x125   : > { %v1247_v30 = vpop.f32.mrb[23].mxu0  ;;  %v1295_v31 = vpop.f32.mrb[23].mxu1 }
 0x126   : > { %v933_v32 = vadd.f32 %v1245_v26, %v1568_v51  ;;  %v949_v33 = vadd.f32 %v1293_v27, %v1568_v51  ;;  %v1248_v34 = vadd.f32 %v1247_v30, %v1246_v28  ;;  %v1296_v35 = vadd.f32 %v1295_v31, %v1294_v29 }
 0x128   : > { %v965_v36 = vmax.f32 %v933_v32, 0.0  ;;  %v981_v37 = vmax.f32 %v949_v33, 0.0  ;;  %v934_v38 = vadd.f32 %v1248_v34, %v1568_v51  ;;  %v950_v39 = vadd.f32 %v1296_v35, %v1568_v51 }
 0x12a   : > { %997 = vst [vmem:[%s1577_s8 + $0x50] sm:$0xff] %v965_v36  ;;  %1013 = vst [vmem:[%s1577_s8 + $0xd0] sm:$0xff] %v981_v37  ;;  %v966_v40 = vmax.f32 %v934_v38, 0.0  ;;  %v982_v41 = vmax.f32 %v950_v39, 0.0  ;;  %v1249_v42 = vpop.f32.mrb[24].mxu0  ;;  %v1297_v43 = vpop.f32.mrb[24].mxu1 }
 0x12b   : > { %v1250_v44 = vpop.f32.mrb[25].mxu0  ;;  %v1298_v45 = vpop.f32.mrb[25].mxu1 }
 0x12c   : > { %998 = vst [vmem:[%s1577_s8 + $0x58] sm:$0xff] %v966_v40  ;;  %1014 = vst [vmem:[%s1577_s8 + $0xd8] sm:$0xff] %v982_v41  ;;  %v1251_v46 = vadd.f32 %v1250_v44, %v1249_v42  ;;  %v1299_v47 = vadd.f32 %v1298_v45, %v1297_v43  ;;  %v1252_v48 = vpop.f32.mrb[26].mxu0  ;;  %v1300_v49 = vpop.f32.mrb[26].mxu1 }
 0x12d   : > { %v1253_v50 = vpop.f32.mrb[27].mxu0  ;;  %v1301_v52 = vpop.f32.mrb[27].mxu1 }
 0x12e   : > { %v935_v53 = vadd.f32 %v1251_v46, %v1568_v51  ;;  %v951_v54 = vadd.f32 %v1299_v47, %v1568_v51  ;;  %v1254_v55 = vadd.f32 %v1253_v50, %v1252_v48  ;;  %v1302_v56 = vadd.f32 %v1301_v52, %v1300_v49 }
 0x130   : > { %v967_v57 = vmax.f32 %v935_v53, 0.0  ;;  %v983_v58 = vmax.f32 %v951_v54, 0.0  ;;  %v936_v59 = vadd.f32 %v1254_v55, %v1568_v51  ;;  %v952_v60 = vadd.f32 %v1302_v56, %v1568_v51 }
 0x132   : > { %999 = vst [vmem:[%s1577_s8 + $0x60] sm:$0xff] %v967_v57  ;;  %1015 = vst [vmem:[%s1577_s8 + $0xe0] sm:$0xff] %v983_v58  ;;  %v968_v61 = vmax.f32 %v936_v59, 0.0  ;;  %v984_v62 = vmax.f32 %v952_v60, 0.0  ;;  %v1255_v63 = vpop.f32.mrb[28].mxu0  ;;  %v1303_v0 = vpop.f32.mrb[28].mxu1 }
 0x133   : > { %v1256_v1 = vpop.f32.mrb[29].mxu0  ;;  %v1304_v2 = vpop.f32.mrb[29].mxu1 }
 0x134   : > { %1000 = vst [vmem:[%s1577_s8 + $0x68] sm:$0xff] %v968_v61  ;;  %1016 = vst [vmem:[%s1577_s8 + $0xe8] sm:$0xff] %v984_v62  ;;  %v1257_v3 = vadd.f32 %v1256_v1, %v1255_v63  ;;  %v1305_v4 = vadd.f32 %v1304_v2, %v1303_v0  ;;  %v1258_v5 = vpop.f32.mrb[30].mxu0  ;;  %v1306_v6 = vpop.f32.mrb[30].mxu1 }
 0x135   : > { %v1259_v7 = vpop.f32.mrb[31].mxu0  ;;  %v1307_v8 = vpop.f32.mrb[31].mxu1 }
 0x136   : > { %v937_v9 = vadd.f32 %v1257_v3, %v1568_v51  ;;  %v953_v10 = vadd.f32 %v1305_v4, %v1568_v51  ;;  %v1260_v11 = vadd.f32 %v1259_v7, %v1258_v5  ;;  %v1308_v12 = vadd.f32 %v1307_v8, %v1306_v6 }
 0x138   : > { %v969_v13 = vmax.f32 %v937_v9, 0.0  ;;  %v985_v14 = vmax.f32 %v953_v10, 0.0  ;;  %v938_v15 = vadd.f32 %v1260_v11, %v1568_v51  ;;  %v954_v16 = vadd.f32 %v1308_v12, %v1568_v51 }
 0x13a   : > { %1001 = vst [vmem:[%s1577_s8 + $0x70] sm:$0xff] %v969_v13  ;;  %1017 = vst [vmem:[%s1577_s8 + $0xf0] sm:$0xff] %v985_v14  ;;  %v970_v17 = vmax.f32 %v938_v15, 0.0  ;;  %v986_v18 = vmax.f32 %v954_v16, 0.0 }
 0x13c   : > { %1002 = vst [vmem:[%s1577_s8 + $0x78] sm:$0xff] %v970_v17  ;;  %1018 = vst [vmem:[%s1577_s8 + $0xf8] sm:$0xff] %v986_v18 }
 0x13d PF: > { %s13_s14 = sadd.s32 1, %s1435_s14   ;;  %s1654_s12 = smov %s1431_s13 }
 0x13e   : > { %p10_p5 = scmp.ge.s32.totalorder %s13_s14, 4   ;;  %s1655_s13 = smov %s1657_s15 }
 0x140   :  { %12 = sbr.rel (!%p10_p5) target bundleno = 2 (0x2), region = 76 }

// kernel: encoder_forward.28
= control target key start
LH: loop header
LB: loop body
LE: loop exit
PB: predicated region body
PF: predicated region fallthrough
CT: control target
= control target key end

     0   :  { %s1004_s1 = inlined_call_operand.vmem [shape: bf16[128,128], index: 1, kind: input, shape index: {}]   ;;  %s1005_s0 = inlined_call_operand.vmem [shape: bf16[256,128], index: 0, kind: input, shape index: {}]   ;;  %s1006_s2 = inlined_call_operand.vmem [shape: f32[1,128], index: 2, kind: input, shape index: {}]   ;;  %s1007_s3 = inlined_call_operand.vmem [shape: f32[256,128], index: 3, kind: output, shape index: {}]  }
   0x1   :  { %v755_v0 = vld [vmem:[%s1004_s1] sm:$0xff]   ;;  %v756_v1 = vld [vmem:[%s1004_s1 + $0x8] sm:$0xff]   ;;  %v757_v2 = vld [vmem:[%s1004_s1 + $0x10] sm:$0xff]  }
   0x2   :  { %691 = vmatprep.subr.bf16.mxu0 %v755_v0  ;;  %739 = vmatprep.subr.bf16.mxu1 %v755_v0  ;;  %v758_v3 = vld [vmem:[%s1004_s1 + $0x18] sm:$0xff]   ;;  %v763_v4 = vld [vmem:[%s1005_s0] sm:$0xff]   ;;  %v760_v7 = vld [vmem:[%s1004_s1 + $0x28] sm:$0xff]  }
   0x3   :  { %692 = vmatpush3.bf16.msra.mxu0 %v755_v0  ;;  %747 = vmatpush3.bf16.msra.mxu1 %v755_v0  ;;  %v764_v5 = vld [vmem:[%s1005_s0 + $0x40] sm:$0xff]   ;;  %v761_v8 = vld [vmem:[%s1004_s1 + $0x30] sm:$0xff]   ;;  %v762_v9 = vld [vmem:[%s1004_s1 + $0x38] sm:$0xff]  }
   0x4   :  { %693 = vmatprep.subr.bf16.mxu0 %v756_v1  ;;  %740 = vmatprep.subr.bf16.mxu1 %v756_v1  ;;  %v759_v6 = vld [vmem:[%s1004_s1 + $0x20] sm:$0xff]   ;;  %v765_v10 = vld [vmem:[%s1005_s0 + $0x8] sm:$0xff]   ;;  %v767_v12 = vld [vmem:[%s1005_s0 + $0x10] sm:$0xff]  }
   0x5   :  { %707 = vmatprep.mubr.bf16.mxu0 %v763_v4  ;;  %723 = vmatprep.mubr.bf16.mxu1 %v764_v5  ;;  %v766_v11 = vld [vmem:[%s1005_s0 + $0x48] sm:$0xff]   ;;  %v768_v13 = vld [vmem:[%s1005_s0 + $0x50] sm:$0xff]   ;;  %v769_v14 = vld [vmem:[%s1005_s0 + $0x18] sm:$0xff]  }
   0x6   :  { %v770_v15 = vld [vmem:[%s1005_s0 + $0x58] sm:$0xff]   ;;  %v771_v16 = vld [vmem:[%s1005_s0 + $0x20] sm:$0xff]   ;;  %v773_v18 = vld [vmem:[%s1005_s0 + $0x28] sm:$0xff]  }
   0x7   :  { %694 = vmatpush3.bf16.msra.mxu0 %v756_v1  ;;  %748 = vmatpush3.bf16.msra.mxu1 %v756_v1  ;;  %v772_v17 = vld [vmem:[%s1005_s0 + $0x60] sm:$0xff]   ;;  %v774_v19 = vld [vmem:[%s1005_s0 + $0x68] sm:$0xff]   ;;  %v775_v20 = vld [vmem:[%s1005_s0 + $0x30] sm:$0xff]  }
   0x8   :  { %695 = vmatprep.subr.bf16.mxu0 %v757_v2  ;;  %741 = vmatprep.subr.bf16.mxu1 %v757_v2  ;;  %v776_v21 = vld [vmem:[%s1005_s0 + $0x70] sm:$0xff]   ;;  %v777_v22 = vld [vmem:[%s1005_s0 + $0x38] sm:$0xff]   ;;  %v874_v24 = vld [vmem:[%s1006_s2] ss:$0 sm:$0xff] }
   0x9   :  { %v778_v23 = vld [vmem:[%s1005_s0 + $0x78] sm:$0xff]  }
   0xb   :  { %696 = vmatpush3.bf16.msra.mxu0 %v757_v2  ;;  %749 = vmatpush3.bf16.msra.mxu1 %v757_v2 }
   0xc   :  { %697 = vmatprep.subr.bf16.mxu0 %v758_v3  ;;  %742 = vmatprep.subr.bf16.mxu1 %v758_v3 }
   0xf   :  { %698 = vmatpush3.bf16.msra.mxu0 %v758_v3  ;;  %750 = vmatpush3.bf16.msra.mxu1 %v758_v3 }
  0x10   :  { %699 = vmatprep.subr.bf16.mxu0 %v759_v6  ;;  %743 = vmatprep.subr.bf16.mxu1 %v759_v6 }
  0x13   :  { %700 = vmatpush3.bf16.msra.mxu0 %v759_v6  ;;  %751 = vmatpush3.bf16.msra.mxu1 %v759_v6 }
  0x14   :  { %701 = vmatprep.subr.bf16.mxu0 %v760_v7  ;;  %744 = vmatprep.subr.bf16.mxu1 %v760_v7 }
  0x17   :  { %702 = vmatpush3.bf16.msra.mxu0 %v760_v7  ;;  %752 = vmatpush3.bf16.msra.mxu1 %v760_v7 }
  0x18   :  { %703 = vmatprep.subr.bf16.mxu0 %v761_v8  ;;  %745 = vmatprep.subr.bf16.mxu1 %v761_v8 }
  0x1b   :  { %704 = vmatpush3.bf16.msra.mxu0 %v761_v8  ;;  %753 = vmatpush3.bf16.msra.mxu1 %v761_v8 }
  0x1c   :  { %705 = vmatprep.subr.bf16.mxu0 %v762_v9  ;;  %746 = vmatprep.subr.bf16.mxu1 %v762_v9 }
  0x1f   :  { %706 = vmatpush3.bf16.msra.mxu0 %v762_v9  ;;  %754 = vmatpush3.bf16.msra.mxu1 %v762_v9 }
  0x22   :  { %708 = vmatmul.mubr.bf16.vlgmr.msra.gmra.mrb[0].mxu0 %v765_v10  ;;  %724 = vmatmul.mubr.bf16.vlgmr.msra.gmra.mrb[0].mxu1 %v766_v11 }
  0x23   :  { %711 = vmatprep.mubr.bf16.mxu0 %v767_v12  ;;  %727 = vmatprep.mubr.bf16.mxu1 %v768_v13 }
  0x2a   :  { %712 = vmatmul.mubr.bf16.gmra.mrb[4].mxu0 %v769_v14  ;;  %728 = vmatmul.mubr.bf16.gmra.mrb[4].mxu1 %v770_v15 }
  0x2b   :  { %715 = vmatprep.mubr.bf16.mxu0 %v771_v16  ;;  %731 = vmatprep.mubr.bf16.mxu1 %v772_v17 }
  0x32   :  { %716 = vmatmul.mubr.bf16.gmra.mrb[8].mxu0 %v773_v18  ;;  %732 = vmatmul.mubr.bf16.gmra.mrb[8].mxu1 %v774_v19 }
  0x33   :  { %719 = vmatprep.mubr.bf16.mxu0 %v775_v20  ;;  %735 = vmatprep.mubr.bf16.mxu1 %v776_v21 }
  0x3a   :  { %720 = vmatmul.mubr.bf16.gmra.mrb[12].mxu0 %v777_v22  ;;  %736 = vmatmul.mubr.bf16.gmra.mrb[12].mxu1 %v778_v23 }
  0xf5   :  { %v709_v25 = vpop.f32.mrb[0].mxu0  ;;  %v725_v26 = vpop.f32.mrb[0].mxu1 }
  0xf6   :  { %v544_v27 = vadd.f32 %v709_v25, %v874_v24  ;;  %v560_v28 = vadd.f32 %v725_v26, %v874_v24  ;;  %v309_v29 = vpop.f32.mrb[1].mxu0  ;;  %v373_v30 = vpop.f32.mrb[1].mxu1 }
  0xf7   :  { %v542_v31 = vadd.f32 %v874_v24, %v309_v29  ;;  %v558_v32 = vadd.f32 %v874_v24, %v373_v30  ;;  %v710_v33 = vpop.f32.mrb[2].mxu0  ;;  %v726_v34 = vpop.f32.mrb[2].mxu1 }
  0xf8   :  { %v576_v35 = vmax.f32 %v544_v27, 0.0  ;;  %v592_v36 = vmax.f32 %v560_v28, 0.0  ;;  %v545_v37 = vadd.f32 %v710_v33, %v874_v24  ;;  %v561_v38 = vadd.f32 %v726_v34, %v874_v24  ;;  %v312_v39 = vpop.f32.mrb[3].mxu0  ;;  %v376_v40 = vpop.f32.mrb[3].mxu1 }
  0xf9   :  { %v574_v41 = vmax.f32 %v542_v31, 0.0  ;;  %v590_v42 = vmax.f32 %v558_v32, 0.0  ;;  %v543_v43 = vadd.f32 %v874_v24, %v312_v39  ;;  %v559_v44 = vadd.f32 %v874_v24, %v376_v40 }
  0xfa   :  { %608 = vst [vmem:[%s1007_s3 + $0x10] sm:$0xff] %v576_v35  ;;  %624 = vst [vmem:[%s1007_s3 + $0x90] sm:$0xff] %v592_v36  ;;  %v577_v45 = vmax.f32 %v545_v37, 0.0  ;;  %v593_v46 = vmax.f32 %v561_v38, 0.0 }
  0xfb   :  { %606 = vst [vmem:[%s1007_s3] sm:$0xff] %v574_v41  ;;  %622 = vst [vmem:[%s1007_s3 + $0x80] sm:$0xff] %v590_v42  ;;  %v575_v47 = vmax.f32 %v543_v43, 0.0  ;;  %v591_v48 = vmax.f32 %v559_v44, 0.0 }
  0xfc   :  { %609 = vst [vmem:[%s1007_s3 + $0x18] sm:$0xff] %v577_v45  ;;  %625 = vst [vmem:[%s1007_s3 + $0x98] sm:$0xff] %v593_v46 }
  0xfd   :  { %607 = vst [vmem:[%s1007_s3 + $0x8] sm:$0xff] %v575_v47  ;;  %623 = vst [vmem:[%s1007_s3 + $0x88] sm:$0xff] %v591_v48  ;;  %v713_v49 = vpop.f32.mrb[4].mxu0  ;;  %v729_v50 = vpop.f32.mrb[4].mxu1 }
  0xfe   :  { %v548_v51 = vadd.f32 %v713_v49, %v874_v24  ;;  %v564_v52 = vadd.f32 %v729_v50, %v874_v24  ;;  %v325_v53 = vpop.f32.mrb[5].mxu0  ;;  %v389_v54 = vpop.f32.mrb[5].mxu1 }
  0xff   :  { %v546_v55 = vadd.f32 %v874_v24, %v325_v53  ;;  %v562_v56 = vadd.f32 %v874_v24, %v389_v54  ;;  %v714_v57 = vpop.f32.mrb[6].mxu0  ;;  %v730_v58 = vpop.f32.mrb[6].mxu1 }
 0x100   :  { %v580_v59 = vmax.f32 %v548_v51, 0.0  ;;  %v596_v60 = vmax.f32 %v564_v52, 0.0  ;;  %v549_v61 = vadd.f32 %v714_v57, %v874_v24  ;;  %v565_v62 = vadd.f32 %v730_v58, %v874_v24  ;;  %v328_v63 = vpop.f32.mrb[7].mxu0  ;;  %v392_v0 = vpop.f32.mrb[7].mxu1 }
 0x101   :  { %v578_v1 = vmax.f32 %v546_v55, 0.0  ;;  %v594_v2 = vmax.f32 %v562_v56, 0.0  ;;  %v547_v3 = vadd.f32 %v874_v24, %v328_v63  ;;  %v563_v4 = vadd.f32 %v874_v24, %v392_v0 }
 0x102   :  { %612 = vst [vmem:[%s1007_s3 + $0x30] sm:$0xff] %v580_v59  ;;  %628 = vst [vmem:[%s1007_s3 + $0xb0] sm:$0xff] %v596_v60  ;;  %v581_v5 = vmax.f32 %v549_v61, 0.0  ;;  %v597_v6 = vmax.f32 %v565_v62, 0.0 }
 0x103   :  { %610 = vst [vmem:[%s1007_s3 + $0x20] sm:$0xff] %v578_v1  ;;  %626 = vst [vmem:[%s1007_s3 + $0xa0] sm:$0xff] %v594_v2  ;;  %v579_v7 = vmax.f32 %v547_v3, 0.0  ;;  %v595_v8 = vmax.f32 %v563_v4, 0.0 }
 0x104   :  { %613 = vst [vmem:[%s1007_s3 + $0x38] sm:$0xff] %v581_v5  ;;  %629 = vst [vmem:[%s1007_s3 + $0xb8] sm:$0xff] %v597_v6 }
 0x105   :  { %611 = vst [vmem:[%s1007_s3 + $0x28] sm:$0xff] %v579_v7  ;;  %627 = vst [vmem:[%s1007_s3 + $0xa8] sm:$0xff] %v595_v8  ;;  %v717_v9 = vpop.f32.mrb[8].mxu0  ;;  %v733_v10 = vpop.f32.mrb[8].mxu1 }
 0x106   :  { %v552_v11 = vadd.f32 %v717_v9, %v874_v24  ;;  %v568_v12 = vadd.f32 %v733_v10, %v874_v24  ;;  %v341_v13 = vpop.f32.mrb[9].mxu0  ;;  %v405_v14 = vpop.f32.mrb[9].mxu1 }
 0x107   :  { %v550_v15 = vadd.f32 %v874_v24, %v341_v13  ;;  %v566_v16 = vadd.f32 %v874_v24, %v405_v14  ;;  %v718_v17 = vpop.f32.mrb[10].mxu0  ;;  %v734_v18 = vpop.f32.mrb[10].mxu1 }
 0x108   :  { %v584_v19 = vmax.f32 %v552_v11, 0.0  ;;  %v600_v20 = vmax.f32 %v568_v12, 0.0  ;;  %v553_v21 = vadd.f32 %v718_v17, %v874_v24  ;;  %v569_v22 = vadd.f32 %v734_v18, %v874_v24  ;;  %v344_v23 = vpop.f32.mrb[11].mxu0  ;;  %v408_v25 = vpop.f32.mrb[11].mxu1 }
 0x109   :  { %v582_v26 = vmax.f32 %v550_v15, 0.0  ;;  %v598_v27 = vmax.f32 %v566_v16, 0.0  ;;  %v551_v28 = vadd.f32 %v874_v24, %v344_v23  ;;  %v567_v29 = vadd.f32 %v874_v24, %v408_v25 }
 0x10a   :  { %616 = vst [vmem:[%s1007_s3 + $0x50] sm:$0xff] %v584_v19  ;;  %632 = vst [vmem:[%s1007_s3 + $0xd0] sm:$0xff] %v600_v20  ;;  %v585_v30 = vmax.f32 %v553_v21, 0.0  ;;  %v601_v31 = vmax.f32 %v569_v22, 0.0 }
 0x10b   :  { %614 = vst [vmem:[%s1007_s3 + $0x40] sm:$0xff] %v582_v26  ;;  %630 = vst [vmem:[%s1007_s3 + $0xc0] sm:$0xff] %v598_v27  ;;  %v583_v32 = vmax.f32 %v551_v28, 0.0  ;;  %v599_v33 = vmax.f32 %v567_v29, 0.0 }
 0x10c   :  { %617 = vst [vmem:[%s1007_s3 + $0x58] sm:$0xff] %v585_v30  ;;  %633 = vst [vmem:[%s1007_s3 + $0xd8] sm:$0xff] %v601_v31 }
 0x10d   :  { %615 = vst [vmem:[%s1007_s3 + $0x48] sm:$0xff] %v583_v32  ;;  %631 = vst [vmem:[%s1007_s3 + $0xc8] sm:$0xff] %v599_v33  ;;  %v721_v34 = vpop.f32.mrb[12].mxu0  ;;  %v737_v35 = vpop.f32.mrb[12].mxu1 }
 0x10e   :  { %v556_v36 = vadd.f32 %v721_v34, %v874_v24  ;;  %v572_v37 = vadd.f32 %v737_v35, %v874_v24  ;;  %v357_v38 = vpop.f32.mrb[13].mxu0  ;;  %v421_v39 = vpop.f32.mrb[13].mxu1 }
 0x10f   :  { %v554_v40 = vadd.f32 %v874_v24, %v357_v38  ;;  %v570_v41 = vadd.f32 %v874_v24, %v421_v39  ;;  %v722_v42 = vpop.f32.mrb[14].mxu0  ;;  %v738_v43 = vpop.f32.mrb[14].mxu1 }
 0x110   :  { %v588_v44 = vmax.f32 %v556_v36, 0.0  ;;  %v604_v45 = vmax.f32 %v572_v37, 0.0  ;;  %v557_v46 = vadd.f32 %v722_v42, %v874_v24  ;;  %v573_v47 = vadd.f32 %v738_v43, %v874_v24  ;;  %v360_v48 = vpop.f32.mrb[15].mxu0  ;;  %v424_v49 = vpop.f32.mrb[15].mxu1 }
 0x111   :  { %v586_v50 = vmax.f32 %v554_v40, 0.0  ;;  %v602_v51 = vmax.f32 %v570_v41, 0.0  ;;  %v555_v52 = vadd.f32 %v874_v24, %v360_v48  ;;  %v571_v53 = vadd.f32 %v874_v24, %v424_v49 }
 0x112   :  { %620 = vst [vmem:[%s1007_s3 + $0x70] sm:$0xff] %v588_v44  ;;  %636 = vst [vmem:[%s1007_s3 + $0xf0] sm:$0xff] %v604_v45  ;;  %v589_v54 = vmax.f32 %v557_v46, 0.0  ;;  %v605_v55 = vmax.f32 %v573_v47, 0.0 }
 0x113   :  { %618 = vst [vmem:[%s1007_s3 + $0x60] sm:$0xff] %v586_v50  ;;  %634 = vst [vmem:[%s1007_s3 + $0xe0] sm:$0xff] %v602_v51  ;;  %v587_v56 = vmax.f32 %v555_v52, 0.0  ;;  %v603_v24 = vmax.f32 %v571_v53, 0.0 }
 0x114   :  { %621 = vst [vmem:[%s1007_s3 + $0x78] sm:$0xff] %v589_v54  ;;  %637 = vst [vmem:[%s1007_s3 + $0xf8] sm:$0xff] %v605_v55 }
 0x115   :  { %619 = vst [vmem:[%s1007_s3 + $0x68] sm:$0xff] %v587_v56  ;;  %635 = vst [vmem:[%s1007_s3 + $0xe8] sm:$0xff] %v603_v24 }

// kernel: encoder_forward.29
= control target key start
LH: loop header
LB: loop body
LE: loop exit
PB: predicated region body
PF: predicated region fallthrough
CT: control target
= control target key end

     0   :  { %s1172_s1 = inlined_call_operand.vmem [shape: bf16[128,128], index: 1, kind: input, shape index: {}]   ;;  %s1173_s0 = inlined_call_operand.vmem [shape: bf16[256,128], index: 0, kind: input, shape index: {}]   ;;  %s1174_s2 = inlined_call_operand.vmem [shape: f32[1,128], index: 2, kind: input, shape index: {}]   ;;  %s1175_s3 = inlined_call_operand.vmem [shape: f32[256,128], index: 3, kind: input, shape index: {}]   ;;  %s1176_s4 = inlined_call_operand.vmem [shape: f32[256,128], index: 4, kind: output, shape index: {}]  }
   0x1   :  { %v822_v0 = vld [vmem:[%s1172_s1] sm:$0xff]   ;;  %v823_v1 = vld [vmem:[%s1172_s1 + $0x8] sm:$0xff]   ;;  %v824_v2 = vld [vmem:[%s1172_s1 + $0x10] sm:$0xff]  }
   0x2   :  { %758 = vmatprep.subr.bf16.mxu0 %v822_v0  ;;  %806 = vmatprep.subr.bf16.mxu1 %v822_v0  ;;  %v825_v3 = vld [vmem:[%s1172_s1 + $0x18] sm:$0xff]   ;;  %v830_v4 = vld [vmem:[%s1173_s0] sm:$0xff]   ;;  %v827_v7 = vld [vmem:[%s1172_s1 + $0x28] sm:$0xff]  }
   0x3   :  { %759 = vmatpush3.bf16.msra.mxu0 %v822_v0  ;;  %814 = vmatpush3.bf16.msra.mxu1 %v822_v0  ;;  %v831_v5 = vld [vmem:[%s1173_s0 + $0x40] sm:$0xff]   ;;  %v828_v8 = vld [vmem:[%s1172_s1 + $0x30] sm:$0xff]   ;;  %v829_v9 = vld [vmem:[%s1172_s1 + $0x38] sm:$0xff]  }
   0x4   :  { %760 = vmatprep.subr.bf16.mxu0 %v823_v1  ;;  %807 = vmatprep.subr.bf16.mxu1 %v823_v1  ;;  %v826_v6 = vld [vmem:[%s1172_s1 + $0x20] sm:$0xff]   ;;  %v832_v10 = vld [vmem:[%s1173_s0 + $0x8] sm:$0xff]   ;;  %v834_v12 = vld [vmem:[%s1173_s0 + $0x10] sm:$0xff]  }
   0x5   :  { %774 = vmatprep.mubr.bf16.mxu0 %v830_v4  ;;  %790 = vmatprep.mubr.bf16.mxu1 %v831_v5  ;;  %v833_v11 = vld [vmem:[%s1173_s0 + $0x48] sm:$0xff]   ;;  %v835_v13 = vld [vmem:[%s1173_s0 + $0x50] sm:$0xff]   ;;  %v836_v14 = vld [vmem:[%s1173_s0 + $0x18] sm:$0xff]  }
   0x6   :  { %v837_v15 = vld [vmem:[%s1173_s0 + $0x58] sm:$0xff]   ;;  %v838_v16 = vld [vmem:[%s1173_s0 + $0x20] sm:$0xff]   ;;  %v840_v18 = vld [vmem:[%s1173_s0 + $0x28] sm:$0xff]  }
   0x7   :  { %761 = vmatpush3.bf16.msra.mxu0 %v823_v1  ;;  %815 = vmatpush3.bf16.msra.mxu1 %v823_v1  ;;  %v839_v17 = vld [vmem:[%s1173_s0 + $0x60] sm:$0xff]   ;;  %v841_v19 = vld [vmem:[%s1173_s0 + $0x68] sm:$0xff]   ;;  %v842_v20 = vld [vmem:[%s1173_s0 + $0x30] sm:$0xff]  }
   0x8   :  { %762 = vmatprep.subr.bf16.mxu0 %v824_v2  ;;  %808 = vmatprep.subr.bf16.mxu1 %v824_v2  ;;  %v843_v21 = vld [vmem:[%s1173_s0 + $0x70] sm:$0xff]   ;;  %v844_v22 = vld [vmem:[%s1173_s0 + $0x38] sm:$0xff]   ;;  %v946_v24 = vld [vmem:[%s1174_s2] ss:$0 sm:$0xff] }
   0x9   :  { %v845_v23 = vld [vmem:[%s1173_s0 + $0x78] sm:$0xff]   ;;  %v579_v26 = vld [vmem:[%s1175_s3 + $0x10] sm:$0xff]  ;;  %v577_v32 = vld [vmem:[%s1175_s3] sm:$0xff] }
   0xa   :  { %v595_v28 = vld [vmem:[%s1175_s3 + $0x90] sm:$0xff]  ;;  %v593_v34 = vld [vmem:[%s1175_s3 + $0x80] sm:$0xff]  ;;  %v580_v38 = vld [vmem:[%s1175_s3 + $0x18] sm:$0xff] }
   0xb   :  { %763 = vmatpush3.bf16.msra.mxu0 %v824_v2  ;;  %816 = vmatpush3.bf16.msra.mxu1 %v824_v2  ;;  %v596_v40 = vld [vmem:[%s1175_s3 + $0x98] sm:$0xff]  ;;  %v578_v46 = vld [vmem:[%s1175_s3 + $0x8] sm:$0xff]  ;;  %v583_v2 = vld [vmem:[%s1175_s3 + $0x30] sm:$0xff] }
   0xc   :  { %764 = vmatprep.subr.bf16.mxu0 %v825_v3  ;;  %809 = vmatprep.subr.bf16.mxu1 %v825_v3  ;;  %v594_v48 = vld [vmem:[%s1175_s3 + $0x88] sm:$0xff]  ;;  %v599_v4 = vld [vmem:[%s1175_s3 + $0xb0] sm:$0xff] }
   0xf   :  { %765 = vmatpush3.bf16.msra.mxu0 %v825_v3  ;;  %817 = vmatpush3.bf16.msra.mxu1 %v825_v3 }
  0x10   :  { %766 = vmatprep.subr.bf16.mxu0 %v826_v6  ;;  %810 = vmatprep.subr.bf16.mxu1 %v826_v6 }
  0x13   :  { %767 = vmatpush3.bf16.msra.mxu0 %v826_v6  ;;  %818 = vmatpush3.bf16.msra.mxu1 %v826_v6 }
  0x14   :  { %768 = vmatprep.subr.bf16.mxu0 %v827_v7  ;;  %811 = vmatprep.subr.bf16.mxu1 %v827_v7 }
  0x17   :  { %769 = vmatpush3.bf16.msra.mxu0 %v827_v7  ;;  %819 = vmatpush3.bf16.msra.mxu1 %v827_v7 }
  0x18   :  { %770 = vmatprep.subr.bf16.mxu0 %v828_v8  ;;  %812 = vmatprep.subr.bf16.mxu1 %v828_v8 }
  0x1b   :  { %771 = vmatpush3.bf16.msra.mxu0 %v828_v8  ;;  %820 = vmatpush3.bf16.msra.mxu1 %v828_v8  ;;  %v581_v8 = vld [vmem:[%s1175_s3 + $0x20] sm:$0xff] }
  0x1c   :  { %772 = vmatprep.subr.bf16.mxu0 %v829_v9  ;;  %813 = vmatprep.subr.bf16.mxu1 %v829_v9 }
  0x1f   :  { %773 = vmatpush3.bf16.msra.mxu0 %v829_v9  ;;  %821 = vmatpush3.bf16.msra.mxu1 %v829_v9 }
  0x22   :  { %775 = vmatmul.mubr.bf16.vlgmr.msra.gmra.mrb[0].mxu0 %v832_v10  ;;  %791 = vmatmul.mubr.bf16.vlgmr.msra.gmra.mrb[0].mxu1 %v833_v11  ;;  %v597_v10 = vld [vmem:[%s1175_s3 + $0xa0] sm:$0xff] }
  0x23   :  { %778 = vmatprep.mubr.bf16.mxu0 %v834_v12  ;;  %794 = vmatprep.mubr.bf16.mxu1 %v835_v13 }
  0x2a   :  { %779 = vmatmul.mubr.bf16.gmra.mrb[4].mxu0 %v836_v14  ;;  %795 = vmatmul.mubr.bf16.gmra.mrb[4].mxu1 %v837_v15  ;;  %v584_v14 = vld [vmem:[%s1175_s3 + $0x38] sm:$0xff] }
  0x2b   :  { %782 = vmatprep.mubr.bf16.mxu0 %v838_v16  ;;  %798 = vmatprep.mubr.bf16.mxu1 %v839_v17  ;;  %v600_v16 = vld [vmem:[%s1175_s3 + $0xb8] sm:$0xff] }
  0x32   :  { %783 = vmatmul.mubr.bf16.gmra.mrb[8].mxu0 %v840_v18  ;;  %799 = vmatmul.mubr.bf16.gmra.mrb[8].mxu1 %v841_v19 }
  0x33   :  { %786 = vmatprep.mubr.bf16.mxu0 %v842_v20  ;;  %802 = vmatprep.mubr.bf16.mxu1 %v843_v21 }
  0x3a   :  { %787 = vmatmul.mubr.bf16.gmra.mrb[12].mxu0 %v844_v22  ;;  %803 = vmatmul.mubr.bf16.gmra.mrb[12].mxu1 %v845_v23  ;;  %v582_v22 = vld [vmem:[%s1175_s3 + $0x28] sm:$0xff] }
  0xf5   :  { %v776_v25 = vpop.f32.mrb[0].mxu0  ;;  %v792_v27 = vpop.f32.mrb[0].mxu1 }
  0xf6   :  { %v547_v29 = vadd.f32 %v776_v25, %v946_v24  ;;  %v563_v30 = vadd.f32 %v792_v27, %v946_v24  ;;  %v312_v31 = vpop.f32.mrb[1].mxu0  ;;  %v376_v33 = vpop.f32.mrb[1].mxu1  ;;  %v598_v25 = vld [vmem:[%s1175_s3 + $0xa8] sm:$0xff] }
  0xf7   :  { %v545_v35 = vadd.f32 %v946_v24, %v312_v31  ;;  %v561_v36 = vadd.f32 %v946_v24, %v376_v33  ;;  %v777_v37 = vpop.f32.mrb[2].mxu0  ;;  %v793_v39 = vpop.f32.mrb[2].mxu1 }
  0xf8   :  { %v611_v41 = vadd.f32 %v579_v26, %v547_v29  ;;  %v627_v42 = vadd.f32 %v595_v28, %v563_v30  ;;  %v548_v43 = vadd.f32 %v777_v37, %v946_v24  ;;  %v564_v44 = vadd.f32 %v793_v39, %v946_v24  ;;  %v315_v45 = vpop.f32.mrb[3].mxu0  ;;  %v379_v47 = vpop.f32.mrb[3].mxu1 }
  0xf9   :  { %v609_v49 = vadd.f32 %v577_v32, %v545_v35  ;;  %v625_v50 = vadd.f32 %v593_v34, %v561_v36  ;;  %v546_v51 = vadd.f32 %v946_v24, %v315_v45  ;;  %v562_v52 = vadd.f32 %v946_v24, %v379_v47  ;;  %v603_v45 = vld [vmem:[%s1175_s3 + $0xd0] sm:$0xff] }
  0xfa   :  { %v643_v53 = vmax.f32 %v611_v41, 0.0  ;;  %v659_v54 = vmax.f32 %v627_v42, 0.0  ;;  %v612_v55 = vadd.f32 %v580_v38, %v548_v43  ;;  %v628_v56 = vadd.f32 %v596_v40, %v564_v44  ;;  %v587_v43 = vld [vmem:[%s1175_s3 + $0x50] sm:$0xff] }
  0xfb   :  { %v641_v57 = vmax.f32 %v609_v49, 0.0  ;;  %v657_v58 = vmax.f32 %v625_v50, 0.0  ;;  %v610_v59 = vadd.f32 %v578_v46, %v546_v51  ;;  %v626_v60 = vadd.f32 %v594_v48, %v562_v52  ;;  %v585_v49 = vld [vmem:[%s1175_s3 + $0x40] sm:$0xff] }
  0xfc   :  { %675 = vst [vmem:[%s1176_s4 + $0x10] sm:$0xff] %v643_v53  ;;  %691 = vst [vmem:[%s1176_s4 + $0x90] sm:$0xff] %v659_v54  ;;  %v644_v61 = vmax.f32 %v612_v55, 0.0  ;;  %v660_v62 = vmax.f32 %v628_v56, 0.0  ;;  %v601_v51 = vld [vmem:[%s1175_s3 + $0xc0] sm:$0xff]  ;;  %v588_v55 = vld [vmem:[%s1175_s3 + $0x58] sm:$0xff] }
  0xfd   :  { %673 = vst [vmem:[%s1176_s4] sm:$0xff] %v641_v57  ;;  %689 = vst [vmem:[%s1176_s4 + $0x80] sm:$0xff] %v657_v58  ;;  %v642_v63 = vmax.f32 %v610_v59, 0.0  ;;  %v658_v0 = vmax.f32 %v626_v60, 0.0  ;;  %v780_v1 = vpop.f32.mrb[4].mxu0  ;;  %v796_v3 = vpop.f32.mrb[4].mxu1  ;;  %v604_v57 = vld [vmem:[%s1175_s3 + $0xd8] sm:$0xff] }
  0xfe   :  { %676 = vst [vmem:[%s1176_s4 + $0x18] sm:$0xff] %v644_v61  ;;  %692 = vst [vmem:[%s1176_s4 + $0x98] sm:$0xff] %v660_v62  ;;  %v551_v5 = vadd.f32 %v780_v1, %v946_v24  ;;  %v567_v6 = vadd.f32 %v796_v3, %v946_v24  ;;  %v328_v7 = vpop.f32.mrb[5].mxu0  ;;  %v392_v9 = vpop.f32.mrb[5].mxu1  ;;  %v602_v1 = vld [vmem:[%s1175_s3 + $0xc8] sm:$0xff] }
  0xff   :  { %674 = vst [vmem:[%s1176_s4 + $0x8] sm:$0xff] %v642_v63  ;;  %690 = vst [vmem:[%s1176_s4 + $0x88] sm:$0xff] %v658_v0  ;;  %v549_v11 = vadd.f32 %v946_v24, %v328_v7  ;;  %v565_v12 = vadd.f32 %v946_v24, %v392_v9  ;;  %v781_v13 = vpop.f32.mrb[6].mxu0  ;;  %v797_v15 = vpop.f32.mrb[6].mxu1  ;;  %v586_v63 = vld [vmem:[%s1175_s3 + $0x48] sm:$0xff] }
 0x100   :  { %v615_v17 = vadd.f32 %v583_v2, %v551_v5  ;;  %v631_v18 = vadd.f32 %v599_v4, %v567_v6  ;;  %v552_v19 = vadd.f32 %v781_v13, %v946_v24  ;;  %v568_v20 = vadd.f32 %v797_v15, %v946_v24  ;;  %v331_v21 = vpop.f32.mrb[7].mxu0  ;;  %v395_v23 = vpop.f32.mrb[7].mxu1 }
 0x101   :  { %v613_v26 = vadd.f32 %v581_v8, %v549_v11  ;;  %v629_v27 = vadd.f32 %v597_v10, %v565_v12  ;;  %v550_v28 = vadd.f32 %v946_v24, %v331_v21  ;;  %v566_v29 = vadd.f32 %v946_v24, %v395_v23  ;;  %v607_v21 = vld [vmem:[%s1175_s3 + $0xf0] sm:$0xff] }
 0x102   :  { %v647_v30 = vmax.f32 %v615_v17, 0.0  ;;  %v663_v31 = vmax.f32 %v631_v18, 0.0  ;;  %v616_v32 = vadd.f32 %v584_v14, %v552_v19  ;;  %v632_v33 = vadd.f32 %v600_v16, %v568_v20  ;;  %v591_v19 = vld [vmem:[%s1175_s3 + $0x70] sm:$0xff] }
 0x103   :  { %v645_v34 = vmax.f32 %v613_v26, 0.0  ;;  %v661_v35 = vmax.f32 %v629_v27, 0.0  ;;  %v614_v36 = vadd.f32 %v582_v22, %v550_v28  ;;  %v630_v37 = vadd.f32 %v598_v25, %v566_v29  ;;  %v589_v26 = vld [vmem:[%s1175_s3 + $0x60] sm:$0xff] }
 0x104   :  { %679 = vst [vmem:[%s1176_s4 + $0x30] sm:$0xff] %v647_v30  ;;  %695 = vst [vmem:[%s1176_s4 + $0xb0] sm:$0xff] %v663_v31  ;;  %v648_v38 = vmax.f32 %v616_v32, 0.0  ;;  %v664_v39 = vmax.f32 %v632_v33, 0.0  ;;  %v605_v28 = vld [vmem:[%s1175_s3 + $0xe0] sm:$0xff]  ;;  %v592_v32 = vld [vmem:[%s1175_s3 + $0x78] sm:$0xff] }
 0x105   :  { %677 = vst [vmem:[%s1176_s4 + $0x20] sm:$0xff] %v645_v34  ;;  %693 = vst [vmem:[%s1176_s4 + $0xa0] sm:$0xff] %v661_v35  ;;  %v646_v40 = vmax.f32 %v614_v36, 0.0  ;;  %v662_v41 = vmax.f32 %v630_v37, 0.0  ;;  %v784_v42 = vpop.f32.mrb[8].mxu0  ;;  %v800_v44 = vpop.f32.mrb[8].mxu1 }
 0x106   :  { %680 = vst [vmem:[%s1176_s4 + $0x38] sm:$0xff] %v648_v38  ;;  %696 = vst [vmem:[%s1176_s4 + $0xb8] sm:$0xff] %v664_v39  ;;  %v555_v46 = vadd.f32 %v784_v42, %v946_v24  ;;  %v571_v47 = vadd.f32 %v800_v44, %v946_v24  ;;  %v344_v48 = vpop.f32.mrb[9].mxu0  ;;  %v408_v50 = vpop.f32.mrb[9].mxu1  ;;  %v608_v34 = vld [vmem:[%s1175_s3 + $0xf8] sm:$0xff]  ;;  %v606_v42 = vld [vmem:[%s1175_s3 + $0xe8] sm:$0xff] }
 0x107   :  { %678 = vst [vmem:[%s1176_s4 + $0x28] sm:$0xff] %v646_v40  ;;  %694 = vst [vmem:[%s1176_s4 + $0xa8] sm:$0xff] %v662_v41  ;;  %v553_v52 = vadd.f32 %v946_v24, %v344_v48  ;;  %v569_v53 = vadd.f32 %v946_v24, %v408_v50  ;;  %v785_v54 = vpop.f32.mrb[10].mxu0  ;;  %v801_v56 = vpop.f32.mrb[10].mxu1  ;;  %v590_v40 = vld [vmem:[%s1175_s3 + $0x68] sm:$0xff] }
 0x108   :  { %v619_v58 = vadd.f32 %v587_v43, %v555_v46  ;;  %v635_v59 = vadd.f32 %v603_v45, %v571_v47  ;;  %v556_v60 = vadd.f32 %v785_v54, %v946_v24  ;;  %v572_v61 = vadd.f32 %v801_v56, %v946_v24  ;;  %v347_v62 = vpop.f32.mrb[11].mxu0  ;;  %v411_v0 = vpop.f32.mrb[11].mxu1 }
 0x109   :  { %v617_v2 = vadd.f32 %v585_v49, %v553_v52  ;;  %v633_v3 = vadd.f32 %v601_v51, %v569_v53  ;;  %v554_v4 = vadd.f32 %v946_v24, %v347_v62  ;;  %v570_v5 = vadd.f32 %v946_v24, %v411_v0 }
 0x10a   :  { %v651_v6 = vmax.f32 %v619_v58, 0.0  ;;  %v667_v7 = vmax.f32 %v635_v59, 0.0  ;;  %v620_v8 = vadd.f32 %v588_v55, %v556_v60  ;;  %v636_v9 = vadd.f32 %v604_v57, %v572_v61 }
 0x10b   :  { %v649_v10 = vmax.f32 %v617_v2, 0.0  ;;  %v665_v11 = vmax.f32 %v633_v3, 0.0  ;;  %v618_v12 = vadd.f32 %v586_v63, %v554_v4  ;;  %v634_v13 = vadd.f32 %v602_v1, %v570_v5 }
 0x10c   :  { %683 = vst [vmem:[%s1176_s4 + $0x50] sm:$0xff] %v651_v6  ;;  %699 = vst [vmem:[%s1176_s4 + $0xd0] sm:$0xff] %v667_v7  ;;  %v652_v14 = vmax.f32 %v620_v8, 0.0  ;;  %v668_v15 = vmax.f32 %v636_v9, 0.0 }
 0x10d   :  { %681 = vst [vmem:[%s1176_s4 + $0x40] sm:$0xff] %v649_v10  ;;  %697 = vst [vmem:[%s1176_s4 + $0xc0] sm:$0xff] %v665_v11  ;;  %v650_v16 = vmax.f32 %v618_v12, 0.0  ;;  %v666_v17 = vmax.f32 %v634_v13, 0.0  ;;  %v788_v18 = vpop.f32.mrb[12].mxu0  ;;  %v804_v20 = vpop.f32.mrb[12].mxu1 }
 0x10e   :  { %684 = vst [vmem:[%s1176_s4 + $0x58] sm:$0xff] %v652_v14  ;;  %700 = vst [vmem:[%s1176_s4 + $0xd8] sm:$0xff] %v668_v15  ;;  %v559_v22 = vadd.f32 %v788_v18, %v946_v24  ;;  %v575_v23 = vadd.f32 %v804_v20, %v946_v24  ;;  %v360_v25 = vpop.f32.mrb[13].mxu0  ;;  %v424_v27 = vpop.f32.mrb[13].mxu1 }
 0x10f   :  { %682 = vst [vmem:[%s1176_s4 + $0x48] sm:$0xff] %v650_v16  ;;  %698 = vst [vmem:[%s1176_s4 + $0xc8] sm:$0xff] %v666_v17  ;;  %v557_v29 = vadd.f32 %v946_v24, %v360_v25  ;;  %v573_v30 = vadd.f32 %v946_v24, %v424_v27  ;;  %v789_v31 = vpop.f32.mrb[14].mxu0  ;;  %v805_v33 = vpop.f32.mrb[14].mxu1 }
 0x110   :  { %v623_v35 = vadd.f32 %v591_v19, %v559_v22  ;;  %v639_v36 = vadd.f32 %v607_v21, %v575_v23  ;;  %v560_v37 = vadd.f32 %v789_v31, %v946_v24  ;;  %v576_v38 = vadd.f32 %v805_v33, %v946_v24  ;;  %v363_v39 = vpop.f32.mrb[15].mxu0  ;;  %v427_v41 = vpop.f32.mrb[15].mxu1 }
 0x111   :  { %v621_v43 = vadd.f32 %v589_v26, %v557_v29  ;;  %v637_v44 = vadd.f32 %v605_v28, %v573_v30  ;;  %v558_v45 = vadd.f32 %v946_v24, %v363_v39  ;;  %v574_v46 = vadd.f32 %v946_v24, %v427_v41 }
 0x112   :  { %v655_v47 = vmax.f32 %v623_v35, 0.0  ;;  %v671_v48 = vmax.f32 %v639_v36, 0.0  ;;  %v624_v49 = vadd.f32 %v592_v32, %v560_v37  ;;  %v640_v50 = vadd.f32 %v608_v34, %v576_v38 }
 0x113   :  { %v653_v51 = vmax.f32 %v621_v43, 0.0  ;;  %v669_v52 = vmax.f32 %v637_v44, 0.0  ;;  %v622_v53 = vadd.f32 %v590_v40, %v558_v45  ;;  %v638_v54 = vadd.f32 %v606_v42, %v574_v46 }
 0x114   :  { %687 = vst [vmem:[%s1176_s4 + $0x70] sm:$0xff] %v655_v47  ;;  %703 = vst [vmem:[%s1176_s4 + $0xf0] sm:$0xff] %v671_v48  ;;  %v656_v55 = vmax.f32 %v624_v49, 0.0  ;;  %v672_v56 = vmax.f32 %v640_v50, 0.0 }
 0x115   :  { %685 = vst [vmem:[%s1176_s4 + $0x60] sm:$0xff] %v653_v51  ;;  %701 = vst [vmem:[%s1176_s4 + $0xe0] sm:$0xff] %v669_v52  ;;  %v654_v24 = vmax.f32 %v622_v53, 0.0  ;;  %v670_v57 = vmax.f32 %v638_v54, 0.0 }
 0x116   :  { %688 = vst [vmem:[%s1176_s4 + $0x78] sm:$0xff] %v656_v55  ;;  %704 = vst [vmem:[%s1176_s4 + $0xf8] sm:$0xff] %v672_v56 }
 0x117   :  { %686 = vst [vmem:[%s1176_s4 + $0x68] sm:$0xff] %v654_v24  ;;  %702 = vst [vmem:[%s1176_s4 + $0xe8] sm:$0xff] %v670_v57 }

// kernel: encoder_forward.33
= control target key start
LH: loop header
LB: loop body
LE: loop exit
PB: predicated region body
PF: predicated region fallthrough
CT: control target
= control target key end

     0   :  { %s418_s1 = inlined_call_operand.vmem [shape: bf16[128,128], index: 1, kind: input, shape index: {}]   ;;  %s419_s0 = inlined_call_operand.vmem [shape: bf16[64,128], index: 0, kind: input, shape index: {}]   ;;  %s420_s2 = inlined_call_operand.vmem [shape: f32[1,128], index: 2, kind: input, shape index: {}]   ;;  %s421_s3 = inlined_call_operand.vmem [shape: f32[64,128], index: 3, kind: output, shape index: {}]  }
   0x1   :  { %v323_v0 = vld [vmem:[%s418_s1] sm:$0xff]   ;;  %v324_v1 = vld [vmem:[%s418_s1 + $0x8] sm:$0xff]   ;;  %v325_v2 = vld [vmem:[%s418_s1 + $0x10] sm:$0xff]  }
   0x2   :  { %283 = vmatprep.subr.bf16.mxu0 %v323_v0  ;;  %307 = vmatprep.subr.bf16.mxu1 %v323_v0  ;;  %v326_v3 = vld [vmem:[%s418_s1 + $0x18] sm:$0xff]   ;;  %v331_v4 = vld [vmem:[%s419_s0] sm:$0xff]   ;;  %v332_v5 = vld [vmem:[%s419_s0 + $0x10] sm:$0xff]  }
   0x3   :  { %284 = vmatpush3.bf16.msra.mxu0 %v323_v0  ;;  %315 = vmatpush3.bf16.msra.mxu1 %v323_v0  ;;  %v327_v6 = vld [vmem:[%s418_s1 + $0x20] sm:$0xff]   ;;  %v328_v7 = vld [vmem:[%s418_s1 + $0x28] sm:$0xff]   ;;  %v329_v8 = vld [vmem:[%s418_s1 + $0x30] sm:$0xff]  }
   0x4   :  { %285 = vmatprep.subr.bf16.mxu0 %v324_v1  ;;  %308 = vmatprep.subr.bf16.mxu1 %v324_v1  ;;  %v330_v9 = vld [vmem:[%s418_s1 + $0x38] sm:$0xff]   ;;  %v333_v10 = vld [vmem:[%s419_s0 + $0x8] sm:$0xff]   ;;  %v270_v12 = vld [vmem:[%s420_s2] ss:$0 sm:$0xff] }
   0x5   :  { %299 = vmatprep.mubr.bf16.mxu0 %v331_v4  ;;  %303 = vmatprep.mubr.bf16.mxu1 %v332_v5  ;;  %v334_v11 = vld [vmem:[%s419_s0 + $0x18] sm:$0xff]  }
   0x7   :  { %286 = vmatpush3.bf16.msra.mxu0 %v324_v1  ;;  %316 = vmatpush3.bf16.msra.mxu1 %v324_v1 }
   0x8   :  { %287 = vmatprep.subr.bf16.mxu0 %v325_v2  ;;  %309 = vmatprep.subr.bf16.mxu1 %v325_v2 }
   0xb   :  { %288 = vmatpush3.bf16.msra.mxu0 %v325_v2  ;;  %317 = vmatpush3.bf16.msra.mxu1 %v325_v2 }
   0xc   :  { %289 = vmatprep.subr.bf16.mxu0 %v326_v3  ;;  %310 = vmatprep.subr.bf16.mxu1 %v326_v3 }
   0xf   :  { %290 = vmatpush3.bf16.msra.mxu0 %v326_v3  ;;  %318 = vmatpush3.bf16.msra.mxu1 %v326_v3 }
  0x10   :  { %291 = vmatprep.subr.bf16.mxu0 %v327_v6  ;;  %311 = vmatprep.subr.bf16.mxu1 %v327_v6 }
  0x13   :  { %292 = vmatpush3.bf16.msra.mxu0 %v327_v6  ;;  %319 = vmatpush3.bf16.msra.mxu1 %v327_v6 }
  0x14   :  { %293 = vmatprep.subr.bf16.mxu0 %v328_v7  ;;  %312 = vmatprep.subr.bf16.mxu1 %v328_v7 }
  0x17   :  { %294 = vmatpush3.bf16.msra.mxu0 %v328_v7  ;;  %320 = vmatpush3.bf16.msra.mxu1 %v328_v7 }
  0x18   :  { %295 = vmatprep.subr.bf16.mxu0 %v329_v8  ;;  %313 = vmatprep.subr.bf16.mxu1 %v329_v8 }
  0x1b   :  { %296 = vmatpush3.bf16.msra.mxu0 %v329_v8  ;;  %321 = vmatpush3.bf16.msra.mxu1 %v329_v8 }
  0x1c   :  { %297 = vmatprep.subr.bf16.mxu0 %v330_v9  ;;  %314 = vmatprep.subr.bf16.mxu1 %v330_v9 }
  0x1f   :  { %298 = vmatpush3.bf16.msra.mxu0 %v330_v9  ;;  %322 = vmatpush3.bf16.msra.mxu1 %v330_v9 }
  0x22   :  { %300 = vmatmul.mubr.bf16.vlgmr.msra.gmra.mrb[0].mxu0 %v333_v10  ;;  %304 = vmatmul.mubr.bf16.vlgmr.msra.gmra.mrb[0].mxu1 %v334_v11 }
  0xf5   :  { %v301_v13 = vpop.f32.mrb[0].mxu0  ;;  %v305_v14 = vpop.f32.mrb[0].mxu1 }
  0xf6   :  { %v232_v15 = vadd.f32 %v301_v13, %v270_v12  ;;  %v236_v16 = vadd.f32 %v305_v14, %v270_v12  ;;  %v165_v17 = vpop.f32.mrb[1].mxu0  ;;  %v181_v18 = vpop.f32.mrb[1].mxu1 }
  0xf7   :  { %v230_v19 = vadd.f32 %v270_v12, %v165_v17  ;;  %v234_v20 = vadd.f32 %v270_v12, %v181_v18  ;;  %v302_v21 = vpop.f32.mrb[2].mxu0  ;;  %v306_v22 = vpop.f32.mrb[2].mxu1 }
  0xf8   :  { %v240_v23 = vmax.f32 %v232_v15, 0.0  ;;  %v244_v24 = vmax.f32 %v236_v16, 0.0  ;;  %v233_v25 = vadd.f32 %v302_v21, %v270_v12  ;;  %v237_v26 = vadd.f32 %v306_v22, %v270_v12  ;;  %v168_v27 = vpop.f32.mrb[3].mxu0  ;;  %v184_v28 = vpop.f32.mrb[3].mxu1 }
  0xf9   :  { %v238_v29 = vmax.f32 %v230_v19, 0.0  ;;  %v242_v30 = vmax.f32 %v234_v20, 0.0  ;;  %v231_v31 = vadd.f32 %v270_v12, %v168_v27  ;;  %v235_v32 = vadd.f32 %v270_v12, %v184_v28 }
  0xfa   :  { %248 = vst [vmem:[%s421_s3 + $0x10] sm:$0xff] %v240_v23  ;;  %252 = vst [vmem:[%s421_s3 + $0x30] sm:$0xff] %v244_v24  ;;  %v241_v33 = vmax.f32 %v233_v25, 0.0  ;;  %v245_v34 = vmax.f32 %v237_v26, 0.0 }
  0xfb   :  { %246 = vst [vmem:[%s421_s3] sm:$0xff] %v238_v29  ;;  %250 = vst [vmem:[%s421_s3 + $0x20] sm:$0xff] %v242_v30  ;;  %v239_v35 = vmax.f32 %v231_v31, 0.0  ;;  %v243_v36 = vmax.f32 %v235_v32, 0.0 }
  0xfc   :  { %249 = vst [vmem:[%s421_s3 + $0x18] sm:$0xff] %v241_v33  ;;  %253 = vst [vmem:[%s421_s3 + $0x38] sm:$0xff] %v245_v34 }
  0xfd   :  { %247 = vst [vmem:[%s421_s3 + $0x8] sm:$0xff] %v239_v35  ;;  %251 = vst [vmem:[%s421_s3 + $0x28] sm:$0xff] %v243_v36 }

// kernel: encoder_forward.32
= control target key start
LH: loop header
LB: loop body
LE: loop exit
PB: predicated region body
PF: predicated region fallthrough
CT: control target
= control target key end

     0   :  { %s410_s1 = inlined_call_operand.vmem [shape: bf16[128,128], index: 1, kind: input, shape index: {}]   ;;  %s411_s0 = inlined_call_operand.vmem [shape: bf16[64,128], index: 0, kind: input, shape index: {}]   ;;  %s412_s2 = inlined_call_operand.vmem [shape: f32[1,128], index: 2, kind: input, shape index: {}]   ;;  %s413_s3 = inlined_call_operand.vmem [shape: f32[64,128], index: 3, kind: output, shape index: {}]  }
   0x1   :  { %v315_v0 = vld [vmem:[%s410_s1] sm:$0xff]   ;;  %v316_v1 = vld [vmem:[%s410_s1 + $0x8] sm:$0xff]   ;;  %v317_v2 = vld [vmem:[%s410_s1 + $0x10] sm:$0xff]  }
   0x2   :  { %275 = vmatprep.subr.bf16.mxu0 %v315_v0  ;;  %299 = vmatprep.subr.bf16.mxu1 %v315_v0  ;;  %v318_v3 = vld [vmem:[%s410_s1 + $0x18] sm:$0xff]   ;;  %v323_v4 = vld [vmem:[%s411_s0] sm:$0xff]   ;;  %v324_v5 = vld [vmem:[%s411_s0 + $0x10] sm:$0xff]  }
   0x3   :  { %276 = vmatpush3.bf16.msra.mxu0 %v315_v0  ;;  %307 = vmatpush3.bf16.msra.mxu1 %v315_v0  ;;  %v319_v6 = vld [vmem:[%s410_s1 + $0x20] sm:$0xff]   ;;  %v320_v7 = vld [vmem:[%s410_s1 + $0x28] sm:$0xff]   ;;  %v321_v8 = vld [vmem:[%s410_s1 + $0x30] sm:$0xff]  }
   0x4   :  { %277 = vmatprep.subr.bf16.mxu0 %v316_v1  ;;  %300 = vmatprep.subr.bf16.mxu1 %v316_v1  ;;  %v322_v9 = vld [vmem:[%s410_s1 + $0x38] sm:$0xff]   ;;  %v325_v10 = vld [vmem:[%s411_s0 + $0x8] sm:$0xff]   ;;  %v262_v12 = vld [vmem:[%s412_s2] ss:$0 sm:$0xff] }
   0x5   :  { %291 = vmatprep.mubr.bf16.mxu0 %v323_v4  ;;  %295 = vmatprep.mubr.bf16.mxu1 %v324_v5  ;;  %v326_v11 = vld [vmem:[%s411_s0 + $0x18] sm:$0xff]  }
   0x7   :  { %278 = vmatpush3.bf16.msra.mxu0 %v316_v1  ;;  %308 = vmatpush3.bf16.msra.mxu1 %v316_v1 }
   0x8   :  { %279 = vmatprep.subr.bf16.mxu0 %v317_v2  ;;  %301 = vmatprep.subr.bf16.mxu1 %v317_v2 }
   0xb   :  { %280 = vmatpush3.bf16.msra.mxu0 %v317_v2  ;;  %309 = vmatpush3.bf16.msra.mxu1 %v317_v2 }
   0xc   :  { %281 = vmatprep.subr.bf16.mxu0 %v318_v3  ;;  %302 = vmatprep.subr.bf16.mxu1 %v318_v3 }
   0xf   :  { %282 = vmatpush3.bf16.msra.mxu0 %v318_v3  ;;  %310 = vmatpush3.bf16.msra.mxu1 %v318_v3 }
  0x10   :  { %283 = vmatprep.subr.bf16.mxu0 %v319_v6  ;;  %303 = vmatprep.subr.bf16.mxu1 %v319_v6 }
  0x13   :  { %284 = vmatpush3.bf16.msra.mxu0 %v319_v6  ;;  %311 = vmatpush3.bf16.msra.mxu1 %v319_v6 }
  0x14   :  { %285 = vmatprep.subr.bf16.mxu0 %v320_v7  ;;  %304 = vmatprep.subr.bf16.mxu1 %v320_v7 }
  0x17   :  { %286 = vmatpush3.bf16.msra.mxu0 %v320_v7  ;;  %312 = vmatpush3.bf16.msra.mxu1 %v320_v7 }
  0x18   :  { %287 = vmatprep.subr.bf16.mxu0 %v321_v8  ;;  %305 = vmatprep.subr.bf16.mxu1 %v321_v8 }
  0x1b   :  { %288 = vmatpush3.bf16.msra.mxu0 %v321_v8  ;;  %313 = vmatpush3.bf16.msra.mxu1 %v321_v8 }
  0x1c   :  { %289 = vmatprep.subr.bf16.mxu0 %v322_v9  ;;  %306 = vmatprep.subr.bf16.mxu1 %v322_v9 }
  0x1f   :  { %290 = vmatpush3.bf16.msra.mxu0 %v322_v9  ;;  %314 = vmatpush3.bf16.msra.mxu1 %v322_v9 }
  0x22   :  { %292 = vmatmul.mubr.bf16.vlgmr.msra.gmra.mrb[0].mxu0 %v325_v10  ;;  %296 = vmatmul.mubr.bf16.vlgmr.msra.gmra.mrb[0].mxu1 %v326_v11 }
  0xf5   :  { %v293_v13 = vpop.f32.mrb[0].mxu0  ;;  %v297_v14 = vpop.f32.mrb[0].mxu1 }
  0xf6   :  { %v232_v15 = vadd.f32 %v293_v13, %v262_v12  ;;  %v236_v16 = vadd.f32 %v297_v14, %v262_v12  ;;  %v165_v17 = vpop.f32.mrb[1].mxu0  ;;  %v181_v18 = vpop.f32.mrb[1].mxu1 }
  0xf7   :  { %v230_v19 = vadd.f32 %v262_v12, %v165_v17  ;;  %v234_v20 = vadd.f32 %v262_v12, %v181_v18  ;;  %v294_v21 = vpop.f32.mrb[2].mxu0  ;;  %v298_v22 = vpop.f32.mrb[2].mxu1 }
  0xf8   :  { %240 = vst [vmem:[%s413_s3 + $0x10] sm:$0xff] %v232_v15  ;;  %244 = vst [vmem:[%s413_s3 + $0x30] sm:$0xff] %v236_v16  ;;  %v233_v23 = vadd.f32 %v294_v21, %v262_v12  ;;  %v237_v24 = vadd.f32 %v298_v22, %v262_v12  ;;  %v168_v25 = vpop.f32.mrb[3].mxu0  ;;  %v184_v26 = vpop.f32.mrb[3].mxu1 }
  0xf9   :  { %238 = vst [vmem:[%s413_s3] sm:$0xff] %v230_v19  ;;  %242 = vst [vmem:[%s413_s3 + $0x20] sm:$0xff] %v234_v20  ;;  %v231_v27 = vadd.f32 %v262_v12, %v168_v25  ;;  %v235_v28 = vadd.f32 %v262_v12, %v184_v26 }
  0xfa   :  { %241 = vst [vmem:[%s413_s3 + $0x18] sm:$0xff] %v233_v23  ;;  %245 = vst [vmem:[%s413_s3 + $0x38] sm:$0xff] %v237_v24 }
  0xfb   :  { %239 = vst [vmem:[%s413_s3 + $0x8] sm:$0xff] %v231_v27  ;;  %243 = vst [vmem:[%s413_s3 + $0x28] sm:$0xff] %v235_v28 }

// kernel: encoder_forward.34
= control target key start
LH: loop header
LB: loop body
LE: loop exit
PB: predicated region body
PF: predicated region fallthrough
CT: control target
= control target key end

     0   :  { %s614_s1 = inlined_call_operand.vmem [shape: bf16[256,128], index: 1, kind: input, shape index: {}]   ;;  %s615_s0 = inlined_call_operand.vmem [shape: bf16[64,256], index: 0, kind: input, shape index: {}]   ;;  %s616_s2 = inlined_call_operand.vmem [shape: f32[1,128], index: 2, kind: input, shape index: {}]   ;;  %s617_s3 = inlined_call_operand.vmem [shape: f32[64,128], index: 3, kind: input, shape index: {}]   ;;  %s618_s4 = inlined_call_operand.vmem [shape: f32[64,128], index: 4, kind: output, shape index: {}]  }
   0x1   :  { %v438_v0 = vld [vmem:[%s614_s1 + $0x40] sm:$0xff]   ;;  %v440_v2 = vld [vmem:[%s614_s1 + $0x48] sm:$0xff]   ;;  %v442_v4 = vld [vmem:[%s614_s1 + $0x50] sm:$0xff]  }
   0x2   :  { %v439_v1 = vld [vmem:[%s614_s1] sm:$0xff]   ;;  %382 = vmatprep.subr.bf16.mxu0 %v438_v0  ;;  %422 = vmatprep.subr.bf16.mxu1 %v438_v0  ;;  %v441_v3 = vld [vmem:[%s614_s1 + $0x8] sm:$0xff]   ;;  %v443_v5 = vld [vmem:[%s614_s1 + $0x10] sm:$0xff]  }
   0x3   :  { %383 = vmatpush3.bf16.msra.mxu0 %v439_v1  ;;  %430 = vmatpush3.bf16.msra.mxu1 %v439_v1  ;;  %v444_v6 = vld [vmem:[%s614_s1 + $0x58] sm:$0xff]   ;;  %v446_v8 = vld [vmem:[%s614_s1 + $0x60] sm:$0xff]   ;;  %v448_v10 = vld [vmem:[%s614_s1 + $0x68] sm:$0xff]  }
   0x4   :  { %384 = vmatprep.subr.bf16.mxu0 %v440_v2  ;;  %423 = vmatprep.subr.bf16.mxu1 %v440_v2  ;;  %v445_v7 = vld [vmem:[%s614_s1 + $0x18] sm:$0xff]   ;;  %v447_v9 = vld [vmem:[%s614_s1 + $0x20] sm:$0xff]   ;;  %v449_v13 = vld [vmem:[%s614_s1 + $0x28] sm:$0xff]  }
   0x5   :  { %v456_v11 = vld [vmem:[%s615_s0 + $0x4] ss:$8 sps:$4 sm:$0xff]   ;;  %v450_v14 = vld [vmem:[%s614_s1 + $0x70] sm:$0xff]   ;;  %v452_v16 = vld [vmem:[%s614_s1 + $0x78] sm:$0xff]  }
   0x6   :  { %v459_v12 = vld [vmem:[%s615_s0 + $0x24] ss:$8 sps:$4 sm:$0xff]   ;;  %246 = vmatprep.mubr.bf16.mxu0 %v456_v11  ;;  %v451_v15 = vld [vmem:[%s614_s1 + $0x30] sm:$0xff]   ;;  %v453_v17 = vld [vmem:[%s614_s1 + $0x38] sm:$0xff]  }
   0x7   :  { %385 = vmatpush3.bf16.msra.mxu0 %v441_v3  ;;  %431 = vmatpush3.bf16.msra.mxu1 %v441_v3  ;;  %v454_v18 = vld [vmem:[%s615_s0] ss:$8 sps:$4 sm:$0xff]   ;;  %v460_v20 = vld [vmem:[%s615_s0 + $0x14] ss:$8 sps:$4 sm:$0xff]   ;;  %v464_v22 = vld [vmem:[%s615_s0 + $0x10] ss:$8 sps:$4 sm:$0xff]  }
   0x8   :  { %386 = vmatprep.subr.bf16.mxu0 %v442_v4  ;;  %424 = vmatprep.subr.bf16.mxu1 %v442_v4  ;;  %v457_v19 = vld [vmem:[%s615_s0 + $0x20] ss:$8 sps:$4 sm:$0xff]   ;;  %v462_v21 = vld [vmem:[%s615_s0 + $0x34] ss:$8 sps:$4 sm:$0xff]   ;;  %v465_v23 = vld [vmem:[%s615_s0 + $0x30] ss:$8 sps:$4 sm:$0xff]  }
   0x9   :  { %262 = vmatprep.mubr.bf16.mxu1 %v459_v12  ;;  %v381_v27 = vld [vmem:[%s616_s2] ss:$0 sm:$0xff]  ;;  %v322_v41 = vld [vmem:[%s617_s3 + $0x8] sm:$0xff]  ;;  %v323_v61 = vld [vmem:[%s617_s3 + $0x10] sm:$0xff] }
   0xa   :  { %v321_v33 = vld [vmem:[%s617_s3] sm:$0xff]  ;;  %v326_v42 = vld [vmem:[%s617_s3 + $0x28] sm:$0xff]  ;;  %v327_v62 = vld [vmem:[%s617_s3 + $0x30] sm:$0xff] }
   0xb   :  { %387 = vmatpush3.bf16.msra.mxu0 %v443_v5  ;;  %432 = vmatpush3.bf16.msra.mxu1 %v443_v5  ;;  %v325_v34 = vld [vmem:[%s617_s3 + $0x20] sm:$0xff]  ;;  %v324_v5 = vld [vmem:[%s617_s3 + $0x18] sm:$0xff] }
   0xc   :  { %388 = vmatprep.subr.bf16.mxu0 %v444_v6  ;;  %425 = vmatprep.subr.bf16.mxu1 %v444_v6  ;;  %v328_v6 = vld [vmem:[%s617_s3 + $0x38] sm:$0xff] }
   0xf   :  { %389 = vmatpush3.bf16.msra.mxu0 %v445_v7  ;;  %433 = vmatpush3.bf16.msra.mxu1 %v445_v7 }
  0x10   :  { %390 = vmatprep.subr.bf16.mxu0 %v446_v8  ;;  %426 = vmatprep.subr.bf16.mxu1 %v446_v8 }
  0x13   :  { %391 = vmatpush3.bf16.msra.mxu0 %v447_v9  ;;  %434 = vmatpush3.bf16.msra.mxu1 %v447_v9 }
  0x14   :  { %392 = vmatprep.subr.bf16.mxu0 %v448_v10  ;;  %427 = vmatprep.subr.bf16.mxu1 %v448_v10 }
  0x17   :  { %393 = vmatpush3.bf16.msra.mxu0 %v449_v13  ;;  %435 = vmatpush3.bf16.msra.mxu1 %v449_v13 }
  0x18   :  { %394 = vmatprep.subr.bf16.mxu0 %v450_v14  ;;  %428 = vmatprep.subr.bf16.mxu1 %v450_v14 }
  0x1b   :  { %395 = vmatpush3.bf16.msra.mxu0 %v451_v15  ;;  %436 = vmatpush3.bf16.msra.mxu1 %v451_v15 }
  0x1c   :  { %396 = vmatprep.subr.bf16.mxu0 %v452_v16  ;;  %429 = vmatprep.subr.bf16.mxu1 %v452_v16 }
  0x1f   :  { %397 = vmatpush3.bf16.msra.mxu0 %v453_v17  ;;  %437 = vmatpush3.bf16.msra.mxu1 %v453_v17 }
  0x22   :  { %247 = vmatmul.mubr.bf16.vlgmr.msra.gmra.mrb[0].mxu0 %v454_v18  ;;  %263 = vmatmul.mubr.bf16.vlgmr.msra.gmra.mrb[0].mxu1 %v457_v19 }
  0x23   :  { %254 = vmatprep.mubr.bf16.mxu0 %v460_v20  ;;  %270 = vmatprep.mubr.bf16.mxu1 %v462_v21 }
  0x2a   :  { %255 = vmatmul.mubr.bf16.gmra.mrb[4].mxu0 %v464_v22  ;;  %271 = vmatmul.mubr.bf16.gmra.mrb[4].mxu1 %v465_v23 }
  0xf5   :  { %v398_v24 = vpop.f32.mrb[0].mxu0  ;;  %v410_v25 = vpop.f32.mrb[0].mxu1 }
  0xf6   :  { %v399_v26 = vpop.f32.mrb[1].mxu0  ;;  %v411_v28 = vpop.f32.mrb[1].mxu1 }
  0xf7   :  { %v400_v29 = vadd.f32 %v399_v26, %v398_v24  ;;  %v412_v30 = vadd.f32 %v411_v28, %v410_v25  ;;  %v401_v31 = vpop.f32.mrb[2].mxu0  ;;  %v413_v32 = vpop.f32.mrb[2].mxu1 }
  0xf8   :  { %v402_v35 = vpop.f32.mrb[3].mxu0  ;;  %v414_v36 = vpop.f32.mrb[3].mxu1 }
  0xf9   :  { %v313_v37 = vadd.f32 %v400_v29, %v381_v27  ;;  %v317_v38 = vadd.f32 %v412_v30, %v381_v27  ;;  %v403_v39 = vadd.f32 %v402_v35, %v401_v31  ;;  %v415_v40 = vadd.f32 %v414_v36, %v413_v32 }
  0xfb   :  { %v329_v43 = vadd.f32 %v321_v33, %v313_v37  ;;  %v333_v44 = vadd.f32 %v325_v34, %v317_v38  ;;  %v314_v45 = vadd.f32 %v403_v39, %v381_v27  ;;  %v318_v46 = vadd.f32 %v415_v40, %v381_v27 }
  0xfd   :  { %v337_v47 = vmax.f32 %v329_v43, 0.0  ;;  %v341_v48 = vmax.f32 %v333_v44, 0.0  ;;  %v330_v49 = vadd.f32 %v322_v41, %v314_v45  ;;  %v334_v50 = vadd.f32 %v326_v42, %v318_v46  ;;  %v404_v51 = vpop.f32.mrb[4].mxu0  ;;  %v416_v52 = vpop.f32.mrb[4].mxu1 }
  0xfe   :  { %v405_v53 = vpop.f32.mrb[5].mxu0  ;;  %v417_v54 = vpop.f32.mrb[5].mxu1 }
  0xff   :  { %345 = vst [vmem:[%s618_s4] sm:$0xff] %v337_v47  ;;  %349 = vst [vmem:[%s618_s4 + $0x20] sm:$0xff] %v341_v48  ;;  %v338_v55 = vmax.f32 %v330_v49, 0.0  ;;  %v342_v56 = vmax.f32 %v334_v50, 0.0  ;;  %v406_v57 = vadd.f32 %v405_v53, %v404_v51  ;;  %v418_v58 = vadd.f32 %v417_v54, %v416_v52  ;;  %v407_v59 = vpop.f32.mrb[6].mxu0  ;;  %v419_v60 = vpop.f32.mrb[6].mxu1 }
 0x100   :  { %v408_v63 = vpop.f32.mrb[7].mxu0  ;;  %v420_v0 = vpop.f32.mrb[7].mxu1 }
 0x101   :  { %346 = vst [vmem:[%s618_s4 + $0x8] sm:$0xff] %v338_v55  ;;  %350 = vst [vmem:[%s618_s4 + $0x28] sm:$0xff] %v342_v56  ;;  %v315_v1 = vadd.f32 %v406_v57, %v381_v27  ;;  %v319_v2 = vadd.f32 %v418_v58, %v381_v27  ;;  %v409_v3 = vadd.f32 %v408_v63, %v407_v59 }
 0x102   :  { %v421_v4 = vadd.f32 %v420_v0, %v419_v60 }
 0x103   :  { %v331_v7 = vadd.f32 %v323_v61, %v315_v1  ;;  %v335_v8 = vadd.f32 %v327_v62, %v319_v2  ;;  %v316_v9 = vadd.f32 %v409_v3, %v381_v27 }
 0x104   :  { %v320_v10 = vadd.f32 %v421_v4, %v381_v27 }
 0x105   :  { %v339_v11 = vmax.f32 %v331_v7, 0.0  ;;  %v343_v12 = vmax.f32 %v335_v8, 0.0  ;;  %v332_v13 = vadd.f32 %v324_v5, %v316_v9 }
 0x106   :  { %v336_v14 = vadd.f32 %v328_v6, %v320_v10 }
 0x107   :  { %347 = vst [vmem:[%s618_s4 + $0x10] sm:$0xff] %v339_v11  ;;  %351 = vst [vmem:[%s618_s4 + $0x30] sm:$0xff] %v343_v12  ;;  %v340_v15 = vmax.f32 %v332_v13, 0.0 }
 0x108   :  { %v344_v16 = vmax.f32 %v336_v14, 0.0 }
 0x109   :  { %348 = vst [vmem:[%s618_s4 + $0x18] sm:$0xff] %v340_v15 }
 0x10a   :  { %352 = vst [vmem:[%s618_s4 + $0x38] sm:$0xff] %v344_v16 }

// kernel: encoder_forward.35
= control target key start
LH: loop header
LB: loop body
LE: loop exit
PB: predicated region body
PF: predicated region fallthrough
CT: control target
= control target key end

     0   :  { %s566_s1 = inlined_call_operand.vmem [shape: bf16[256,128], index: 1, kind: input, shape index: {}]   ;;  %s567_s0 = inlined_call_operand.vmem [shape: bf16[64,256], index: 0, kind: input, shape index: {}]   ;;  %s568_s2 = inlined_call_operand.vmem [shape: f32[1,128], index: 2, kind: input, shape index: {}]   ;;  %s569_s3 = inlined_call_operand.vmem [shape: f32[64,128], index: 3, kind: output, shape index: {}]  }
   0x1   :  { %v419_v0 = vld [vmem:[%s566_s1 + $0x40] sm:$0xff]   ;;  %v421_v2 = vld [vmem:[%s566_s1 + $0x48] sm:$0xff]   ;;  %v423_v4 = vld [vmem:[%s566_s1 + $0x50] sm:$0xff]  }
   0x2   :  { %v420_v1 = vld [vmem:[%s566_s1] sm:$0xff]   ;;  %363 = vmatprep.subr.bf16.mxu0 %v419_v0  ;;  %403 = vmatprep.subr.bf16.mxu1 %v419_v0  ;;  %v422_v3 = vld [vmem:[%s566_s1 + $0x8] sm:$0xff]   ;;  %v424_v5 = vld [vmem:[%s566_s1 + $0x10] sm:$0xff]  }
   0x3   :  { %364 = vmatpush3.bf16.msra.mxu0 %v420_v1  ;;  %411 = vmatpush3.bf16.msra.mxu1 %v420_v1  ;;  %v425_v6 = vld [vmem:[%s566_s1 + $0x58] sm:$0xff]   ;;  %v427_v8 = vld [vmem:[%s566_s1 + $0x60] sm:$0xff]   ;;  %v429_v10 = vld [vmem:[%s566_s1 + $0x68] sm:$0xff]  }
   0x4   :  { %365 = vmatprep.subr.bf16.mxu0 %v421_v2  ;;  %404 = vmatprep.subr.bf16.mxu1 %v421_v2  ;;  %v426_v7 = vld [vmem:[%s566_s1 + $0x18] sm:$0xff]   ;;  %v428_v9 = vld [vmem:[%s566_s1 + $0x20] sm:$0xff]   ;;  %v430_v13 = vld [vmem:[%s566_s1 + $0x28] sm:$0xff]  }
   0x5   :  { %v437_v11 = vld [vmem:[%s567_s0 + $0x4] ss:$8 sps:$4 sm:$0xff]   ;;  %v431_v14 = vld [vmem:[%s566_s1 + $0x70] sm:$0xff]   ;;  %v433_v16 = vld [vmem:[%s566_s1 + $0x78] sm:$0xff]  }
   0x6   :  { %v440_v12 = vld [vmem:[%s567_s0 + $0x24] ss:$8 sps:$4 sm:$0xff]   ;;  %243 = vmatprep.mubr.bf16.mxu0 %v437_v11  ;;  %v432_v15 = vld [vmem:[%s566_s1 + $0x30] sm:$0xff]   ;;  %v434_v17 = vld [vmem:[%s566_s1 + $0x38] sm:$0xff]  }
   0x7   :  { %366 = vmatpush3.bf16.msra.mxu0 %v422_v3  ;;  %412 = vmatpush3.bf16.msra.mxu1 %v422_v3  ;;  %v435_v18 = vld [vmem:[%s567_s0] ss:$8 sps:$4 sm:$0xff]   ;;  %v441_v20 = vld [vmem:[%s567_s0 + $0x14] ss:$8 sps:$4 sm:$0xff]   ;;  %v445_v22 = vld [vmem:[%s567_s0 + $0x10] ss:$8 sps:$4 sm:$0xff]  }
   0x8   :  { %367 = vmatprep.subr.bf16.mxu0 %v423_v4  ;;  %405 = vmatprep.subr.bf16.mxu1 %v423_v4  ;;  %v438_v19 = vld [vmem:[%s567_s0 + $0x20] ss:$8 sps:$4 sm:$0xff]   ;;  %v443_v21 = vld [vmem:[%s567_s0 + $0x34] ss:$8 sps:$4 sm:$0xff]   ;;  %v446_v23 = vld [vmem:[%s567_s0 + $0x30] ss:$8 sps:$4 sm:$0xff]  }
   0x9   :  { %259 = vmatprep.mubr.bf16.mxu1 %v440_v12  ;;  %v362_v27 = vld [vmem:[%s568_s2] ss:$0 sm:$0xff] }
   0xb   :  { %368 = vmatpush3.bf16.msra.mxu0 %v424_v5  ;;  %413 = vmatpush3.bf16.msra.mxu1 %v424_v5 }
   0xc   :  { %369 = vmatprep.subr.bf16.mxu0 %v425_v6  ;;  %406 = vmatprep.subr.bf16.mxu1 %v425_v6 }
   0xf   :  { %370 = vmatpush3.bf16.msra.mxu0 %v426_v7  ;;  %414 = vmatpush3.bf16.msra.mxu1 %v426_v7 }
  0x10   :  { %371 = vmatprep.subr.bf16.mxu0 %v427_v8  ;;  %407 = vmatprep.subr.bf16.mxu1 %v427_v8 }
  0x13   :  { %372 = vmatpush3.bf16.msra.mxu0 %v428_v9  ;;  %415 = vmatpush3.bf16.msra.mxu1 %v428_v9 }
  0x14   :  { %373 = vmatprep.subr.bf16.mxu0 %v429_v10  ;;  %408 = vmatprep.subr.bf16.mxu1 %v429_v10 }
  0x17   :  { %374 = vmatpush3.bf16.msra.mxu0 %v430_v13  ;;  %416 = vmatpush3.bf16.msra.mxu1 %v430_v13 }
  0x18   :  { %375 = vmatprep.subr.bf16.mxu0 %v431_v14  ;;  %409 = vmatprep.subr.bf16.mxu1 %v431_v14 }
  0x1b   :  { %376 = vmatpush3.bf16.msra.mxu0 %v432_v15  ;;  %417 = vmatpush3.bf16.msra.mxu1 %v432_v15 }
  0x1c   :  { %377 = vmatprep.subr.bf16.mxu0 %v433_v16  ;;  %410 = vmatprep.subr.bf16.mxu1 %v433_v16 }
  0x1f   :  { %378 = vmatpush3.bf16.msra.mxu0 %v434_v17  ;;  %418 = vmatpush3.bf16.msra.mxu1 %v434_v17 }
  0x22   :  { %244 = vmatmul.mubr.bf16.vlgmr.msra.gmra.mrb[0].mxu0 %v435_v18  ;;  %260 = vmatmul.mubr.bf16.vlgmr.msra.gmra.mrb[0].mxu1 %v438_v19 }
  0x23   :  { %251 = vmatprep.mubr.bf16.mxu0 %v441_v20  ;;  %267 = vmatprep.mubr.bf16.mxu1 %v443_v21 }
  0x2a   :  { %252 = vmatmul.mubr.bf16.gmra.mrb[4].mxu0 %v445_v22  ;;  %268 = vmatmul.mubr.bf16.gmra.mrb[4].mxu1 %v446_v23 }
  0xf5   :  { %v379_v24 = vpop.f32.mrb[0].mxu0  ;;  %v391_v25 = vpop.f32.mrb[0].mxu1 }
  0xf6   :  { %v380_v26 = vpop.f32.mrb[1].mxu0  ;;  %v392_v28 = vpop.f32.mrb[1].mxu1 }
  0xf7   :  { %v381_v29 = vadd.f32 %v380_v26, %v379_v24  ;;  %v393_v30 = vadd.f32 %v392_v28, %v391_v25  ;;  %v382_v31 = vpop.f32.mrb[2].mxu0  ;;  %v394_v32 = vpop.f32.mrb[2].mxu1 }
  0xf8   :  { %v383_v33 = vpop.f32.mrb[3].mxu0  ;;  %v395_v34 = vpop.f32.mrb[3].mxu1 }
  0xf9   :  { %v310_v35 = vadd.f32 %v381_v29, %v362_v27  ;;  %v314_v36 = vadd.f32 %v393_v30, %v362_v27  ;;  %v384_v37 = vadd.f32 %v383_v33, %v382_v31  ;;  %v396_v38 = vadd.f32 %v395_v34, %v394_v32 }
  0xfb   :  { %v318_v39 = vmax.f32 %v310_v35, 0.0  ;;  %v322_v40 = vmax.f32 %v314_v36, 0.0  ;;  %v311_v41 = vadd.f32 %v384_v37, %v362_v27  ;;  %v315_v42 = vadd.f32 %v396_v38, %v362_v27 }
  0xfd   :  { %326 = vst [vmem:[%s569_s3] sm:$0xff] %v318_v39  ;;  %330 = vst [vmem:[%s569_s3 + $0x20] sm:$0xff] %v322_v40  ;;  %v319_v43 = vmax.f32 %v311_v41, 0.0  ;;  %v323_v44 = vmax.f32 %v315_v42, 0.0  ;;  %v385_v45 = vpop.f32.mrb[4].mxu0  ;;  %v397_v46 = vpop.f32.mrb[4].mxu1 }
  0xfe   :  { %v386_v47 = vpop.f32.mrb[5].mxu0  ;;  %v398_v48 = vpop.f32.mrb[5].mxu1 }
  0xff   :  { %327 = vst [vmem:[%s569_s3 + $0x8] sm:$0xff] %v319_v43  ;;  %331 = vst [vmem:[%s569_s3 + $0x28] sm:$0xff] %v323_v44  ;;  %v387_v49 = vadd.f32 %v386_v47, %v385_v45  ;;  %v399_v50 = vadd.f32 %v398_v48, %v397_v46  ;;  %v388_v51 = vpop.f32.mrb[6].mxu0  ;;  %v400_v52 = vpop.f32.mrb[6].mxu1 }
 0x100   :  { %v389_v53 = vpop.f32.mrb[7].mxu0  ;;  %v401_v54 = vpop.f32.mrb[7].mxu1 }
 0x101   :  { %v312_v55 = vadd.f32 %v387_v49, %v362_v27  ;;  %v316_v56 = vadd.f32 %v399_v50, %v362_v27  ;;  %v390_v57 = vadd.f32 %v389_v53, %v388_v51  ;;  %v402_v58 = vadd.f32 %v401_v54, %v400_v52 }
 0x103   :  { %v320_v59 = vmax.f32 %v312_v55, 0.0  ;;  %v324_v60 = vmax.f32 %v316_v56, 0.0  ;;  %v313_v61 = vadd.f32 %v390_v57, %v362_v27  ;;  %v317_v62 = vadd.f32 %v402_v58, %v362_v27 }
 0x105   :  { %328 = vst [vmem:[%s569_s3 + $0x10] sm:$0xff] %v320_v59  ;;  %332 = vst [vmem:[%s569_s3 + $0x30] sm:$0xff] %v324_v60  ;;  %v321_v63 = vmax.f32 %v313_v61, 0.0  ;;  %v325_v0 = vmax.f32 %v317_v62, 0.0 }
 0x107   :  { %329 = vst [vmem:[%s569_s3 + $0x18] sm:$0xff] %v321_v63  ;;  %333 = vst [vmem:[%s569_s3 + $0x38] sm:$0xff] %v325_v0 }

// kernel: encoder_forward.38
= control target key start
LH: loop header
LB: loop body
LE: loop exit
PB: predicated region body
PF: predicated region fallthrough
CT: control target
= control target key end

     0   :  { %s373_s1 = inlined_call_operand.vmem [shape: bf16[256,128], index: 1, kind: input, shape index: {}]   ;;  %s374_s0 = inlined_call_operand.vmem [shape: bf16[16,256], index: 0, kind: input, shape index: {}]   ;;  %s375_s2 = inlined_call_operand.vmem [shape: f32[1,128], index: 2, kind: input, shape index: {}]   ;;  %s376_s3 = inlined_call_operand.vmem [shape: f32[16,128], index: 3, kind: output, shape index: {}]  }
   0x1   :  { %v271_v0 = vld [vmem:[%s373_s1 + $0x40] sm:$0xff]   ;;  %v273_v2 = vld [vmem:[%s373_s1 + $0x48] sm:$0xff]   ;;  %v275_v4 = vld [vmem:[%s373_s1 + $0x50] sm:$0xff]  }
   0x2   :  { %v272_v1 = vld [vmem:[%s373_s1] sm:$0xff]   ;;  %249 = vmatprep.subr.bf16.mxu0 %v271_v0  ;;  %v274_v3 = vld [vmem:[%s373_s1 + $0x8] sm:$0xff]   ;;  %v276_v5 = vld [vmem:[%s373_s1 + $0x10] sm:$0xff]  }
   0x3   :  { %250 = vmatpush3.bf16.msra.mxu0 %v272_v1  ;;  %v277_v6 = vld [vmem:[%s373_s1 + $0x58] sm:$0xff]   ;;  %v279_v8 = vld [vmem:[%s373_s1 + $0x60] sm:$0xff]   ;;  %v281_v10 = vld [vmem:[%s373_s1 + $0x68] sm:$0xff]  }
   0x4   :  { %251 = vmatprep.subr.bf16.mxu0 %v273_v2  ;;  %v278_v7 = vld [vmem:[%s373_s1 + $0x18] sm:$0xff]   ;;  %v280_v9 = vld [vmem:[%s373_s1 + $0x20] sm:$0xff]   ;;  %v282_v12 = vld [vmem:[%s373_s1 + $0x28] sm:$0xff]  }
   0x5   :  { %v289_v11 = vld [vmem:[%s374_s0 + $0x4] ss:$8 sps:$4 sm:$0xff]   ;;  %v283_v13 = vld [vmem:[%s373_s1 + $0x70] sm:$0xff]   ;;  %v285_v15 = vld [vmem:[%s373_s1 + $0x78] sm:$0xff]  }
   0x6   :  { %195 = vmatprep.mubr.bf16.mxu0 %v289_v11  ;;  %v284_v14 = vld [vmem:[%s373_s1 + $0x30] sm:$0xff]   ;;  %v286_v16 = vld [vmem:[%s373_s1 + $0x38] sm:$0xff]   ;;  %v287_v17 = vld [vmem:[%s374_s0] ss:$8 sps:$4 sm:$0xff]  }
   0x7   :  { %252 = vmatpush3.bf16.msra.mxu0 %v274_v3  ;;  %v248_v20 = vld [vmem:[%s375_s2] ss:$0 sm:$0xff] }
   0x8   :  { %253 = vmatprep.subr.bf16.mxu0 %v275_v4 }
   0xb   :  { %254 = vmatpush3.bf16.msra.mxu0 %v276_v5 }
   0xc   :  { %255 = vmatprep.subr.bf16.mxu0 %v277_v6 }
   0xf   :  { %256 = vmatpush3.bf16.msra.mxu0 %v278_v7 }
  0x10   :  { %257 = vmatprep.subr.bf16.mxu0 %v279_v8 }
  0x13   :  { %258 = vmatpush3.bf16.msra.mxu0 %v280_v9 }
  0x14   :  { %259 = vmatprep.subr.bf16.mxu0 %v281_v10 }
  0x17   :  { %260 = vmatpush3.bf16.msra.mxu0 %v282_v12 }
  0x18   :  { %261 = vmatprep.subr.bf16.mxu0 %v283_v13 }
  0x1b   :  { %262 = vmatpush3.bf16.msra.mxu0 %v284_v14 }
  0x1c   :  { %263 = vmatprep.subr.bf16.mxu0 %v285_v15 }
  0x1f   :  { %264 = vmatpush3.bf16.msra.mxu0 %v286_v16 }
  0x22   :  { %196 = vmatmul.mubr.bf16.vlgmr.msra.gmra.mrb[0].mxu0 %v287_v17 }
  0xf5   :  { %v265_v18 = vpop.f32.mrb[0].mxu0 }
  0xf6   :  { %v266_v19 = vpop.f32.mrb[1].mxu0 }
  0xf7   :  { %v267_v21 = vadd.f32 %v266_v19, %v265_v18  ;;  %v268_v22 = vpop.f32.mrb[2].mxu0 }
  0xf8   :  { %v269_v23 = vpop.f32.mrb[3].mxu0 }
  0xf9   :  { %v220_v24 = vadd.f32 %v267_v21, %v248_v20  ;;  %v270_v25 = vadd.f32 %v269_v23, %v268_v22 }
  0xfb   :  { %v222_v26 = vmax.f32 %v220_v24, 0.0  ;;  %v221_v27 = vadd.f32 %v270_v25, %v248_v20 }
  0xfd   :  { %224 = vst [vmem:[%s376_s3] sm:$0xff] %v222_v26  ;;  %v223_v28 = vmax.f32 %v221_v27, 0.0 }
  0xff   :  { %225 = vst [vmem:[%s376_s3 + $0x8] sm:$0xff] %v223_v28 }

// kernel: encoder_forward.37
= control target key start
LH: loop header
LB: loop body
LE: loop exit
PB: predicated region body
PF: predicated region fallthrough
CT: control target
= control target key end

     0   :  { %v210_v0 = vmov 0.0   ;;  %vm211_vm0 = vmmov 0   ;;  %s268_s1 = inlined_call_operand.vmem [shape: bf16[128,128], index: 1, kind: input, shape index: {}]   ;;  %s269_s0 = inlined_call_operand.vmem [shape: bf16[16,128], index: 0, kind: input, shape index: {}]   ;;  %s270_s2 = inlined_call_operand.vmem [shape: f32[1,128], index: 2, kind: input, shape index: {}]   ;;  %s271_s3 = inlined_call_operand.vmem [shape: f32[16,128], index: 3, kind: output, shape index: {}]  }
   0x1   :  { %179 = vmatprep.subr.bf16.mxu0 %v210_v0  ;;  %v201_v1 = vld [vmem:[%s268_s1] sm:$0xff]   ;;  %195 = vmatprep.mubr.msk.bf16.mxu0 %vm211_vm0, %v210_v0  ;;  %v202_v2 = vld [vmem:[%s268_s1 + $0x8] sm:$0xff]   ;;  %v203_v3 = vld [vmem:[%s268_s1 + $0x10] sm:$0xff]  }
   0x2   :  { %180 = vmatpush3.bf16.msra.mxu0 %v201_v1  ;;  %v204_v4 = vld [vmem:[%s268_s1 + $0x18] sm:$0xff]   ;;  %v205_v5 = vld [vmem:[%s268_s1 + $0x20] sm:$0xff]   ;;  %v206_v6 = vld [vmem:[%s268_s1 + $0x28] sm:$0xff]  }
   0x3   :  { %181 = vmatprep.subr.bf16.mxu0 %v210_v0  ;;  %v207_v7 = vld [vmem:[%s268_s1 + $0x30] sm:$0xff]   ;;  %v208_v8 = vld [vmem:[%s268_s1 + $0x38] sm:$0xff]   ;;  %v209_v9 = vld [vmem:[%s269_s0] sm:$0xff]  }
   0x4   :  { %v169_v10 = vld [vmem:[%s270_s2] ss:$0 sm:$0xff] }
   0x6   :  { %182 = vmatpush3.bf16.msra.mxu0 %v202_v2 }
   0x7   :  { %183 = vmatprep.subr.bf16.mxu0 %v210_v0 }
   0xa   :  { %184 = vmatpush3.bf16.msra.mxu0 %v203_v3 }
   0xb   :  { %185 = vmatprep.subr.bf16.mxu0 %v210_v0 }
   0xe   :  { %186 = vmatpush3.bf16.msra.mxu0 %v204_v4 }
   0xf   :  { %187 = vmatprep.subr.bf16.mxu0 %v210_v0 }
  0x12   :  { %188 = vmatpush3.bf16.msra.mxu0 %v205_v5 }
  0x13   :  { %189 = vmatprep.subr.bf16.mxu0 %v210_v0 }
  0x16   :  { %190 = vmatpush3.bf16.msra.mxu0 %v206_v6 }
  0x17   :  { %191 = vmatprep.subr.bf16.mxu0 %v210_v0 }
  0x1a   :  { %192 = vmatpush3.bf16.msra.mxu0 %v207_v7 }
  0x1b   :  { %193 = vmatprep.subr.bf16.mxu0 %v210_v0 }
  0x1e   :  { %194 = vmatpush3.bf16.msra.mxu0 %v208_v8 }
  0x21   :  { %196 = vmatmul.mubr.bf16.vlgmr.msra.gmra.mrb[0].mxu0 %v209_v9 }
  0xf4   :  { %v129_v11 = vpop.f32.mrb[0].mxu0 }
  0xf5   :  { %v152_v12 = vadd.f32 %v169_v10, %v129_v11  ;;  %v197_v13 = vpop.f32.mrb[1].mxu0 }
  0xf6   :  { %v132_v14 = vpop.f32.mrb[2].mxu0 }
  0xf7   :  { %154 = vst [vmem:[%s271_s3] sm:$0xff] %v152_v12  ;;  %v153_v15 = vadd.f32 %v169_v10, %v132_v14  ;;  %v198_v16 = vpop.f32.mrb[3].mxu0 }
  0xf9   :  { %155 = vst [vmem:[%s271_s3 + $0x8] sm:$0xff] %v153_v15 }

// kernel: encoder_forward.39
= control target key start
LH: loop header
LB: loop body
LE: loop exit
PB: predicated region body
PF: predicated region fallthrough
CT: control target
= control target key end

     0   :  { %v459_v1 = vmov 0.0   ;;  %vm460_vm0 = vmmov 0   ;;  %s582_s1 = inlined_call_operand.vmem [shape: bf16[384,128], index: 1, kind: input, shape index: {}]   ;;  %s583_s0 = inlined_call_operand.vmem [shape: bf16[16,384], index: 0, kind: input, shape index: {}]   ;;  %s584_s2 = inlined_call_operand.vmem [shape: f32[1,128], index: 2, kind: input, shape index: {}]   ;;  %s585_s3 = inlined_call_operand.vmem [shape: f32[16,128], index: 3, kind: input, shape index: {}]   ;;  %s586_s4 = inlined_call_operand.vmem [shape: f32[16,128], index: 4, kind: output, shape index: {}]  }
   0x1   :  { %v431_v0 = vld [vmem:[%s582_s1 + $0x40] sm:$0xff]   ;;  %409 = vmatprep.subr.bf16.mxu1 %v459_v1  ;;  %425 = vmatprep.mubr.msk.bf16.mxu1 %vm460_vm0, %v459_v1  ;;  %v434_v4 = vld [vmem:[%s582_s1 + $0x48] sm:$0xff]   ;;  %v437_v7 = vld [vmem:[%s582_s1 + $0x50] sm:$0xff]  }
   0x2   :  { %v432_v2 = vld [vmem:[%s582_s1] sm:$0xff]   ;;  %378 = vmatprep.subr.bf16.mxu0 %v431_v0  ;;  %v435_v5 = vld [vmem:[%s582_s1 + $0x8] sm:$0xff]   ;;  %v438_v8 = vld [vmem:[%s582_s1 + $0x10] sm:$0xff]  }
   0x3   :  { %v433_v3 = vld [vmem:[%s582_s1 + $0x80] sm:$0xff]   ;;  %379 = vmatpush3.bf16.msra.mxu0 %v432_v2  ;;  %v436_v6 = vld [vmem:[%s582_s1 + $0x88] sm:$0xff]   ;;  %v439_v9 = vld [vmem:[%s582_s1 + $0x90] sm:$0xff]  }
   0x4   :  { %410 = vmatpush3.bf16.msra.mxu1 %v433_v3  ;;  %380 = vmatprep.subr.bf16.mxu0 %v434_v4  ;;  %v440_v10 = vld [vmem:[%s582_s1 + $0x58] sm:$0xff]   ;;  %v443_v13 = vld [vmem:[%s582_s1 + $0x60] sm:$0xff]   ;;  %v446_v16 = vld [vmem:[%s582_s1 + $0x68] sm:$0xff]  }
   0x5   :  { %411 = vmatprep.subr.bf16.mxu1 %v459_v1  ;;  %v441_v11 = vld [vmem:[%s582_s1 + $0x18] sm:$0xff]   ;;  %v444_v14 = vld [vmem:[%s582_s1 + $0x20] sm:$0xff]   ;;  %v447_v17 = vld [vmem:[%s582_s1 + $0x28] sm:$0xff]  }
   0x6   :  { %v442_v12 = vld [vmem:[%s582_s1 + $0x98] sm:$0xff]   ;;  %v445_v15 = vld [vmem:[%s582_s1 + $0xa0] sm:$0xff]   ;;  %v448_v18 = vld [vmem:[%s582_s1 + $0xa8] sm:$0xff]  }
   0x7   :  { %381 = vmatpush3.bf16.msra.mxu0 %v435_v5  ;;  %v449_v19 = vld [vmem:[%s582_s1 + $0x70] sm:$0xff]   ;;  %v452_v22 = vld [vmem:[%s582_s1 + $0x78] sm:$0xff]   ;;  %v455_v26 = vld [vmem:[%s583_s0] ss:$12 sps:$4 sm:$0xff]  }
   0x8   :  { %412 = vmatpush3.bf16.msra.mxu1 %v436_v6  ;;  %382 = vmatprep.subr.bf16.mxu0 %v437_v7  ;;  %v450_v20 = vld [vmem:[%s582_s1 + $0x30] sm:$0xff]   ;;  %v453_v24 = vld [vmem:[%s582_s1 + $0x38] sm:$0xff]   ;;  %v377_v34 = vld [vmem:[%s584_s2] ss:$0 sm:$0xff] }
   0x9   :  { %413 = vmatprep.subr.bf16.mxu1 %v459_v1  ;;  %v451_v21 = vld [vmem:[%s582_s1 + $0xb0] sm:$0xff]   ;;  %v454_v25 = vld [vmem:[%s582_s1 + $0xb8] sm:$0xff]   ;;  %v338_v40 = vld [vmem:[%s585_s3] sm:$0xff] }
   0xa   :  { %v457_v23 = vld [vmem:[%s583_s0 + $0x4] ss:$12 sps:$4 sm:$0xff]   ;;  %v458_v27 = vld [vmem:[%s583_s0 + $0x8] ss:$12 sps:$4 sm:$0xff]  }
   0xb   :  { %383 = vmatpush3.bf16.msra.mxu0 %v438_v8  ;;  %270 = vmatprep.mubr.bf16.mxu0 %v457_v23  ;;  %v339_v43 = vld [vmem:[%s585_s3 + $0x8] sm:$0xff] }
   0xc   :  { %414 = vmatpush3.bf16.msra.mxu1 %v439_v9  ;;  %384 = vmatprep.subr.bf16.mxu0 %v440_v10 }
   0xd   :  { %415 = vmatprep.subr.bf16.mxu1 %v459_v1 }
   0xf   :  { %385 = vmatpush3.bf16.msra.mxu0 %v441_v11 }
  0x10   :  { %416 = vmatpush3.bf16.msra.mxu1 %v442_v12  ;;  %386 = vmatprep.subr.bf16.mxu0 %v443_v13 }
  0x11   :  { %417 = vmatprep.subr.bf16.mxu1 %v459_v1 }
  0x13   :  { %387 = vmatpush3.bf16.msra.mxu0 %v444_v14 }
  0x14   :  { %418 = vmatpush3.bf16.msra.mxu1 %v445_v15  ;;  %388 = vmatprep.subr.bf16.mxu0 %v446_v16 }
  0x15   :  { %419 = vmatprep.subr.bf16.mxu1 %v459_v1 }
  0x17   :  { %389 = vmatpush3.bf16.msra.mxu0 %v447_v17 }
  0x18   :  { %420 = vmatpush3.bf16.msra.mxu1 %v448_v18  ;;  %390 = vmatprep.subr.bf16.mxu0 %v449_v19 }
  0x19   :  { %421 = vmatprep.subr.bf16.mxu1 %v459_v1 }
  0x1b   :  { %391 = vmatpush3.bf16.msra.mxu0 %v450_v20 }
  0x1c   :  { %422 = vmatpush3.bf16.msra.mxu1 %v451_v21  ;;  %392 = vmatprep.subr.bf16.mxu0 %v452_v22 }
  0x1d   :  { %423 = vmatprep.subr.bf16.mxu1 %v459_v1 }
  0x1f   :  { %393 = vmatpush3.bf16.msra.mxu0 %v453_v24 }
  0x20   :  { %424 = vmatpush3.bf16.msra.mxu1 %v454_v25 }
  0x22   :  { %271 = vmatmul.mubr.bf16.vlgmr.msra.gmra.mrb[0].mxu0 %v455_v26 }
  0x23   :  { %426 = vmatmul.mubr.bf16.vlgmr.msra.gmra.mrb[0].mxu1 %v458_v27 }
  0xf5   :  { %v394_v28 = vpop.f32.mrb[0].mxu0 }
  0xf6   :  { %v313_v29 = vpop.f32.mrb[0].mxu1  ;;  %v395_v30 = vpop.f32.mrb[1].mxu0 }
  0xf7   :  { %v396_v31 = vadd.f32 %v395_v30, %v394_v28  ;;  %v427_v32 = vpop.f32.mrb[1].mxu1  ;;  %v397_v33 = vpop.f32.mrb[2].mxu0 }
  0xf8   :  { %v316_v35 = vpop.f32.mrb[2].mxu1  ;;  %v398_v36 = vpop.f32.mrb[3].mxu0 }
  0xf9   :  { %v314_v37 = vadd.f32 %v396_v31, %v313_v29  ;;  %v399_v38 = vadd.f32 %v398_v36, %v397_v33  ;;  %v428_v39 = vpop.f32.mrb[3].mxu1 }
  0xfb   :  { %v336_v41 = vadd.f32 %v377_v34, %v314_v37  ;;  %v317_v42 = vadd.f32 %v399_v38, %v316_v35 }
  0xfd   :  { %v340_v44 = vadd.f32 %v338_v40, %v336_v41  ;;  %v337_v45 = vadd.f32 %v377_v34, %v317_v42 }
  0xff   :  { %v342_v46 = vmax.f32 %v340_v44, 0.0  ;;  %v341_v47 = vadd.f32 %v339_v43, %v337_v45 }
 0x101   :  { %344 = vst [vmem:[%s586_s4] sm:$0xff] %v342_v46  ;;  %v343_v48 = vmax.f32 %v341_v47, 0.0 }
 0x103   :  { %345 = vst [vmem:[%s586_s4 + $0x8] sm:$0xff] %v343_v48 }

// kernel: encoder_forward.40
= control target key start
LH: loop header
LB: loop body
LE: loop exit
PB: predicated region body
PF: predicated region fallthrough
CT: control target
= control target key end

     0   :  { %v452_v1 = vmov 0.0   ;;  %vm453_vm0 = vmmov 0   ;;  %s564_s1 = inlined_call_operand.vmem [shape: bf16[384,128], index: 1, kind: input, shape index: {}]   ;;  %s565_s0 = inlined_call_operand.vmem [shape: bf16[16,384], index: 0, kind: input, shape index: {}]   ;;  %s566_s2 = inlined_call_operand.vmem [shape: f32[1,128], index: 2, kind: input, shape index: {}]   ;;  %s567_s3 = inlined_call_operand.vmem [shape: f32[16,128], index: 3, kind: output, shape index: {}]  }
   0x1   :  { %v424_v0 = vld [vmem:[%s564_s1 + $0x40] sm:$0xff]   ;;  %402 = vmatprep.subr.bf16.mxu1 %v452_v1  ;;  %418 = vmatprep.mubr.msk.bf16.mxu1 %vm453_vm0, %v452_v1  ;;  %v427_v4 = vld [vmem:[%s564_s1 + $0x48] sm:$0xff]   ;;  %v430_v7 = vld [vmem:[%s564_s1 + $0x50] sm:$0xff]  }
   0x2   :  { %v425_v2 = vld [vmem:[%s564_s1] sm:$0xff]   ;;  %371 = vmatprep.subr.bf16.mxu0 %v424_v0  ;;  %v428_v5 = vld [vmem:[%s564_s1 + $0x8] sm:$0xff]   ;;  %v431_v8 = vld [vmem:[%s564_s1 + $0x10] sm:$0xff]  }
   0x3   :  { %v426_v3 = vld [vmem:[%s564_s1 + $0x80] sm:$0xff]   ;;  %372 = vmatpush3.bf16.msra.mxu0 %v425_v2  ;;  %v429_v6 = vld [vmem:[%s564_s1 + $0x88] sm:$0xff]   ;;  %v432_v9 = vld [vmem:[%s564_s1 + $0x90] sm:$0xff]  }
   0x4   :  { %403 = vmatpush3.bf16.msra.mxu1 %v426_v3  ;;  %373 = vmatprep.subr.bf16.mxu0 %v427_v4  ;;  %v433_v10 = vld [vmem:[%s564_s1 + $0x58] sm:$0xff]   ;;  %v436_v13 = vld [vmem:[%s564_s1 + $0x60] sm:$0xff]   ;;  %v439_v16 = vld [vmem:[%s564_s1 + $0x68] sm:$0xff]  }
   0x5   :  { %404 = vmatprep.subr.bf16.mxu1 %v452_v1  ;;  %v434_v11 = vld [vmem:[%s564_s1 + $0x18] sm:$0xff]   ;;  %v437_v14 = vld [vmem:[%s564_s1 + $0x20] sm:$0xff]   ;;  %v440_v17 = vld [vmem:[%s564_s1 + $0x28] sm:$0xff]  }
   0x6   :  { %v435_v12 = vld [vmem:[%s564_s1 + $0x98] sm:$0xff]   ;;  %v438_v15 = vld [vmem:[%s564_s1 + $0xa0] sm:$0xff]   ;;  %v441_v18 = vld [vmem:[%s564_s1 + $0xa8] sm:$0xff]  }
   0x7   :  { %374 = vmatpush3.bf16.msra.mxu0 %v428_v5  ;;  %v442_v19 = vld [vmem:[%s564_s1 + $0x70] sm:$0xff]   ;;  %v445_v22 = vld [vmem:[%s564_s1 + $0x78] sm:$0xff]   ;;  %v448_v26 = vld [vmem:[%s565_s0] ss:$12 sps:$4 sm:$0xff]  }
   0x8   :  { %405 = vmatpush3.bf16.msra.mxu1 %v429_v6  ;;  %375 = vmatprep.subr.bf16.mxu0 %v430_v7  ;;  %v443_v20 = vld [vmem:[%s564_s1 + $0x30] sm:$0xff]   ;;  %v446_v24 = vld [vmem:[%s564_s1 + $0x38] sm:$0xff]   ;;  %v370_v34 = vld [vmem:[%s566_s2] ss:$0 sm:$0xff] }
   0x9   :  { %406 = vmatprep.subr.bf16.mxu1 %v452_v1  ;;  %v444_v21 = vld [vmem:[%s564_s1 + $0xb0] sm:$0xff]   ;;  %v447_v25 = vld [vmem:[%s564_s1 + $0xb8] sm:$0xff]  }
   0xa   :  { %v450_v23 = vld [vmem:[%s565_s0 + $0x4] ss:$12 sps:$4 sm:$0xff]   ;;  %v451_v27 = vld [vmem:[%s565_s0 + $0x8] ss:$12 sps:$4 sm:$0xff]  }
   0xb   :  { %376 = vmatpush3.bf16.msra.mxu0 %v431_v8  ;;  %267 = vmatprep.mubr.bf16.mxu0 %v450_v23 }
   0xc   :  { %407 = vmatpush3.bf16.msra.mxu1 %v432_v9  ;;  %377 = vmatprep.subr.bf16.mxu0 %v433_v10 }
   0xd   :  { %408 = vmatprep.subr.bf16.mxu1 %v452_v1 }
   0xf   :  { %378 = vmatpush3.bf16.msra.mxu0 %v434_v11 }
  0x10   :  { %409 = vmatpush3.bf16.msra.mxu1 %v435_v12  ;;  %379 = vmatprep.subr.bf16.mxu0 %v436_v13 }
  0x11   :  { %410 = vmatprep.subr.bf16.mxu1 %v452_v1 }
  0x13   :  { %380 = vmatpush3.bf16.msra.mxu0 %v437_v14 }
  0x14   :  { %411 = vmatpush3.bf16.msra.mxu1 %v438_v15  ;;  %381 = vmatprep.subr.bf16.mxu0 %v439_v16 }
  0x15   :  { %412 = vmatprep.subr.bf16.mxu1 %v452_v1 }
  0x17   :  { %382 = vmatpush3.bf16.msra.mxu0 %v440_v17 }
  0x18   :  { %413 = vmatpush3.bf16.msra.mxu1 %v441_v18  ;;  %383 = vmatprep.subr.bf16.mxu0 %v442_v19 }
  0x19   :  { %414 = vmatprep.subr.bf16.mxu1 %v452_v1 }
  0x1b   :  { %384 = vmatpush3.bf16.msra.mxu0 %v443_v20 }
  0x1c   :  { %415 = vmatpush3.bf16.msra.mxu1 %v444_v21  ;;  %385 = vmatprep.subr.bf16.mxu0 %v445_v22 }
  0x1d   :  { %416 = vmatprep.subr.bf16.mxu1 %v452_v1 }
  0x1f   :  { %386 = vmatpush3.bf16.msra.mxu0 %v446_v24 }
  0x20   :  { %417 = vmatpush3.bf16.msra.mxu1 %v447_v25 }
  0x22   :  { %268 = vmatmul.mubr.bf16.vlgmr.msra.gmra.mrb[0].mxu0 %v448_v26 }
  0x23   :  { %419 = vmatmul.mubr.bf16.vlgmr.msra.gmra.mrb[0].mxu1 %v451_v27 }
  0xf5   :  { %v387_v28 = vpop.f32.mrb[0].mxu0 }
  0xf6   :  { %v310_v29 = vpop.f32.mrb[0].mxu1  ;;  %v388_v30 = vpop.f32.mrb[1].mxu0 }
  0xf7   :  { %v389_v31 = vadd.f32 %v388_v30, %v387_v28  ;;  %v420_v32 = vpop.f32.mrb[1].mxu1  ;;  %v390_v33 = vpop.f32.mrb[2].mxu0 }
  0xf8   :  { %v313_v35 = vpop.f32.mrb[2].mxu1  ;;  %v391_v36 = vpop.f32.mrb[3].mxu0 }
  0xf9   :  { %v311_v37 = vadd.f32 %v389_v31, %v310_v29  ;;  %v392_v38 = vadd.f32 %v391_v36, %v390_v33  ;;  %v421_v39 = vpop.f32.mrb[3].mxu1 }
  0xfb   :  { %v333_v40 = vadd.f32 %v370_v34, %v311_v37  ;;  %v314_v41 = vadd.f32 %v392_v38, %v313_v35 }
  0xfd   :  { %v335_v42 = vmax.f32 %v333_v40, 0.0  ;;  %v334_v43 = vadd.f32 %v370_v34, %v314_v41 }
  0xff   :  { %337 = vst [vmem:[%s567_s3] sm:$0xff] %v335_v42  ;;  %v336_v44 = vmax.f32 %v334_v43, 0.0 }
 0x101   :  { %338 = vst [vmem:[%s567_s3 + $0x8] sm:$0xff] %v336_v44 }

// kernel: encoder_forward.43
= control target key start
LH: loop header
LB: loop body
LE: loop exit
PB: predicated region body
PF: predicated region fallthrough
CT: control target
= control target key end

     0   :  { %v434_v1 = vmov 0.0   ;;  %vm435_vm0 = vmmov 0   ;;  %s540_s1 = inlined_call_operand.vmem [shape: bf16[384,128], index: 1, kind: input, shape index: {}]   ;;  %s541_s0 = inlined_call_operand.vmem [shape: bf16[8,384], index: 0, kind: input, shape index: {}]   ;;  %s542_s2 = inlined_call_operand.vmem [shape: f32[1,128], index: 2, kind: input, shape index: {}]   ;;  %s543_s3 = inlined_call_operand.vmem [shape: f32[8,128], index: 3, kind: output, shape index: {}]  }
   0x1   :  { %v407_v0 = vld [vmem:[%s540_s1 + $0x40] sm:$0xff]   ;;  %385 = vmatprep.subr.bf16.mxu1 %v434_v1  ;;  %401 = vmatprep.mubr.msk.bf16.mxu1 %vm435_vm0, %v434_v1  ;;  %v410_v4 = vld [vmem:[%s540_s1 + $0x48] sm:$0xff]   ;;  %v413_v7 = vld [vmem:[%s540_s1 + $0x50] sm:$0xff]  }
   0x2   :  { %v408_v2 = vld [vmem:[%s540_s1] sm:$0xff]   ;;  %354 = vmatprep.subr.bf16.mxu0 %v407_v0  ;;  %v411_v5 = vld [vmem:[%s540_s1 + $0x8] sm:$0xff]   ;;  %v414_v8 = vld [vmem:[%s540_s1 + $0x10] sm:$0xff]  }
   0x3   :  { %v409_v3 = vld [vmem:[%s540_s1 + $0x80] sm:$0xff]   ;;  %355 = vmatpush3.bf16.msra.mxu0 %v408_v2  ;;  %v412_v6 = vld [vmem:[%s540_s1 + $0x88] sm:$0xff]   ;;  %v415_v9 = vld [vmem:[%s540_s1 + $0x90] sm:$0xff]  }
   0x4   :  { %386 = vmatpush3.bf16.msra.mxu1 %v409_v3  ;;  %356 = vmatprep.subr.bf16.mxu0 %v410_v4  ;;  %v416_v10 = vld [vmem:[%s540_s1 + $0x58] sm:$0xff]   ;;  %v419_v13 = vld [vmem:[%s540_s1 + $0x60] sm:$0xff]   ;;  %v422_v16 = vld [vmem:[%s540_s1 + $0x68] sm:$0xff]  }
   0x5   :  { %387 = vmatprep.subr.bf16.mxu1 %v434_v1  ;;  %v417_v11 = vld [vmem:[%s540_s1 + $0x18] sm:$0xff]   ;;  %v420_v14 = vld [vmem:[%s540_s1 + $0x20] sm:$0xff]   ;;  %v423_v17 = vld [vmem:[%s540_s1 + $0x28] sm:$0xff]  }
   0x6   :  { %v418_v12 = vld [vmem:[%s540_s1 + $0x98] sm:$0xff]   ;;  %v421_v15 = vld [vmem:[%s540_s1 + $0xa0] sm:$0xff]   ;;  %v424_v18 = vld [vmem:[%s540_s1 + $0xa8] sm:$0xff]  }
   0x7   :  { %357 = vmatpush3.bf16.msra.mxu0 %v411_v5  ;;  %v425_v19 = vld [vmem:[%s540_s1 + $0x70] sm:$0xff]   ;;  %v428_v22 = vld [vmem:[%s540_s1 + $0x78] sm:$0xff]   ;;  %v21_v23 = vld [vmem:[%s541_s0] sm:$0xff] }
   0x8   :  { %388 = vmatpush3.bf16.msra.mxu1 %v412_v6  ;;  %358 = vmatprep.subr.bf16.mxu0 %v413_v7  ;;  %v426_v20 = vld [vmem:[%s540_s1 + $0x30] sm:$0xff]   ;;  %v327_v24 = vcombine.high %v21_v23, %v21_v23  ;;  %v429_v25 = vld [vmem:[%s540_s1 + $0x38] sm:$0xff]   ;;  %v326_v27 = vcombine.low %v21_v23, %v21_v23  ;;  %v433_v28 = vld [vmem:[%s541_s0 + $0x8] ss:$0 sps:$4 sm:$0xff]  }
   0x9   :  { %389 = vmatprep.subr.bf16.mxu1 %v434_v1  ;;  %v427_v21 = vld [vmem:[%s540_s1 + $0xb0] sm:$0xff]   ;;  %v430_v26 = vld [vmem:[%s540_s1 + $0xb8] sm:$0xff]   ;;  %v353_v35 = vld [vmem:[%s542_s2] ss:$0 sm:$0xff] }
   0xa   :  { %258 = vmatprep.mubr.bf16.mxu0 %v327_v24 }
   0xb   :  { %359 = vmatpush3.bf16.msra.mxu0 %v414_v8 }
   0xc   :  { %390 = vmatpush3.bf16.msra.mxu1 %v415_v9  ;;  %360 = vmatprep.subr.bf16.mxu0 %v416_v10 }
   0xd   :  { %391 = vmatprep.subr.bf16.mxu1 %v434_v1 }
   0xf   :  { %361 = vmatpush3.bf16.msra.mxu0 %v417_v11 }
  0x10   :  { %392 = vmatpush3.bf16.msra.mxu1 %v418_v12  ;;  %362 = vmatprep.subr.bf16.mxu0 %v419_v13 }
  0x11   :  { %393 = vmatprep.subr.bf16.mxu1 %v434_v1 }
  0x13   :  { %363 = vmatpush3.bf16.msra.mxu0 %v420_v14 }
  0x14   :  { %394 = vmatpush3.bf16.msra.mxu1 %v421_v15  ;;  %364 = vmatprep.subr.bf16.mxu0 %v422_v16 }
  0x15   :  { %395 = vmatprep.subr.bf16.mxu1 %v434_v1 }
  0x17   :  { %365 = vmatpush3.bf16.msra.mxu0 %v423_v17 }
  0x18   :  { %396 = vmatpush3.bf16.msra.mxu1 %v424_v18  ;;  %366 = vmatprep.subr.bf16.mxu0 %v425_v19 }
  0x19   :  { %397 = vmatprep.subr.bf16.mxu1 %v434_v1 }
  0x1b   :  { %367 = vmatpush3.bf16.msra.mxu0 %v426_v20 }
  0x1c   :  { %398 = vmatpush3.bf16.msra.mxu1 %v427_v21  ;;  %368 = vmatprep.subr.bf16.mxu0 %v428_v22 }
  0x1d   :  { %399 = vmatprep.subr.bf16.mxu1 %v434_v1 }
  0x1f   :  { %369 = vmatpush3.bf16.msra.mxu0 %v429_v25 }
  0x20   :  { %400 = vmatpush3.bf16.msra.mxu1 %v430_v26 }
  0x22   :  { %259 = vmatmul.mubr.bf16.vlgmr.msra.gmra.mrb[0].mxu0 %v326_v27 }
  0x23   :  { %402 = vmatmul.mubr.bf16.vlgmr.msra.gmra.mrb[0].mxu1 %v433_v28 }
  0xf5   :  { %v370_v29 = vpop.f32.mrb[0].mxu0 }
  0xf6   :  { %v300_v30 = vpop.f32.mrb[0].mxu1  ;;  %v371_v31 = vpop.f32.mrb[1].mxu0 }
  0xf7   :  { %v372_v32 = vadd.f32 %v371_v31, %v370_v29  ;;  %v403_v33 = vpop.f32.mrb[1].mxu1  ;;  %v373_v34 = vpop.f32.mrb[2].mxu0 }
  0xf8   :  { %v303_v36 = vpop.f32.mrb[2].mxu1  ;;  %v374_v37 = vpop.f32.mrb[3].mxu0 }
  0xf9   :  { %v301_v38 = vadd.f32 %v372_v32, %v300_v30  ;;  %v404_v39 = vpop.f32.mrb[3].mxu1 }
  0xfb   :  { %v319_v40 = vadd.f32 %v353_v35, %v301_v38 }
  0xfd   :  { %v320_v41 = vmax.f32 %v319_v40, 0.0 }
  0xff   :  { %321 = vst [vmem:[%s543_s3] sm:$0xff] %v320_v41 }

// kernel: encoder_forward.42
= control target key start
LH: loop header
LB: loop body
LE: loop exit
PB: predicated region body
PF: predicated region fallthrough
CT: control target
= control target key end

     0   :  { %v193_v0 = vmov 0.0   ;;  %vm194_vm0 = vmmov 0   ;;  %s248_s1 = inlined_call_operand.vmem [shape: bf16[128,128], index: 1, kind: input, shape index: {}]   ;;  %s249_s0 = inlined_call_operand.vmem [shape: bf16[8,128], index: 0, kind: input, shape index: {}]   ;;  %s250_s2 = inlined_call_operand.vmem [shape: f32[1,128], index: 2, kind: input, shape index: {}]   ;;  %s251_s3 = inlined_call_operand.vmem [shape: f32[8,128], index: 3, kind: output, shape index: {}]  }
   0x1   :  { %163 = vmatprep.subr.bf16.mxu0 %v193_v0  ;;  %v185_v1 = vld [vmem:[%s248_s1] sm:$0xff]   ;;  %179 = vmatprep.mubr.msk.bf16.mxu0 %vm194_vm0, %v193_v0  ;;  %v186_v2 = vld [vmem:[%s248_s1 + $0x8] sm:$0xff]   ;;  %v187_v3 = vld [vmem:[%s248_s1 + $0x10] sm:$0xff]  }
   0x2   :  { %164 = vmatpush3.bf16.msra.mxu0 %v185_v1  ;;  %v188_v4 = vld [vmem:[%s248_s1 + $0x18] sm:$0xff]   ;;  %v189_v5 = vld [vmem:[%s248_s1 + $0x20] sm:$0xff]   ;;  %v190_v6 = vld [vmem:[%s248_s1 + $0x28] sm:$0xff]  }
   0x3   :  { %165 = vmatprep.subr.bf16.mxu0 %v193_v0  ;;  %v191_v7 = vld [vmem:[%s248_s1 + $0x30] sm:$0xff]   ;;  %v192_v8 = vld [vmem:[%s248_s1 + $0x38] sm:$0xff]   ;;  %v21_v9 = vld [vmem:[%s249_s0] sm:$0xf] }
   0x4   :  { %v153_v10 = vld [vmem:[%s250_s2] ss:$0 sm:$0xff] }
   0x6   :  { %166 = vmatpush3.bf16.msra.mxu0 %v186_v2 }
   0x7   :  { %167 = vmatprep.subr.bf16.mxu0 %v193_v0 }
   0xa   :  { %168 = vmatpush3.bf16.msra.mxu0 %v187_v3 }
   0xb   :  { %169 = vmatprep.subr.bf16.mxu0 %v193_v0 }
   0xe   :  { %170 = vmatpush3.bf16.msra.mxu0 %v188_v4 }
   0xf   :  { %171 = vmatprep.subr.bf16.mxu0 %v193_v0 }
  0x12   :  { %172 = vmatpush3.bf16.msra.mxu0 %v189_v5 }
  0x13   :  { %173 = vmatprep.subr.bf16.mxu0 %v193_v0 }
  0x16   :  { %174 = vmatpush3.bf16.msra.mxu0 %v190_v6 }
  0x17   :  { %175 = vmatprep.subr.bf16.mxu0 %v193_v0 }
  0x1a   :  { %176 = vmatpush3.bf16.msra.mxu0 %v191_v7 }
  0x1b   :  { %177 = vmatprep.subr.bf16.mxu0 %v193_v0 }
  0x1e   :  { %178 = vmatpush3.bf16.msra.mxu0 %v192_v8 }
  0x21   :  { %180 = vmatmul.mubr.bf16.vlgmr.msra.gmra.mrb[0].mxu0 %v21_v9 }
  0xf4   :  { %v120_v11 = vpop.f32.mrb[0].mxu0 }
  0xf5   :  { %v139_v12 = vadd.f32 %v153_v10, %v120_v11  ;;  %v181_v13 = vpop.f32.mrb[1].mxu0 }
  0xf6   :  { %v123_v14 = vpop.f32.mrb[2].mxu0 }
  0xf7   :  { %140 = vst [vmem:[%s251_s3] sm:$0xff] %v139_v12  ;;  %v182_v15 = vpop.f32.mrb[3].mxu0 }

// kernel: encoder_forward.45
= control target key start
LH: loop header
LB: loop body
LE: loop exit
PB: predicated region body
PF: predicated region fallthrough
CT: control target
= control target key end

     0   :  { %s621_s12 = smov 0   ;;  %s623_s13 = smov 0   ;;  %s670_s0 = inlined_call_operand.vmem [shape: bf16[8,640], index: 0, kind: input, shape index: {}]   ;;  %s671_s1 = inlined_call_operand.vmem [shape: bf16[640,128], index: 1, kind: input, shape index: {}]   ;;  %s672_s2 = inlined_call_operand.vmem [shape: f32[1,128], index: 2, kind: input, shape index: {}]   ;;  %s673_s3 = inlined_call_operand.vmem [shape: f32[8,128], index: 3, kind: output, shape index: {}]  }
   0x1   :  { %s625_s14 = smov 0  }
   0x2 LB: > { %s25_s15 = sadd.s32 1, %s592_s13  ;;  %p492_p0 = scmp.ge.s32.totalorder %s596_s14, 1  ;;  %s596_s14 = sphi %s625_s14, %s13_s14   ;;  %s592_s13 = sphi %s623_s13, %s675_s13   ;;  %s588_s12 = sphi %s621_s12, %s674_s12  }
   0x3   : > { %p26_p1 = scmp.ge.s32.totalorder %s25_s15, 5  ;;  %p187_p2 = scmp.lt.s32.totalorder %s596_s14, 6 }
   0x5   : > { %s677_s15 = smov (%p26_p1, %s25_s15), 0  ;;  %p188_p3 = pnand %p492_p0, %p187_p2 }
   0x6   : > { %p229_p4 = scmp.lt.s32.totalorder (!%p188_p3), %s588_s12, 4  ;;  %s494_s16 = sshll.u32 (!%p188_p3), %s588_s12, 4 }
   0x7   : > { %191 = sbr.rel (%p188_p3) target bundleno = 282 (0x11a), region = 32  ;;  %p236_p5 = scmp.lt.s32.totalorder (!%p188_p3), %s494_s16, 79 }
   0x8   : > { %p496_p6 = scmp.ne.s32.totalorder (!%p188_p3), %s588_s12, 0 }
   0xe   : > { %s230_s17 = scalar_select %p229_p4, %s588_s12, 4 }
   0xf   : > { %s679_s16 = smov (!%p236_p5, %s494_s16), 79  ;;  %258 = sbr.rel (%p496_p6) target bundleno = 22 (0x16), region = 36 }
  0x10   : > { %s493_s18 = sshll.u32 %s230_s17, 2  ;;  %s495_s22 = sshll.u32 %s679_s16, 2  ;;  %v598_v0 = vmov (!%p496_p6), 0.0  }
  0x11   : > { %s647_s21 = scalar_lea.vmem %s670_s0, %s493_s18  ;;  %s242_s25 = scalar_lea.vmem %s671_s1, %s495_s22  ;;  %259 = vst [vmem:[#allocation2] sm:$0xff] (!%p496_p6), %v598_v0 }
  0x16 PF: > { %v566_v1 = vld [vmem:[%s242_s25] sm:$0xff]   ;;  %v599_v2 = vmov 0.0   ;;  %v567_v3 = vld [vmem:[%s242_s25 + $0x8] sm:$0xff]   ;;  %vm600_vm0 = vmmov 0   ;;  %v568_v4 = vld [vmem:[%s242_s25 + $0x10] sm:$0xff]   ;;  %p505_p7 = scmp.ne.s32.totalorder %s588_s12, 4 }
  0x17   : > { %519 = vmatprep.subr.bf16.mxu0 %v599_v2  ;;  %535 = vmatprep.mubr.msk.bf16.mxu0 %vm600_vm0, %v599_v2  ;;  %v569_v5 = vld [vmem:[%s242_s25 + $0x18] sm:$0xff]   ;;  %v570_v6 = vld [vmem:[%s242_s25 + $0x20] sm:$0xff]   ;;  %v571_v7 = vld [vmem:[%s242_s25 + $0x28] sm:$0xff]  }
  0x18   : > { %520 = vmatpush3.bf16.msra.mxu0 %v566_v1  ;;  %v572_v8 = vld [vmem:[%s242_s25 + $0x30] sm:$0xff]   ;;  %v573_v9 = vld [vmem:[%s242_s25 + $0x38] sm:$0xff]   ;;  %v261_v10 = vld [vmem:[%s647_s21] sm:$0xf] }
  0x19   : > { %521 = vmatprep.subr.bf16.mxu0 %v599_v2  ;;  %v260_v11 = vld [vmem:[#allocation2] sm:$0xff] }
  0x1a   : > { %v506_v18 = vld [vmem:[%s672_s2] ss:$0 sm:$0xff] (!%p505_p7) }
  0x1c   : > { %522 = vmatpush3.bf16.msra.mxu0 %v567_v3 }
  0x1d   : > { %523 = vmatprep.subr.bf16.mxu0 %v599_v2 }
  0x20   : > { %524 = vmatpush3.bf16.msra.mxu0 %v568_v4 }
  0x21   : > { %525 = vmatprep.subr.bf16.mxu0 %v599_v2 }
  0x24   : > { %526 = vmatpush3.bf16.msra.mxu0 %v569_v5 }
  0x25   : > { %527 = vmatprep.subr.bf16.mxu0 %v599_v2 }
  0x28   : > { %528 = vmatpush3.bf16.msra.mxu0 %v570_v6 }
  0x29   : > { %529 = vmatprep.subr.bf16.mxu0 %v599_v2 }
  0x2c   : > { %530 = vmatpush3.bf16.msra.mxu0 %v571_v7 }
  0x2d   : > { %531 = vmatprep.subr.bf16.mxu0 %v599_v2 }
  0x30   : > { %532 = vmatpush3.bf16.msra.mxu0 %v572_v8 }
  0x31   : > { %533 = vmatprep.subr.bf16.mxu0 %v599_v2 }
  0x34   : > { %534 = vmatpush3.bf16.msra.mxu0 %v573_v9 }
  0x37   : > { %536 = vmatmul.mubr.bf16.vlgmr.msra.gmra.mrb[0].mxu0 %v261_v10 }
 0x107   : > { %371 = sbr.rel (%p505_p7) target bundleno = 282 (0x11a), region = 40 }
 0x10a   : > { %v360_v12 = vpop.f32.mrb[0].mxu0 }
 0x10b   : > { %v366_v13 = vadd.f32 %v360_v12, %v260_v11  ;;  %v537_v14 = vpop.f32.mrb[1].mxu0 }
 0x10c   : > { %v363_v15 = vpop.f32.mrb[2].mxu0 }
 0x10d   : > { %367 = vst [vmem:[#allocation2] sm:$0xff] %v366_v13  ;;  %v538_v16 = vpop.f32.mrb[3].mxu0 }
 0x114   : > { %v372_v17 = vld [vmem:[#allocation2] sm:$0xff] }
 0x115   : > { %v380_v19 = vadd.f32 %v506_v18, %v372_v17 }
 0x117   : > { %v381_v20 = vmax.f32 %v380_v19, 0.0 }
 0x119   : > { %382 = vst [vmem:[%s673_s3] sm:$0xff] %v381_v20 }
 0x11a PF: > { %s13_s14 = sadd.s32 1, %s596_s14   ;;  %s674_s12 = smov %s592_s13 }
 0x11b   : > { %p10_p8 = scmp.ge.s32.totalorder %s13_s14, 7   ;;  %s675_s13 = smov %s677_s15 }
 0x11d   :  { %12 = sbr.rel (!%p10_p8) target bundleno = 2 (0x2), region = 76 }

// kernel: encoder_forward.44
= control target key start
LH: loop header
LB: loop body
LE: loop exit
PB: predicated region body
PF: predicated region fallthrough
CT: control target
= control target key end

     0   :  { %s702_s15 = smov 0   ;;  %s704_s16 = smov 0   ;;  %s754_s0 = inlined_call_operand.vmem [shape: bf16[8,640], index: 0, kind: input, shape index: {}]   ;;  %s755_s1 = inlined_call_operand.vmem [shape: bf16[640,128], index: 1, kind: input, shape index: {}]   ;;  %s756_s2 = inlined_call_operand.vmem [shape: f32[1,128], index: 2, kind: input, shape index: {}]   ;;  %s757_s3 = inlined_call_operand.vmem [shape: f32[8,128], index: 3, kind: input, shape index: {}]   ;;  %s758_s4 = inlined_call_operand.vmem [shape: f32[8,128], index: 4, kind: output, shape index: {}]  }
   0x1   :  { %s706_s17 = smov 0  }
   0x2 LB: > { %s26_s18 = sadd.s32 1, %s668_s16  ;;  %p568_p0 = scmp.ge.s32.totalorder %s672_s17, 1  ;;  %s672_s17 = sphi %s706_s17, %s14_s17   ;;  %s668_s16 = sphi %s704_s16, %s760_s16   ;;  %s664_s15 = sphi %s702_s15, %s759_s15  }
   0x3   : > { %p27_p1 = scmp.ge.s32.totalorder %s26_s18, 5  ;;  %p226_p2 = scmp.lt.s32.totalorder %s672_s17, 6 }
   0x5   : > { %s762_s18 = smov (%p27_p1, %s26_s18), 0  ;;  %p227_p3 = pnand %p568_p0, %p226_p2 }
   0x6   : > { %p277_p4 = scmp.lt.s32.totalorder (!%p227_p3), %s664_s15, 4  ;;  %s570_s19 = sshll.u32 (!%p227_p3), %s664_s15, 4 }
   0x7   : > { %230 = sbr.rel (%p227_p3) target bundleno = 284 (0x11c), region = 36  ;;  %p284_p5 = scmp.lt.s32.totalorder (!%p227_p3), %s570_s19, 79 }
   0x8   : > { %p572_p6 = scmp.ne.s32.totalorder (!%p227_p3), %s664_s15, 0 }
   0xe   : > { %s278_s20 = scalar_select %p277_p4, %s664_s15, 4 }
   0xf   : > { %s764_s19 = smov (!%p284_p5, %s570_s19), 79  ;;  %313 = sbr.rel (%p572_p6) target bundleno = 22 (0x16), region = 40 }
  0x10   : > { %s569_s21 = sshll.u32 %s278_s20, 2  ;;  %s571_s25 = sshll.u32 %s764_s19, 2  ;;  %v674_v0 = vmov (!%p572_p6), 0.0  }
  0x11   : > { %s728_s24 = scalar_lea.vmem %s754_s0, %s569_s21  ;;  %s290_s28 = scalar_lea.vmem %s755_s1, %s571_s25  ;;  %314 = vst [vmem:[#allocation2] sm:$0xff] (!%p572_p6), %v674_v0 }
  0x16 PF: > { %v642_v1 = vld [vmem:[%s290_s28] sm:$0xff]   ;;  %v675_v2 = vmov 0.0   ;;  %v643_v3 = vld [vmem:[%s290_s28 + $0x8] sm:$0xff]   ;;  %vm676_vm0 = vmmov 0   ;;  %v644_v4 = vld [vmem:[%s290_s28 + $0x10] sm:$0xff]   ;;  %p581_p7 = scmp.ne.s32.totalorder %s664_s15, 4 }
  0x17   : > { %595 = vmatprep.subr.bf16.mxu0 %v675_v2  ;;  %611 = vmatprep.mubr.msk.bf16.mxu0 %vm676_vm0, %v675_v2  ;;  %v645_v5 = vld [vmem:[%s290_s28 + $0x18] sm:$0xff]   ;;  %v646_v6 = vld [vmem:[%s290_s28 + $0x20] sm:$0xff]   ;;  %v647_v7 = vld [vmem:[%s290_s28 + $0x28] sm:$0xff]  }
  0x18   : > { %596 = vmatpush3.bf16.msra.mxu0 %v642_v1  ;;  %v648_v8 = vld [vmem:[%s290_s28 + $0x30] sm:$0xff]   ;;  %v649_v9 = vld [vmem:[%s290_s28 + $0x38] sm:$0xff]   ;;  %v316_v10 = vld [vmem:[%s728_s24] sm:$0xf] }
  0x19   : > { %597 = vmatprep.subr.bf16.mxu0 %v675_v2  ;;  %v315_v11 = vld [vmem:[#allocation2] sm:$0xff] }
  0x1a   : > { %v582_v18 = vld [vmem:[%s756_s2] ss:$0 sm:$0xff] (!%p581_p7) }
  0x1b   : > { %v436_v19 = vld [vmem:[%s757_s3] sm:$0xff] (!%p581_p7) }
  0x1c   : > { %598 = vmatpush3.bf16.msra.mxu0 %v643_v3 }
  0x1d   : > { %599 = vmatprep.subr.bf16.mxu0 %v675_v2 }
  0x20   : > { %600 = vmatpush3.bf16.msra.mxu0 %v644_v4 }
  0x21   : > { %601 = vmatprep.subr.bf16.mxu0 %v675_v2 }
  0x24   : > { %602 = vmatpush3.bf16.msra.mxu0 %v645_v5 }
  0x25   : > { %603 = vmatprep.subr.bf16.mxu0 %v675_v2 }
  0x28   : > { %604 = vmatpush3.bf16.msra.mxu0 %v646_v6 }
  0x29   : > { %605 = vmatprep.subr.bf16.mxu0 %v675_v2 }
  0x2c   : > { %606 = vmatpush3.bf16.msra.mxu0 %v647_v7 }
  0x2d   : > { %607 = vmatprep.subr.bf16.mxu0 %v675_v2 }
  0x30   : > { %608 = vmatpush3.bf16.msra.mxu0 %v648_v8 }
  0x31   : > { %609 = vmatprep.subr.bf16.mxu0 %v675_v2 }
  0x34   : > { %610 = vmatpush3.bf16.msra.mxu0 %v649_v9 }
  0x37   : > { %612 = vmatmul.mubr.bf16.vlgmr.msra.gmra.mrb[0].mxu0 %v316_v10 }
 0x107   : > { %426 = sbr.rel (%p581_p7) target bundleno = 284 (0x11c), region = 44 }
 0x10a   : > { %v415_v12 = vpop.f32.mrb[0].mxu0 }
 0x10b   : > { %v421_v13 = vadd.f32 %v415_v12, %v315_v11  ;;  %v613_v14 = vpop.f32.mrb[1].mxu0 }
 0x10c   : > { %v418_v15 = vpop.f32.mrb[2].mxu0 }
 0x10d   : > { %422 = vst [vmem:[#allocation2] sm:$0xff] %v421_v13  ;;  %v614_v16 = vpop.f32.mrb[3].mxu0 }
 0x114   : > { %v427_v17 = vld [vmem:[#allocation2] sm:$0xff] }
 0x115   : > { %v435_v20 = vadd.f32 %v582_v18, %v427_v17 }
 0x117   : > { %v437_v21 = vadd.f32 %v436_v19, %v435_v20 }
 0x119   : > { %v438_v22 = vmax.f32 %v437_v21, 0.0 }
 0x11b   : > { %439 = vst [vmem:[%s758_s4] sm:$0xff] %v438_v22 }
 0x11c PF: > { %s14_s17 = sadd.s32 1, %s672_s17   ;;  %s759_s15 = smov %s668_s16 }
 0x11d   : > { %p11_p8 = scmp.ge.s32.totalorder %s14_s17, 7   ;;  %s760_s16 = smov %s762_s18 }
 0x11f   :  { %13 = sbr.rel (!%p11_p8) target bundleno = 2 (0x2), region = 83 }

// kernel: encoder_forward.47
= control target key start
LH: loop header
LB: loop body
LE: loop exit
PB: predicated region body
PF: predicated region fallthrough
CT: control target
= control target key end

     0   :  { %v231_v1 = vmov 0   ;;  %v172_v18 = vlaneseq  ;;  %s312_s1 = inlined_call_operand.vmem [shape: bf16[128,256], index: 1, kind: input, shape index: {}]   ;;  %s313_s0 = inlined_call_operand.vmem [shape: bf16[8,128], index: 0, kind: input, shape index: {}]   ;;  %s314_s2 = inlined_call_operand.vmem [shape: f32[1,256], index: 2, kind: input, shape index: {}]   ;;  %s315_s3 = inlined_call_operand.vmem [shape: f32[8,256], index: 3, kind: output, shape index: {}]  }
   0x1   :  { %v207_v0 = vld [vmem:[%s312_s1 + $0x4] ss:$8 sps:$4 sm:$0xff]   ;;  %152 = vmatprep.mubr.bf16.mxu0 %v231_v1  ;;  %v209_v2 = vld [vmem:[%s312_s1] ss:$8 sps:$4 sm:$0xff]   ;;  %v210_v3 = vld [vmem:[%s312_s1 + $0x14] ss:$8 sps:$4 sm:$0xff]  }
   0x2   :  { %120 = vmatprep.subr.bf16.mxu0 %v207_v0  ;;  %v212_v4 = vld [vmem:[%s312_s1 + $0x10] ss:$8 sps:$4 sm:$0xff]   ;;  %v213_v5 = vld [vmem:[%s312_s1 + $0x24] ss:$8 sps:$4 sm:$0xff]   ;;  %v215_v6 = vld [vmem:[%s312_s1 + $0x20] ss:$8 sps:$4 sm:$0xff]  }
   0x3   :  { %121 = vmatpush1.bf16.msra.mxu0 %v209_v2  ;;  %v216_v7 = vld [vmem:[%s312_s1 + $0x34] ss:$8 sps:$4 sm:$0xff]   ;;  %v218_v8 = vld [vmem:[%s312_s1 + $0x30] ss:$8 sps:$4 sm:$0xff]   ;;  %v219_v9 = vld [vmem:[%s312_s1 + $0x44] ss:$8 sps:$4 sm:$0xff]  }
   0x4   :  { %122 = vmatprep.subr.bf16.mxu0 %v210_v3  ;;  %v221_v10 = vld [vmem:[%s312_s1 + $0x40] ss:$8 sps:$4 sm:$0xff]   ;;  %v222_v11 = vld [vmem:[%s312_s1 + $0x54] ss:$8 sps:$4 sm:$0xff]   ;;  %v224_v12 = vld [vmem:[%s312_s1 + $0x50] ss:$8 sps:$4 sm:$0xff]  }
   0x5   :  { %v225_v13 = vld [vmem:[%s312_s1 + $0x64] ss:$8 sps:$4 sm:$0xff]   ;;  %v227_v14 = vld [vmem:[%s312_s1 + $0x60] ss:$8 sps:$4 sm:$0xff]   ;;  %v228_v15 = vld [vmem:[%s312_s1 + $0x74] ss:$8 sps:$4 sm:$0xff]  }
   0x6   :  { %v230_v16 = vld [vmem:[%s312_s1 + $0x70] ss:$8 sps:$4 sm:$0xff]   ;;  %v23_v17 = vld [vmem:[%s313_s0] sm:$0xf]  ;;  %v173_v19 = vshrl.u32 %v172_v18, 7 }
   0x7   :  { %123 = vmatpush1.bf16.msra.mxu0 %v212_v4  ;;  %v170_v21 = vld [vmem:[%s314_s2] sm:$0x3] }
   0x8   :  { %124 = vmatprep.subr.bf16.mxu0 %v213_v5  ;;  %v174_v20 = vsub.s32 0, %v173_v19  ;;  %v178_v22 = vsub.s32 1, %v173_v19 }
   0xa   :  { %v175_v23 = vrot.slane %v170_v21, %v174_v20  ;;  %v179_v24 = vrot.slane %v170_v21, %v178_v22 }
   0xb   :  { %125 = vmatpush1.bf16.msra.mxu0 %v215_v6 }
   0xc   :  { %126 = vmatprep.subr.bf16.mxu0 %v216_v7 }
   0xf   :  { %127 = vmatpush1.bf16.msra.mxu0 %v218_v8 }
  0x10   :  { %128 = vmatprep.subr.bf16.mxu0 %v219_v9 }
  0x13   :  { %129 = vmatpush1.bf16.msra.mxu0 %v221_v10 }
  0x14   :  { %130 = vmatprep.subr.bf16.mxu0 %v222_v11 }
  0x17   :  { %131 = vmatpush1.bf16.msra.mxu0 %v224_v12 }
  0x18   :  { %132 = vmatprep.subr.bf16.mxu0 %v225_v13 }
  0x1b   :  { %133 = vmatpush1.bf16.msra.mxu0 %v227_v14 }
  0x1c   :  { %134 = vmatprep.subr.bf16.mxu0 %v228_v15 }
  0x1f   :  { %135 = vmatpush1.bf16.msra.mxu0 %v230_v16 }
  0x22   :  { %153 = vmatmul.mubr.bf16.vlgmr.msra.gmra.mrb[0].mxu0 %v23_v17 }
  0xf5   :  { %v154_v25 = vpop.f32.mrb[0].mxu0 }
  0xf6   :  { %v182_v26 = vadd.f32 %v175_v23, %v154_v25  ;;  %v156_v27 = vpop.f32.mrb[1].mxu0 }
  0xf7   :  { %v183_v28 = vadd.f32 %v179_v24, %v156_v27  ;;  %v158_v29 = vpop.f32.mrb[2].mxu0 }
  0xf8   :  { %184 = vst [vmem:[%s315_s3] sm:$0xff] %v182_v26  ;;  %v159_v30 = vpop.f32.mrb[3].mxu0 }
  0xf9   :  { %185 = vst [vmem:[%s315_s3 + $0x8] sm:$0xff] %v183_v28 }

</bundles_post_ra>
